<compile_context>
chip_gen: v7x
topology: tpu7x:2x2x1
jax: 0.10.0
libtpu: 0.0.40
codegen_flags: <defaults>
</compile_context>

<pallas_src>
import jax
import jax.numpy as jnp
from jax import lax
from jax.experimental import pallas as pl
from jax.experimental.pallas import tpu as pltpu

LN_EPS = 1e-5          # torch.nn.LayerNorm default eps
_MIB = 1024 * 1024


def _layernorm(x, gamma, beta):
    mu = jnp.mean(x, axis=-1, keepdims=True)
    var = jnp.mean((x - mu) ** 2, axis=-1, keepdims=True)
    return (x - mu) * lax.rsqrt(var + LN_EPS) * gamma + beta


# ----------------------------------------------------------------------------
# Kernel
# ----------------------------------------------------------------------------
def make_encoder_layer_kernel(dim, head_num, n, block_b, hid_dim, hid_chunk):
    dh = dim // head_num
    scale = dh ** -0.5
    rows = block_b * n
    n_hid_chunks = hid_dim // hid_chunk

    def kernel(x_ref, wqvk_ref, bqvk_ref, hmask_ref, g1_ref, be1_ref,
               w1_ref, bf1_ref, w2_ref, bf2_ref, g2_ref, be2_ref, out_ref):
        xf = x_ref[...].reshape(rows, dim)                  # (rows, dim) f32

        # ---- fused q/v/k projection: bf16 operands, f32 MXU accumulation ----
        qvk = jnp.dot(xf.astype(jnp.bfloat16), wqvk_ref[...],
                      preferred_element_type=jnp.float32) + bqvk_ref[...]
        q_all = qvk[:, :dim]          # torch.chunk order in to_eachhead: q,v,k
        v_all = qvk[:, dim:2 * dim]
        k_all = qvk[:, 2 * dim:]

        hmask = hmask_ref[...]        # (dim, dim) bf16 block-diag head mask

        # ---- q: softmax over each head's dh chunk (lane-flat) ---------------
        # Subtracting the per-row global max is softmax-invariant per chunk.
        qe = jnp.exp(q_all - jnp.max(q_all, axis=-1, keepdims=True))
        qden = jnp.dot(qe.astype(jnp.bfloat16), hmask,       # bf16 x bf16 MXU
                       preferred_element_type=jnp.float32)
        q_sm = qe * (scale * pl.reciprocal(qden, approx=True))   # scale AFTER
        # the softmax, matching linear_attn (q = softmax(q); q = q*dh**-0.5).

        # ---- k: softmax over the sequence axis -------------------------------
        k3 = k_all.reshape(block_b, n, dim)
        v3 = v_all.reshape(block_b, n, dim)
        ke = jnp.exp(k3 - jnp.max(k3, axis=1, keepdims=True))
        k_sm = ke * pl.reciprocal(jnp.sum(ke, axis=1, keepdims=True),
                                  approx=True)

        # ---- linear attention, all heads in two batched MXU matmuls ---------
        # ctx (dim, dim) keeps only the within-head (dh x dh) diagonal blocks,
        # which is exactly einsum('bhnd,bhne->bhde') per head without head
        # reshapes.  FFN FLOPs dominate, so the cross-head waste is tolerated.
        ctx = jnp.einsum('bnd,bne->bde',
                         k_sm.astype(jnp.bfloat16), v3.astype(jnp.bfloat16),
                         preferred_element_type=jnp.float32)
        ctx = ctx * hmask.astype(jnp.float32)
        q3 = q_sm.reshape(block_b, n, dim)
        attn = jnp.einsum('bnd,bde->bne',
                          q3.astype(jnp.bfloat16), ctx.astype(jnp.bfloat16),
                          preferred_element_type=jnp.float32)
        sa = attn.reshape(rows, dim)                          # == concat_head

        out1 = _layernorm(sa + xf, g1_ref[...], be1_ref[...])

        # ---- feed-forward, tiled over hid_dim (dropout p=0 is identity) -----
        out1_bf = out1.astype(jnp.bfloat16)
        if n_hid_chunks > 1:
            def ff_body(c, acc):
                off = pl.multiple_of(c * hid_chunk, hid_chunk)
                h1 = jnp.maximum(
                    jnp.dot(out1_bf, w1_ref[:, pl.ds(off, hid_chunk)],
                            preferred_element_type=jnp.float32)
                    + bf1_ref[:, pl.ds(off, hid_chunk)], 0.0)
                return acc + jnp.dot(h1.astype(jnp.bfloat16),
                                     w2_ref[pl.ds(off, hid_chunk), :],
                                     preferred_element_type=jnp.float32)
            ff = lax.fori_loop(0, n_hid_chunks, ff_body,
                               jnp.zeros((rows, dim), jnp.float32))
        else:
            h1 = jnp.maximum(
                jnp.dot(out1_bf, w1_ref[...],
                        preferred_element_type=jnp.float32) + bf1_ref[...], 0.0)
            ff = jnp.dot(h1.astype(jnp.bfloat16), w2_ref[...],
                         preferred_element_type=jnp.float32)
        ff = ff + bf2_ref[...]

        out2 = _layernorm(ff + out1, g2_ref[...], be2_ref[...])
        out_ref[...] = out2.reshape(block_b, n, dim)

    return kernel


# ----------------------------------------------------------------------------
# VMEM sizing helpers
# ----------------------------------------------------------------------------
def _weight_vmem_bytes(dim, hid_dim):
    b = dim * 3 * dim * 2 + 3 * dim * 4          # wqvk (bf16) + bias (f32)
    b += dim * hid_dim * 2 + hid_dim * 4         # w1 + bf1
    b += hid_dim * dim * 2 + dim * 4             # w2 + bf2
    b += 4 * dim * 4                             # LayerNorm gammas / betas
    b += dim * dim * 2                           # head mask (bf16)
    return b


def _act_vmem_bytes(block_b, n, dim, hid_chunk):
    rows = block_b * n
    b = 2 * 2 * rows * dim * 4                   # double-buffered x-in + out
    b += rows * 3 * dim * 4                      # qvk
    b += 10 * rows * dim * 4                     # q/v/k, softmax, attn, LN tmp
    b += 6 * rows * dim                          # assorted bf16 copies
    b += block_b * dim * dim * 6                 # ctx f32 + bf16
    b += rows * hid_chunk * 6                    # h1 chunk f32 + bf16
    return b


def _vmem_capacity_bytes():
    try:
        return int(pltpu.get_tpu_info().vmem_capacity_bytes)
    except Exception:
        return 64 * _MIB        # conservative: v7x per-TC physical VMEM


# ----------------------------------------------------------------------------
# Wrapper
# ----------------------------------------------------------------------------
def encoder_layer_apply(x, p, block_b=None):
    """Forward pass of one EncoderLayer.  x: (B, n, dim) f32."""
    B, n, dim = x.shape
    head_num = p['head_num']
    assert dim % head_num == 0
    dh = dim // head_num
    hid_dim = p['w1'].shape[1]
    hid_chunk = 512 if (hid_dim % 512 == 0 and hid_dim > 512) else hid_dim

    # Per-chip VMEM budget (leave 16 MiB headroom for compiler scratch / sems).
    usable = max(_vmem_capacity_bytes() - 16 * _MIB, 16 * _MIB)
    act_budget = max(usable - 2 * _weight_vmem_bytes(dim, hid_dim), 4 * _MIB)

    if block_b is None:
        # Largest batch block (divisor of B) whose activations fit the budget:
        # bigger blocks amortize per-step pipeline overhead and give the MXU a
        # taller M dimension.  For v7x 2-TC tuning, pass block_b so that
        # B // block_b is even.
        block_b = 1
        for cand in range(1, B + 1):
            if B % cand == 0 and _act_vmem_bytes(cand, n, dim, hid_chunk) <= act_budget:
                block_b = cand
    assert B % block_b == 0
    grid_b = B // block_b

    # Block-diagonal 0/1 head mask (exact in bf16; half the DMA of f32).
    head_id = jnp.arange(dim) // dh
    hmask = (head_id[:, None] == head_id[None, :]).astype(jnp.bfloat16)

    # Big weights in bf16 (halves weight DMA); biases / LN params stay f32.
    weights = [
        p['wqvk'].astype(jnp.bfloat16), p['bqvk'], hmask,
        p['g1'], p['be1'],
        p['w1'].astype(jnp.bfloat16), p['bf1'],
        p['w2'].astype(jnp.bfloat16), p['bf2'],
        p['g2'], p['be2'],
    ]

    est = (2 * _weight_vmem_bytes(dim, hid_dim)
           + _act_vmem_bytes(block_b, n, dim, hid_chunk))
    vmem_limit = int(min(usable, max(est * 1.5 + 8 * _MIB, 32 * _MIB)))

    kernel = make_encoder_layer_kernel(dim, head_num, n, block_b,
                                       hid_dim, hid_chunk)

    def build(single_buffer_weights):
        if single_buffer_weights:
            # Constant-index weights: single VMEM buffer (no double buffering).
            w_specs = [pl.BlockSpec(tuple(w.shape), lambda b: (0, 0),
                                    pipeline_mode=pl.Buffered(1))
                       for w in weights]
        else:
            w_specs = [pl.BlockSpec(tuple(w.shape), lambda b: (0, 0))
                       for w in weights]
        in_specs = ([pl.BlockSpec((block_b, n, dim), lambda b: (b, 0, 0))]
                    + w_specs)
        return pl.pallas_call(
            kernel,
            out_shape=jax.ShapeDtypeStruct((B, n, dim), jnp.float32),
            grid=(grid_b,),
            in_specs=in_specs,
            out_specs=pl.BlockSpec((block_b, n, dim), lambda b: (b, 0, 0)),
            compiler_params=pltpu.CompilerParams(
                dimension_semantics=("parallel",),
                vmem_limit_bytes=vmem_limit),
        )

    try:
        out = build(True)(x, *weights)
        return jax.block_until_ready(out)
    except Exception:
        # Older JAX without BlockSpec.pipeline_mode support: default buffering.
        return build(False)(x, *weights)


# ----------------------------------------------------------------------------
# Pure-JAX reference (mirrors the PyTorch module, f32) for a tolerance check.
# ----------------------------------------------------------------------------
def encoder_layer_reference(x, p):
    B, n, dim = x.shape
    h = p['head_num']
    dh = dim // h
    qvk = x @ p['wqvk'] + p['bqvk']
    q, v, k = jnp.split(qvk, 3, axis=-1)                  # chunk order q, v, k

    def to_heads(t):
        return t.reshape(B, n, h, dh).transpose(0, 2, 1, 3)   # (B, h, n, dh)

    q, v, k = to_heads(q), to_heads(v), to_heads(k)
    q = jax.nn.softmax(q, axis=-1)
    k = jax.nn.softmax(k, axis=-2)
    q = q * dh ** -0.5
    ctx = jnp.einsum('bhnd,bhne->bhde', k, v)
    attn = jnp.einsum('bhnd,bhde->bhne', q, ctx)
    out = attn.transpose(0, 2, 1, 3).reshape(B, n, dim)   # concat_head
    out = _layernorm(out + x, p['g1'], p['be1'])
    res = out
    hid = jnp.maximum(out @ p['w1'] + p['bf1'], 0.0)
    out = hid @ p['w2'] + p['bf2']
    return _layernorm(out + res, p['g2'], p['be2'])


def init_encoder_layer_params(key, dim, head_num, hid_dim=2048):
    """PyTorch-style uniform init; weights stored (in_features, out_features)."""
    def lin(k, fan_in, fan_out):
        bound = 1.0 / (fan_in ** 0.5)
        kw, kb = jax.random.split(k)
        w = jax.random.uniform(kw, (fan_in, fan_out), jnp.float32, -bound, bound)
        b = jax.random.uniform(kb, (1, fan_out), jnp.float32, -bound, bound)
        return w, b

    k1, k2, k3 = jax.random.split(key, 3)
    wqvk, bqvk = lin(k1, dim, 3 * dim)
    w1, bf1 = lin(k2, dim, hid_dim)
    w2, bf2 = lin(k3, hid_dim, dim)
    ones = jnp.ones((1, dim), jnp.float32)
    zeros = jnp.zeros((1, dim), jnp.float32)
    return dict(head_num=head_num,
                wqvk=wqvk, bqvk=bqvk, g1=ones, be1=zeros,
                w1=w1, bf1=bf1, w2=w2, bf2=bf2, g2=ones, be2=zeros)


if __name__ == "__main__":
    # dim is a multiple of 128 so the last dim is lane-dense (unmasked vst).
    B, n, dim, head_num = 2, 8, 128, 4
    key = jax.random.PRNGKey(0)
    kx, kp = jax.random.split(key)
    x = jax.random.normal(kx, (B, n, dim), jnp.float32)
    params = init_encoder_layer_params(kp, dim, head_num)

    out = encoder_layer_apply(x, params)
    out = jax.block_until_ready(out)
    assert out.shape == (B, n, dim) and out.dtype == jnp.float32
    assert bool(jnp.all(jnp.isfinite(out)))

    # Tolerance check vs. pure-JAX f32 reference (bf16 matmuls => ~1e-2 level).
    ref = encoder_layer_reference(x, params)
    rel_err = float(jnp.max(jnp.abs(out - ref)) / (jnp.max(jnp.abs(ref)) + 1e-6))
    assert rel_err < 5e-2, f"mismatch vs pure-JAX reference: rel_err={rel_err:.4f}"

    print("KERNEL_OK")
</pallas_src>

<mosaic_0001>
module attributes {stable_mosaic.version = 11 : i64} {
  func.func @kernel(%arg0: i32, %arg1: memref<2x8x128xf32, #tpu.memory_space<vmem>>, %arg2: memref<128x384xbf16, #tpu.memory_space<vmem>>, %arg3: memref<1x384xf32, #tpu.memory_space<vmem>>, %arg4: memref<128x128xbf16, #tpu.memory_space<vmem>>, %arg5: memref<1x128xf32, #tpu.memory_space<vmem>>, %arg6: memref<1x128xf32, #tpu.memory_space<vmem>>, %arg7: memref<128x2048xbf16, #tpu.memory_space<vmem>>, %arg8: memref<1x2048xf32, #tpu.memory_space<vmem>>, %arg9: memref<2048x128xbf16, #tpu.memory_space<vmem>>, %arg10: memref<1x128xf32, #tpu.memory_space<vmem>>, %arg11: memref<1x128xf32, #tpu.memory_space<vmem>>, %arg12: memref<1x128xf32, #tpu.memory_space<vmem>>, %arg13: memref<2x8x128xf32, #tpu.memory_space<vmem>>) attributes {dimension_semantics = [#tpu.dimension_semantics<parallel>], iteration_bounds = array<i64: 1>, scalar_prefetch = 0 : i64, scratch_operands = 0 : i64, tpu.core_type = #tpu.core_type<tc>, window_params = [{transform_indices = @transform_0, window_bounds = array<i64: 2, 8, 128>}, {pipeline_mode = #tpu.pipeline_mode<synchronous>, transform_indices = @transform_1, window_bounds = array<i64: 128, 384>}, {pipeline_mode = #tpu.pipeline_mode<synchronous>, transform_indices = @transform_2, window_bounds = array<i64: 1, 384>}, {pipeline_mode = #tpu.pipeline_mode<synchronous>, transform_indices = @transform_3, window_bounds = array<i64: 128, 128>}, {pipeline_mode = #tpu.pipeline_mode<synchronous>, transform_indices = @transform_4, window_bounds = array<i64: 1, 128>}, {pipeline_mode = #tpu.pipeline_mode<synchronous>, transform_indices = @transform_5, window_bounds = array<i64: 1, 128>}, {pipeline_mode = #tpu.pipeline_mode<synchronous>, transform_indices = @transform_6, window_bounds = array<i64: 128, 2048>}, {pipeline_mode = #tpu.pipeline_mode<synchronous>, transform_indices = @transform_7, window_bounds = array<i64: 1, 2048>}, {pipeline_mode = #tpu.pipeline_mode<synchronous>, transform_indices = @transform_8, window_bounds = array<i64: 2048, 128>}, {pipeline_mode = #tpu.pipeline_mode<synchronous>, transform_indices = @transform_9, window_bounds = array<i64: 1, 128>}, {pipeline_mode = #tpu.pipeline_mode<synchronous>, transform_indices = @transform_10, window_bounds = array<i64: 1, 128>}, {pipeline_mode = #tpu.pipeline_mode<synchronous>, transform_indices = @transform_11, window_bounds = array<i64: 1, 128>}, {transform_indices = @transform_12, window_bounds = array<i64: 2, 8, 128>}]} {
    %c0 = arith.constant 0 : index
    %c0_0 = arith.constant 0 : index
    %c0_1 = arith.constant 0 : index
    %0 = vector.load %arg1[%c0, %c0_0, %c0_1] : memref<2x8x128xf32, #tpu.memory_space<vmem>>, vector<2x8x128xf32>
    %1 = vector.shape_cast %0 : vector<2x8x128xf32> to vector<16x128xf32>
    %2 = arith.truncf %1 : vector<16x128xf32> to vector<16x128xbf16>
    %c0_2 = arith.constant 0 : index
    %c0_3 = arith.constant 0 : index
    %3 = vector.load %arg2[%c0_2, %c0_3] : memref<128x384xbf16, #tpu.memory_space<vmem>>, vector<128x384xbf16>
    %cst = arith.constant dense<0.000000e+00> : vector<16x384xf32>
    %4 = tpu.matmul %2, %3, %cst {dimension_numbers = #tpu.dot_dimension_numbers<[1], [0], [0], [1], [0, 0, 1, 1], [], []>} : vector<16x128xbf16>, vector<128x384xbf16>, vector<16x384xf32> -> vector<16x384xf32>
    %c0_4 = arith.constant 0 : index
    %c0_5 = arith.constant 0 : index
    %5 = vector.load %arg3[%c0_4, %c0_5] : memref<1x384xf32, #tpu.memory_space<vmem>>, vector<1x384xf32>
    %6 = vector.broadcast %5 : vector<1x384xf32> to vector<16x384xf32>
    %7 = arith.addf %4, %6 : vector<16x384xf32>
    %8 = vector.extract_strided_slice %7 {offsets = [0, 0], sizes = [16, 128], strides = [1, 1]} : vector<16x384xf32> to vector<16x128xf32>
    %9 = vector.extract_strided_slice %7 {offsets = [0, 128], sizes = [16, 128], strides = [1, 1]} : vector<16x384xf32> to vector<16x128xf32>
    %10 = vector.extract_strided_slice %7 {offsets = [0, 256], sizes = [16, 128], strides = [1, 1]} : vector<16x384xf32> to vector<16x128xf32>
    %c0_6 = arith.constant 0 : index
    %c0_7 = arith.constant 0 : index
    %11 = vector.load %arg4[%c0_6, %c0_7] : memref<128x128xbf16, #tpu.memory_space<vmem>>, vector<128x128xbf16>
    %cst_8 = arith.constant dense<0xFF800000> : vector<16xf32>
    %12 = vector.multi_reduction <maximumf>, %8, %cst_8 [1] : vector<16x128xf32> to vector<16xf32>
    %13 = vector.shape_cast %12 : vector<16xf32> to vector<16x1xf32>
    %14 = vector.broadcast %13 : vector<16x1xf32> to vector<16x128xf32>
    %15 = arith.subf %8, %14 : vector<16x128xf32>
    %16 = math.exp %15 : vector<16x128xf32>
    %17 = arith.truncf %16 : vector<16x128xf32> to vector<16x128xbf16>
    %cst_9 = arith.constant dense<0.000000e+00> : vector<16x128xf32>
    %18 = tpu.matmul %17, %11, %cst_9 {dimension_numbers = #tpu.dot_dimension_numbers<[1], [0], [0], [1], [0, 0, 1, 1], [], []>} : vector<16x128xbf16>, vector<128x128xbf16>, vector<16x128xf32> -> vector<16x128xf32>
    %19 = tpu.reciprocal %18 {approx = true} : vector<16x128xf32> -> vector<16x128xf32>
    %cst_10 = arith.constant 0.176776692 : f32
    %20 = vector.broadcast %cst_10 : f32 to vector<16x128xf32>
    %21 = arith.mulf %20, %19 : vector<16x128xf32>
    %22 = arith.mulf %16, %21 : vector<16x128xf32>
    %23 = vector.shape_cast %10 : vector<16x128xf32> to vector<2x8x128xf32>
    %24 = vector.shape_cast %9 : vector<16x128xf32> to vector<2x8x128xf32>
    %cst_11 = arith.constant dense<0xFF800000> : vector<2x128xf32>
    %25 = vector.multi_reduction <maximumf>, %23, %cst_11 [1] : vector<2x8x128xf32> to vector<2x128xf32>
    %26 = vector.shape_cast %25 : vector<2x128xf32> to vector<2x1x128xf32>
    %27 = vector.broadcast %26 : vector<2x1x128xf32> to vector<2x8x128xf32>
    %28 = arith.subf %23, %27 : vector<2x8x128xf32>
    %29 = math.exp %28 : vector<2x8x128xf32>
    %cst_12 = arith.constant dense<0.000000e+00> : vector<2x128xf32>
    %30 = vector.multi_reduction <add>, %29, %cst_12 [1] : vector<2x8x128xf32> to vector<2x128xf32>
    %31 = vector.shape_cast %30 : vector<2x128xf32> to vector<2x1x128xf32>
    %32 = tpu.reciprocal %31 {approx = true} : vector<2x1x128xf32> -> vector<2x1x128xf32>
    %33 = vector.broadcast %32 : vector<2x1x128xf32> to vector<2x8x128xf32>
    %34 = arith.mulf %29, %33 : vector<2x8x128xf32>
    %35 = arith.truncf %34 : vector<2x8x128xf32> to vector<2x8x128xbf16>
    %36 = arith.truncf %24 : vector<2x8x128xf32> to vector<2x8x128xbf16>
    "tpu.trace_start"() <{level = 10 : i32, message = "bnd,bne->bde"}> : () -> ()
    %cst_13 = arith.constant dense<0.000000e+00> : vector<2x128x128xf32>
    %37 = tpu.matmul %35, %36, %cst_13 {dimension_numbers = #tpu.dot_dimension_numbers<[1], [1], [2], [2], [0, 0, 0, 2, 1, 2], [0], [0]>} : vector<2x8x128xbf16>, vector<2x8x128xbf16>, vector<2x128x128xf32> -> vector<2x128x128xf32>
    "tpu.trace_stop"() : () -> ()
    %38 = arith.extf %11 : vector<128x128xbf16> to vector<128x128xf32>
    %39 = vector.shape_cast %38 : vector<128x128xf32> to vector<1x128x128xf32>
    %40 = vector.broadcast %39 : vector<1x128x128xf32> to vector<2x128x128xf32>
    %41 = arith.mulf %37, %40 : vector<2x128x128xf32>
    %42 = vector.shape_cast %22 : vector<16x128xf32> to vector<2x8x128xf32>
    %43 = arith.truncf %42 : vector<2x8x128xf32> to vector<2x8x128xbf16>
    %44 = arith.truncf %41 : vector<2x128x128xf32> to vector<2x128x128xbf16>
    "tpu.trace_start"() <{level = 10 : i32, message = "bnd,bde->bne"}> : () -> ()
    %cst_14 = arith.constant dense<0.000000e+00> : vector<2x8x128xf32>
    %45 = tpu.matmul %43, %44, %cst_14 {dimension_numbers = #tpu.dot_dimension_numbers<[2], [1], [1], [2], [0, 0, 0, 1, 1, 2], [0], [0]>} : vector<2x8x128xbf16>, vector<2x128x128xbf16>, vector<2x8x128xf32> -> vector<2x8x128xf32>
    "tpu.trace_stop"() : () -> ()
    %46 = vector.shape_cast %45 : vector<2x8x128xf32> to vector<16x128xf32>
    %47 = arith.addf %46, %1 : vector<16x128xf32>
    %c0_15 = arith.constant 0 : index
    %c0_16 = arith.constant 0 : index
    %48 = vector.load %arg5[%c0_15, %c0_16] : memref<1x128xf32, #tpu.memory_space<vmem>>, vector<1x128xf32>
    %c0_17 = arith.constant 0 : index
    %c0_18 = arith.constant 0 : index
    %49 = vector.load %arg6[%c0_17, %c0_18] : memref<1x128xf32, #tpu.memory_space<vmem>>, vector<1x128xf32>
    %cst_19 = arith.constant dense<0.000000e+00> : vector<16xf32>
    %50 = vector.multi_reduction <add>, %47, %cst_19 [1] : vector<16x128xf32> to vector<16xf32>
    %51 = vector.shape_cast %50 : vector<16xf32> to vector<16x1xf32>
    %cst_20 = arith.constant 1.280000e+02 : f32
    %52 = vector.broadcast %cst_20 : f32 to vector<16x1xf32>
    %53 = arith.divf %51, %52 : vector<16x1xf32>
    %54 = vector.broadcast %53 : vector<16x1xf32> to vector<16x128xf32>
    %55 = arith.subf %47, %54 : vector<16x128xf32>
    %56 = arith.mulf %55, %55 : vector<16x128xf32>
    %cst_21 = arith.constant dense<0.000000e+00> : vector<16xf32>
    %57 = vector.multi_reduction <add>, %56, %cst_21 [1] : vector<16x128xf32> to vector<16xf32>
    %58 = vector.shape_cast %57 : vector<16xf32> to vector<16x1xf32>
    %cst_22 = arith.constant 1.280000e+02 : f32
    %59 = vector.broadcast %cst_22 : f32 to vector<16x1xf32>
    %60 = arith.divf %58, %59 : vector<16x1xf32>
    %61 = vector.broadcast %53 : vector<16x1xf32> to vector<16x128xf32>
    %62 = arith.subf %47, %61 : vector<16x128xf32>
    %cst_23 = arith.constant 9.99999974E-6 : f32
    %63 = vector.broadcast %cst_23 : f32 to vector<16x1xf32>
    %64 = arith.addf %60, %63 : vector<16x1xf32>
    %65 = math.rsqrt %64 : vector<16x1xf32>
    %66 = vector.broadcast %65 : vector<16x1xf32> to vector<16x128xf32>
    %67 = arith.mulf %62, %66 : vector<16x128xf32>
    %68 = vector.broadcast %48 : vector<1x128xf32> to vector<16x128xf32>
    %69 = arith.mulf %67, %68 : vector<16x128xf32>
    %70 = vector.broadcast %49 : vector<1x128xf32> to vector<16x128xf32>
    %71 = arith.addf %69, %70 : vector<16x128xf32>
    %72 = arith.truncf %71 : vector<16x128xf32> to vector<16x128xbf16>
    %cst_24 = arith.constant 0.000000e+00 : f32
    %73 = vector.broadcast %cst_24 : f32 to vector<16x128xf32>
    %c0_i32 = arith.constant 0 : i32
    %c4_i32 = arith.constant 4 : i32
    %74 = arith.addi %c0_i32, %c4_i32 : i32
    %c1_i32 = arith.constant 1 : i32
    %75 = scf.for %arg14 = %c0_i32 to %74 step %c1_i32 iter_args(%arg15 = %73) -> (vector<16x128xf32>)  : i32 {
      %c512_i32 = arith.constant 512 : i32
      %106 = arith.muli %arg14, %c512_i32 : i32
      %107 = tpu.assume_multiple %106, 512 : i32
      %c0_40 = arith.constant 0 : index
      %108 = arith.index_cast %107 : i32 to index
      %109 = vector.load %arg7[%c0_40, %108] : memref<128x2048xbf16, #tpu.memory_space<vmem>>, vector<128x512xbf16>
      %cst_41 = arith.constant dense<0.000000e+00> : vector<16x512xf32>
      %110 = tpu.matmul %72, %109, %cst_41 {dimension_numbers = #tpu.dot_dimension_numbers<[1], [0], [0], [1], [0, 0, 1, 1], [], []>} : vector<16x128xbf16>, vector<128x512xbf16>, vector<16x512xf32> -> vector<16x512xf32>
      %c0_42 = arith.constant 0 : index
      %111 = arith.index_cast %107 : i32 to index
      %112 = vector.load %arg8[%c0_42, %111] : memref<1x2048xf32, #tpu.memory_space<vmem>>, vector<1x512xf32>
      %113 = vector.broadcast %112 : vector<1x512xf32> to vector<16x512xf32>
      %114 = arith.addf %110, %113 : vector<16x512xf32>
      %cst_43 = arith.constant 0.000000e+00 : f32
      %115 = vector.broadcast %cst_43 : f32 to vector<16x512xf32>
      %116 = arith.maximumf %114, %115 : vector<16x512xf32>
      %117 = arith.truncf %116 : vector<16x512xf32> to vector<16x512xbf16>
      %118 = arith.index_cast %107 : i32 to index
      %c0_44 = arith.constant 0 : index
      %119 = vector.load %arg9[%118, %c0_44] : memref<2048x128xbf16, #tpu.memory_space<vmem>>, vector<512x128xbf16>
      %cst_45 = arith.constant dense<0.000000e+00> : vector<16x128xf32>
      %120 = tpu.matmul %117, %119, %cst_45 {dimension_numbers = #tpu.dot_dimension_numbers<[1], [0], [0], [1], [0, 0, 1, 1], [], []>} : vector<16x512xbf16>, vector<512x128xbf16>, vector<16x128xf32> -> vector<16x128xf32>
      %121 = arith.addf %arg15, %120 : vector<16x128xf32>
      scf.yield %121 : vector<16x128xf32>
    }
    %c4_i32_25 = arith.constant 4 : i32
    %c0_26 = arith.constant 0 : index
    %c0_27 = arith.constant 0 : index
    %76 = vector.load %arg10[%c0_26, %c0_27] : memref<1x128xf32, #tpu.memory_space<vmem>>, vector<1x128xf32>
    %77 = vector.broadcast %76 : vector<1x128xf32> to vector<16x128xf32>
    %78 = arith.addf %75, %77 : vector<16x128xf32>
    %79 = arith.addf %78, %71 : vector<16x128xf32>
    %c0_28 = arith.constant 0 : index
    %c0_29 = arith.constant 0 : index
    %80 = vector.load %arg11[%c0_28, %c0_29] : memref<1x128xf32, #tpu.memory_space<vmem>>, vector<1x128xf32>
    %c0_30 = arith.constant 0 : index
    %c0_31 = arith.constant 0 : index
    %81 = vector.load %arg12[%c0_30, %c0_31] : memref<1x128xf32, #tpu.memory_space<vmem>>, vector<1x128xf32>
    %cst_32 = arith.constant dense<0.000000e+00> : vector<16xf32>
    %82 = vector.multi_reduction <add>, %79, %cst_32 [1] : vector<16x128xf32> to vector<16xf32>
    %83 = vector.shape_cast %82 : vector<16xf32> to vector<16x1xf32>
    %cst_33 = arith.constant 1.280000e+02 : f32
    %84 = vector.broadcast %cst_33 : f32 to vector<16x1xf32>
    %85 = arith.divf %83, %84 : vector<16x1xf32>
    %86 = vector.broadcast %85 : vector<16x1xf32> to vector<16x128xf32>
    %87 = arith.subf %79, %86 : vector<16x128xf32>
    %88 = arith.mulf %87, %87 : vector<16x128xf32>
    %cst_34 = arith.constant dense<0.000000e+00> : vector<16xf32>
    %89 = vector.multi_reduction <add>, %88, %cst_34 [1] : vector<16x128xf32> to vector<16xf32>
    %90 = vector.shape_cast %89 : vector<16xf32> to vector<16x1xf32>
    %cst_35 = arith.constant 1.280000e+02 : f32
    %91 = vector.broadcast %cst_35 : f32 to vector<16x1xf32>
    %92 = arith.divf %90, %91 : vector<16x1xf32>
    %93 = vector.broadcast %85 : vector<16x1xf32> to vector<16x128xf32>
    %94 = arith.subf %79, %93 : vector<16x128xf32>
    %cst_36 = arith.constant 9.99999974E-6 : f32
    %95 = vector.broadcast %cst_36 : f32 to vector<16x1xf32>
    %96 = arith.addf %92, %95 : vector<16x1xf32>
    %97 = math.rsqrt %96 : vector<16x1xf32>
    %98 = vector.broadcast %97 : vector<16x1xf32> to vector<16x128xf32>
    %99 = arith.mulf %94, %98 : vector<16x128xf32>
    %100 = vector.broadcast %80 : vector<1x128xf32> to vector<16x128xf32>
    %101 = arith.mulf %99, %100 : vector<16x128xf32>
    %102 = vector.broadcast %81 : vector<1x128xf32> to vector<16x128xf32>
    %103 = arith.addf %101, %102 : vector<16x128xf32>
    %104 = vector.shape_cast %103 : vector<16x128xf32> to vector<2x8x128xf32>
    %c0_37 = arith.constant 0 : index
    %c0_38 = arith.constant 0 : index
    %c0_39 = arith.constant 0 : index
    %105 = vector.load %arg13[%c0_37, %c0_38, %c0_39] : memref<2x8x128xf32, #tpu.memory_space<vmem>>, vector<2x8x128xf32>
    tpu.vector_store %arg13[%c0_37, %c0_38, %c0_39], %104 {strides = array<i32>} : memref<2x8x128xf32, #tpu.memory_space<vmem>>, vector<2x8x128xf32>,
    return
  }
  func.func @transform_0(%arg0: i32) -> (i32, i32, i32) {
    %c0_i32 = arith.constant 0 : i32
    %c0_i32_0 = arith.constant 0 : i32
    %c0_i32_1 = arith.constant 0 : i32
    return %arg0, %c0_i32, %c0_i32_0 : i32, i32, i32
  }
  func.func @transform_1(%arg0: i32) -> (i32, i32) {
    %c0_i32 = arith.constant 0 : i32
    %c0_i32_0 = arith.constant 0 : i32
    %c0_i32_1 = arith.constant 0 : i32
    return %c0_i32, %c0_i32_0 : i32, i32
  }
  func.func @transform_2(%arg0: i32) -> (i32, i32) {
    %c0_i32 = arith.constant 0 : i32
    %c0_i32_0 = arith.constant 0 : i32
    %c0_i32_1 = arith.constant 0 : i32
    return %c0_i32, %c0_i32_0 : i32, i32
  }
  func.func @transform_3(%arg0: i32) -> (i32, i32) {
    %c0_i32 = arith.constant 0 : i32
    %c0_i32_0 = arith.constant 0 : i32
    %c0_i32_1 = arith.constant 0 : i32
    return %c0_i32, %c0_i32_0 : i32, i32
  }
  func.func @transform_4(%arg0: i32) -> (i32, i32) {
    %c0_i32 = arith.constant 0 : i32
    %c0_i32_0 = arith.constant 0 : i32
    %c0_i32_1 = arith.constant 0 : i32
    return %c0_i32, %c0_i32_0 : i32, i32
  }
  func.func @transform_5(%arg0: i32) -> (i32, i32) {
    %c0_i32 = arith.constant 0 : i32
    %c0_i32_0 = arith.constant 0 : i32
    %c0_i32_1 = arith.constant 0 : i32
    return %c0_i32, %c0_i32_0 : i32, i32
  }
  func.func @transform_6(%arg0: i32) -> (i32, i32) {
    %c0_i32 = arith.constant 0 : i32
    %c0_i32_0 = arith.constant 0 : i32
    %c0_i32_1 = arith.constant 0 : i32
    return %c0_i32, %c0_i32_0 : i32, i32
  }
  func.func @transform_7(%arg0: i32) -> (i32, i32) {
    %c0_i32 = arith.constant 0 : i32
    %c0_i32_0 = arith.constant 0 : i32
    %c0_i32_1 = arith.constant 0 : i32
    return %c0_i32, %c0_i32_0 : i32, i32
  }
  func.func @transform_8(%arg0: i32) -> (i32, i32) {
    %c0_i32 = arith.constant 0 : i32
    %c0_i32_0 = arith.constant 0 : i32
    %c0_i32_1 = arith.constant 0 : i32
    return %c0_i32, %c0_i32_0 : i32, i32
  }
  func.func @transform_9(%arg0: i32) -> (i32, i32) {
    %c0_i32 = arith.constant 0 : i32
    %c0_i32_0 = arith.constant 0 : i32
    %c0_i32_1 = arith.constant 0 : i32
    return %c0_i32, %c0_i32_0 : i32, i32
  }
  func.func @transform_10(%arg0: i32) -> (i32, i32) {
    %c0_i32 = arith.constant 0 : i32
    %c0_i32_0 = arith.constant 0 : i32
    %c0_i32_1 = arith.constant 0 : i32
    return %c0_i32, %c0_i32_0 : i32, i32
  }
  func.func @transform_11(%arg0: i32) -> (i32, i32) {
    %c0_i32 = arith.constant 0 : i32
    %c0_i32_0 = arith.constant 0 : i32
    %c0_i32_1 = arith.constant 0 : i32
    return %c0_i32, %c0_i32_0 : i32, i32
  }
  func.func @transform_12(%arg0: i32) -> (i32, i32, i32) {
    %c0_i32 = arith.constant 0 : i32
    %c0_i32_0 = arith.constant 0 : i32
    %c0_i32_1 = arith.constant 0 : i32
    return %arg0, %c0_i32, %c0_i32_0 : i32, i32, i32
  }
}

module attributes {stable_mosaic.version = 11 : i64} {
  func.func @kernel(%arg0: i32, %arg1: memref<2x8x128xf32, #tpu.memory_space<vmem>>, %arg2: memref<128x384xbf16, #tpu.memory_space<vmem>>, %arg3: memref<1x384xf32, #tpu.memory_space<vmem>>, %arg4: memref<128x128xbf16, #tpu.memory_space<vmem>>, %arg5: memref<1x128xf32, #tpu.memory_space<vmem>>, %arg6: memref<1x128xf32, #tpu.memory_space<vmem>>, %arg7: memref<128x2048xbf16, #tpu.memory_space<vmem>>, %arg8: memref<1x2048xf32, #tpu.memory_space<vmem>>, %arg9: memref<2048x128xbf16, #tpu.memory_space<vmem>>, %arg10: memref<1x128xf32, #tpu.memory_space<vmem>>, %arg11: memref<1x128xf32, #tpu.memory_space<vmem>>, %arg12: memref<1x128xf32, #tpu.memory_space<vmem>>, %arg13: memref<2x8x128xf32, #tpu.memory_space<vmem>>) attributes {dimension_semantics = [#tpu.dimension_semantics<parallel>], iteration_bounds = array<i64: 1>, scalar_prefetch = 0 : i64, scratch_operands = 0 : i64, tpu.core_type = #tpu.core_type<tc>, window_params = [{transform_indices = @transform_0, window_bounds = array<i64: 2, 8, 128>}, {pipeline_mode = #tpu.pipeline_mode<synchronous>, transform_indices = @transform_1, window_bounds = array<i64: 128, 384>}, {pipeline_mode = #tpu.pipeline_mode<synchronous>, transform_indices = @transform_2, window_bounds = array<i64: 1, 384>}, {pipeline_mode = #tpu.pipeline_mode<synchronous>, transform_indices = @transform_3, window_bounds = array<i64: 128, 128>}, {pipeline_mode = #tpu.pipeline_mode<synchronous>, transform_indices = @transform_4, window_bounds = array<i64: 1, 128>}, {pipeline_mode = #tpu.pipeline_mode<synchronous>, transform_indices = @transform_5, window_bounds = array<i64: 1, 128>}, {pipeline_mode = #tpu.pipeline_mode<synchronous>, transform_indices = @transform_6, window_bounds = array<i64: 128, 2048>}, {pipeline_mode = #tpu.pipeline_mode<synchronous>, transform_indices = @transform_7, window_bounds = array<i64: 1, 2048>}, {pipeline_mode = #tpu.pipeline_mode<synchronous>, transform_indices = @transform_8, window_bounds = array<i64: 2048, 128>}, {pipeline_mode = #tpu.pipeline_mode<synchronous>, transform_indices = @transform_9, window_bounds = array<i64: 1, 128>}, {pipeline_mode = #tpu.pipeline_mode<synchronous>, transform_indices = @transform_10, window_bounds = array<i64: 1, 128>}, {pipeline_mode = #tpu.pipeline_mode<synchronous>, transform_indices = @transform_11, window_bounds = array<i64: 1, 128>}, {transform_indices = @transform_12, window_bounds = array<i64: 2, 8, 128>}]} {
    %c0 = arith.constant 0 : index
    %c0_0 = arith.constant 0 : index
    %c0_1 = arith.constant 0 : index
    %0 = vector.load %arg1[%c0, %c0_0, %c0_1] : memref<2x8x128xf32, #tpu.memory_space<vmem>>, vector<2x8x128xf32>
    %1 = vector.shape_cast %0 : vector<2x8x128xf32> to vector<16x128xf32>
    %2 = arith.truncf %1 : vector<16x128xf32> to vector<16x128xbf16>
    %c0_2 = arith.constant 0 : index
    %c0_3 = arith.constant 0 : index
    %3 = vector.load %arg2[%c0_2, %c0_3] : memref<128x384xbf16, #tpu.memory_space<vmem>>, vector<128x384xbf16>
    %cst = arith.constant dense<0.000000e+00> : vector<16x384xf32>
    %4 = tpu.matmul %2, %3, %cst {dimension_numbers = #tpu.dot_dimension_numbers<[1], [0], [0], [1], [0, 0, 1, 1], [], []>} : vector<16x128xbf16>, vector<128x384xbf16>, vector<16x384xf32> -> vector<16x384xf32>
    %c0_4 = arith.constant 0 : index
    %c0_5 = arith.constant 0 : index
    %5 = vector.load %arg3[%c0_4, %c0_5] : memref<1x384xf32, #tpu.memory_space<vmem>>, vector<1x384xf32>
    %6 = vector.broadcast %5 : vector<1x384xf32> to vector<16x384xf32>
    %7 = arith.addf %4, %6 : vector<16x384xf32>
    %8 = vector.extract_strided_slice %7 {offsets = [0, 0], sizes = [16, 128], strides = [1, 1]} : vector<16x384xf32> to vector<16x128xf32>
    %9 = vector.extract_strided_slice %7 {offsets = [0, 128], sizes = [16, 128], strides = [1, 1]} : vector<16x384xf32> to vector<16x128xf32>
    %10 = vector.extract_strided_slice %7 {offsets = [0, 256], sizes = [16, 128], strides = [1, 1]} : vector<16x384xf32> to vector<16x128xf32>
    %c0_6 = arith.constant 0 : index
    %c0_7 = arith.constant 0 : index
    %11 = vector.load %arg4[%c0_6, %c0_7] : memref<128x128xbf16, #tpu.memory_space<vmem>>, vector<128x128xbf16>
    %cst_8 = arith.constant dense<0xFF800000> : vector<16xf32>
    %12 = vector.multi_reduction <maximumf>, %8, %cst_8 [1] : vector<16x128xf32> to vector<16xf32>
    %13 = vector.shape_cast %12 : vector<16xf32> to vector<16x1xf32>
    %14 = vector.broadcast %13 : vector<16x1xf32> to vector<16x128xf32>
    %15 = arith.subf %8, %14 : vector<16x128xf32>
    %16 = math.exp %15 : vector<16x128xf32>
    %17 = arith.truncf %16 : vector<16x128xf32> to vector<16x128xbf16>
    %cst_9 = arith.constant dense<0.000000e+00> : vector<16x128xf32>
    %18 = tpu.matmul %17, %11, %cst_9 {dimension_numbers = #tpu.dot_dimension_numbers<[1], [0], [0], [1], [0, 0, 1, 1], [], []>} : vector<16x128xbf16>, vector<128x128xbf16>, vector<16x128xf32> -> vector<16x128xf32>
    %19 = tpu.reciprocal %18 {approx = true} : vector<16x128xf32> -> vector<16x128xf32>
    %cst_10 = arith.constant 0.176776692 : f32
    %20 = vector.broadcast %cst_10 : f32 to vector<16x128xf32>
    %21 = arith.mulf %20, %19 : vector<16x128xf32>
    %22 = arith.mulf %16, %21 : vector<16x128xf32>
    %23 = vector.shape_cast %10 : vector<16x128xf32> to vector<2x8x128xf32>
    %24 = vector.shape_cast %9 : vector<16x128xf32> to vector<2x8x128xf32>
    %cst_11 = arith.constant dense<0xFF800000> : vector<2x128xf32>
    %25 = vector.multi_reduction <maximumf>, %23, %cst_11 [1] : vector<2x8x128xf32> to vector<2x128xf32>
    %26 = vector.shape_cast %25 : vector<2x128xf32> to vector<2x1x128xf32>
    %27 = vector.broadcast %26 : vector<2x1x128xf32> to vector<2x8x128xf32>
    %28 = arith.subf %23, %27 : vector<2x8x128xf32>
    %29 = math.exp %28 : vector<2x8x128xf32>
    %cst_12 = arith.constant dense<0.000000e+00> : vector<2x128xf32>
    %30 = vector.multi_reduction <add>, %29, %cst_12 [1] : vector<2x8x128xf32> to vector<2x128xf32>
    %31 = vector.shape_cast %30 : vector<2x128xf32> to vector<2x1x128xf32>
    %32 = tpu.reciprocal %31 {approx = true} : vector<2x1x128xf32> -> vector<2x1x128xf32>
    %33 = vector.broadcast %32 : vector<2x1x128xf32> to vector<2x8x128xf32>
    %34 = arith.mulf %29, %33 : vector<2x8x128xf32>
    %35 = arith.truncf %34 : vector<2x8x128xf32> to vector<2x8x128xbf16>
    %36 = arith.truncf %24 : vector<2x8x128xf32> to vector<2x8x128xbf16>
    "tpu.trace_start"() <{level = 10 : i32, message = "bnd,bne->bde"}> : () -> ()
    %cst_13 = arith.constant dense<0.000000e+00> : vector<2x128x128xf32>
    %37 = tpu.matmul %35, %36, %cst_13 {dimension_numbers = #tpu.dot_dimension_numbers<[1], [1], [2], [2], [0, 0, 0, 2, 1, 2], [0], [0]>} : vector<2x8x128xbf16>, vector<2x8x128xbf16>, vector<2x128x128xf32> -> vector<2x128x128xf32>
    "tpu.trace_stop"() : () -> ()
    %38 = arith.extf %11 : vector<128x128xbf16> to vector<128x128xf32>
    %39 = vector.shape_cast %38 : vector<128x128xf32> to vector<1x128x128xf32>
    %40 = vector.broadcast %39 : vector<1x128x128xf32> to vector<2x128x128xf32>
    %41 = arith.mulf %37, %40 : vector<2x128x128xf32>
    %42 = vector.shape_cast %22 : vector<16x128xf32> to vector<2x8x128xf32>
    %43 = arith.truncf %42 : vector<2x8x128xf32> to vector<2x8x128xbf16>
    %44 = arith.truncf %41 : vector<2x128x128xf32> to vector<2x128x128xbf16>
    "tpu.trace_start"() <{level = 10 : i32, message = "bnd,bde->bne"}> : () -> ()
    %cst_14 = arith.constant dense<0.000000e+00> : vector<2x8x128xf32>
    %45 = tpu.matmul %43, %44, %cst_14 {dimension_numbers = #tpu.dot_dimension_numbers<[2], [1], [1], [2], [0, 0, 0, 1, 1, 2], [0], [0]>} : vector<2x8x128xbf16>, vector<2x128x128xbf16>, vector<2x8x128xf32> -> vector<2x8x128xf32>
    "tpu.trace_stop"() : () -> ()
    %46 = vector.shape_cast %45 : vector<2x8x128xf32> to vector<16x128xf32>
    %47 = arith.addf %46, %1 : vector<16x128xf32>
    %c0_15 = arith.constant 0 : index
    %c0_16 = arith.constant 0 : index
    %48 = vector.load %arg5[%c0_15, %c0_16] : memref<1x128xf32, #tpu.memory_space<vmem>>, vector<1x128xf32>
    %c0_17 = arith.constant 0 : index
    %c0_18 = arith.constant 0 : index
    %49 = vector.load %arg6[%c0_17, %c0_18] : memref<1x128xf32, #tpu.memory_space<vmem>>, vector<1x128xf32>
    %cst_19 = arith.constant dense<0.000000e+00> : vector<16xf32>
    %50 = vector.multi_reduction <add>, %47, %cst_19 [1] : vector<16x128xf32> to vector<16xf32>
    %51 = vector.shape_cast %50 : vector<16xf32> to vector<16x1xf32>
    %cst_20 = arith.constant 1.280000e+02 : f32
    %52 = vector.broadcast %cst_20 : f32 to vector<16x1xf32>
    %53 = arith.divf %51, %52 : vector<16x1xf32>
    %54 = vector.broadcast %53 : vector<16x1xf32> to vector<16x128xf32>
    %55 = arith.subf %47, %54 : vector<16x128xf32>
    %56 = arith.mulf %55, %55 : vector<16x128xf32>
    %cst_21 = arith.constant dense<0.000000e+00> : vector<16xf32>
    %57 = vector.multi_reduction <add>, %56, %cst_21 [1] : vector<16x128xf32> to vector<16xf32>
    %58 = vector.shape_cast %57 : vector<16xf32> to vector<16x1xf32>
    %cst_22 = arith.constant 1.280000e+02 : f32
    %59 = vector.broadcast %cst_22 : f32 to vector<16x1xf32>
    %60 = arith.divf %58, %59 : vector<16x1xf32>
    %61 = vector.broadcast %53 : vector<16x1xf32> to vector<16x128xf32>
    %62 = arith.subf %47, %61 : vector<16x128xf32>
    %cst_23 = arith.constant 9.99999974E-6 : f32
    %63 = vector.broadcast %cst_23 : f32 to vector<16x1xf32>
    %64 = arith.addf %60, %63 : vector<16x1xf32>
    %65 = math.rsqrt %64 : vector<16x1xf32>
    %66 = vector.broadcast %65 : vector<16x1xf32> to vector<16x128xf32>
    %67 = arith.mulf %62, %66 : vector<16x128xf32>
    %68 = vector.broadcast %48 : vector<1x128xf32> to vector<16x128xf32>
    %69 = arith.mulf %67, %68 : vector<16x128xf32>
    %70 = vector.broadcast %49 : vector<1x128xf32> to vector<16x128xf32>
    %71 = arith.addf %69, %70 : vector<16x128xf32>
    %72 = arith.truncf %71 : vector<16x128xf32> to vector<16x128xbf16>
    %cst_24 = arith.constant 0.000000e+00 : f32
    %73 = vector.broadcast %cst_24 : f32 to vector<16x128xf32>
    %c0_i32 = arith.constant 0 : i32
    %c4_i32 = arith.constant 4 : i32
    %74 = arith.addi %c0_i32, %c4_i32 : i32
    %c1_i32 = arith.constant 1 : i32
    %75 = scf.for %arg14 = %c0_i32 to %74 step %c1_i32 iter_args(%arg15 = %73) -> (vector<16x128xf32>)  : i32 {
      %c512_i32 = arith.constant 512 : i32
      %106 = arith.muli %arg14, %c512_i32 : i32
      %107 = tpu.assume_multiple %106, 512 : i32
      %c0_40 = arith.constant 0 : index
      %108 = arith.index_cast %107 : i32 to index
      %109 = vector.load %arg7[%c0_40, %108] : memref<128x2048xbf16, #tpu.memory_space<vmem>>, vector<128x512xbf16>
      %cst_41 = arith.constant dense<0.000000e+00> : vector<16x512xf32>
      %110 = tpu.matmul %72, %109, %cst_41 {dimension_numbers = #tpu.dot_dimension_numbers<[1], [0], [0], [1], [0, 0, 1, 1], [], []>} : vector<16x128xbf16>, vector<128x512xbf16>, vector<16x512xf32> -> vector<16x512xf32>
      %c0_42 = arith.constant 0 : index
      %111 = arith.index_cast %107 : i32 to index
      %112 = vector.load %arg8[%c0_42, %111] : memref<1x2048xf32, #tpu.memory_space<vmem>>, vector<1x512xf32>
      %113 = vector.broadcast %112 : vector<1x512xf32> to vector<16x512xf32>
      %114 = arith.addf %110, %113 : vector<16x512xf32>
      %cst_43 = arith.constant 0.000000e+00 : f32
      %115 = vector.broadcast %cst_43 : f32 to vector<16x512xf32>
      %116 = arith.maximumf %114, %115 : vector<16x512xf32>
      %117 = arith.truncf %116 : vector<16x512xf32> to vector<16x512xbf16>
      %118 = arith.index_cast %107 : i32 to index
      %c0_44 = arith.constant 0 : index
      %119 = vector.load %arg9[%118, %c0_44] : memref<2048x128xbf16, #tpu.memory_space<vmem>>, vector<512x128xbf16>
      %cst_45 = arith.constant dense<0.000000e+00> : vector<16x128xf32>
      %120 = tpu.matmul %117, %119, %cst_45 {dimension_numbers = #tpu.dot_dimension_numbers<[1], [0], [0], [1], [0, 0, 1, 1], [], []>} : vector<16x512xbf16>, vector<512x128xbf16>, vector<16x128xf32> -> vector<16x128xf32>
      %121 = arith.addf %arg15, %120 : vector<16x128xf32>
      scf.yield %121 : vector<16x128xf32>
    }
    %c4_i32_25 = arith.constant 4 : i32
    %c0_26 = arith.constant 0 : index
    %c0_27 = arith.constant 0 : index
    %76 = vector.load %arg10[%c0_26, %c0_27] : memref<1x128xf32, #tpu.memory_space<vmem>>, vector<1x128xf32>
    %77 = vector.broadcast %76 : vector<1x128xf32> to vector<16x128xf32>
    %78 = arith.addf %75, %77 : vector<16x128xf32>
    %79 = arith.addf %78, %71 : vector<16x128xf32>
    %c0_28 = arith.constant 0 : index
    %c0_29 = arith.constant 0 : index
    %80 = vector.load %arg11[%c0_28, %c0_29] : memref<1x128xf32, #tpu.memory_space<vmem>>, vector<1x128xf32>
    %c0_30 = arith.constant 0 : index
    %c0_31 = arith.constant 0 : index
    %81 = vector.load %arg12[%c0_30, %c0_31] : memref<1x128xf32, #tpu.memory_space<vmem>>, vector<1x128xf32>
    %cst_32 = arith.constant dense<0.000000e+00> : vector<16xf32>
    %82 = vector.multi_reduction <add>, %79, %cst_32 [1] : vector<16x128xf32> to vector<16xf32>
    %83 = vector.shape_cast %82 : vector<16xf32> to vector<16x1xf32>
    %cst_33 = arith.constant 1.280000e+02 : f32
    %84 = vector.broadcast %cst_33 : f32 to vector<16x1xf32>
    %85 = arith.divf %83, %84 : vector<16x1xf32>
    %86 = vector.broadcast %85 : vector<16x1xf32> to vector<16x128xf32>
    %87 = arith.subf %79, %86 : vector<16x128xf32>
    %88 = arith.mulf %87, %87 : vector<16x128xf32>
    %cst_34 = arith.constant dense<0.000000e+00> : vector<16xf32>
    %89 = vector.multi_reduction <add>, %88, %cst_34 [1] : vector<16x128xf32> to vector<16xf32>
    %90 = vector.shape_cast %89 : vector<16xf32> to vector<16x1xf32>
    %cst_35 = arith.constant 1.280000e+02 : f32
    %91 = vector.broadcast %cst_35 : f32 to vector<16x1xf32>
    %92 = arith.divf %90, %91 : vector<16x1xf32>
    %93 = vector.broadcast %85 : vector<16x1xf32> to vector<16x128xf32>
    %94 = arith.subf %79, %93 : vector<16x128xf32>
    %cst_36 = arith.constant 9.99999974E-6 : f32
    %95 = vector.broadcast %cst_36 : f32 to vector<16x1xf32>
    %96 = arith.addf %92, %95 : vector<16x1xf32>
    %97 = math.rsqrt %96 : vector<16x1xf32>
    %98 = vector.broadcast %97 : vector<16x1xf32> to vector<16x128xf32>
    %99 = arith.mulf %94, %98 : vector<16x128xf32>
    %100 = vector.broadcast %80 : vector<1x128xf32> to vector<16x128xf32>
    %101 = arith.mulf %99, %100 : vector<16x128xf32>
    %102 = vector.broadcast %81 : vector<1x128xf32> to vector<16x128xf32>
    %103 = arith.addf %101, %102 : vector<16x128xf32>
    %104 = vector.shape_cast %103 : vector<16x128xf32> to vector<2x8x128xf32>
    %c0_37 = arith.constant 0 : index
    %c0_38 = arith.constant 0 : index
    %c0_39 = arith.constant 0 : index
    %105 = vector.load %arg13[%c0_37, %c0_38, %c0_39] : memref<2x8x128xf32, #tpu.memory_space<vmem>>, vector<2x8x128xf32>
    tpu.vector_store %arg13[%c0_37, %c0_38, %c0_39], %104 {strides = array<i32>} : memref<2x8x128xf32, #tpu.memory_space<vmem>>, vector<2x8x128xf32>,
    return
  }
  func.func @transform_0(%arg0: i32) -> (i32, i32, i32) {
    %c0_i32 = arith.constant 0 : i32
    %c0_i32_0 = arith.constant 0 : i32
    %c0_i32_1 = arith.constant 0 : i32
    return %arg0, %c0_i32, %c0_i32_0 : i32, i32, i32
  }
  func.func @transform_1(%arg0: i32) -> (i32, i32) {
    %c0_i32 = arith.constant 0 : i32
    %c0_i32_0 = arith.constant 0 : i32
    %c0_i32_1 = arith.constant 0 : i32
    return %c0_i32, %c0_i32_0 : i32, i32
  }
  func.func @transform_2(%arg0: i32) -> (i32, i32) {
    %c0_i32 = arith.constant 0 : i32
    %c0_i32_0 = arith.constant 0 : i32
    %c0_i32_1 = arith.constant 0 : i32
    return %c0_i32, %c0_i32_0 : i32, i32
  }
  func.func @transform_3(%arg0: i32) -> (i32, i32) {
    %c0_i32 = arith.constant 0 : i32
    %c0_i32_0 = arith.constant 0 : i32
    %c0_i32_1 = arith.constant 0 : i32
    return %c0_i32, %c0_i32_0 : i32, i32
  }
  func.func @transform_4(%arg0: i32) -> (i32, i32) {
    %c0_i32 = arith.constant 0 : i32
    %c0_i32_0 = arith.constant 0 : i32
    %c0_i32_1 = arith.constant 0 : i32
    return %c0_i32, %c0_i32_0 : i32, i32
  }
  func.func @transform_5(%arg0: i32) -> (i32, i32) {
    %c0_i32 = arith.constant 0 : i32
    %c0_i32_0 = arith.constant 0 : i32
    %c0_i32_1 = arith.constant 0 : i32
    return %c0_i32, %c0_i32_0 : i32, i32
  }
  func.func @transform_6(%arg0: i32) -> (i32, i32) {
    %c0_i32 = arith.constant 0 : i32
    %c0_i32_0 = arith.constant 0 : i32
    %c0_i32_1 = arith.constant 0 : i32
    return %c0_i32, %c0_i32_0 : i32, i32
  }
  func.func @transform_7(%arg0: i32) -> (i32, i32) {
    %c0_i32 = arith.constant 0 : i32
    %c0_i32_0 = arith.constant 0 : i32
    %c0_i32_1 = arith.constant 0 : i32
    return %c0_i32, %c0_i32_0 : i32, i32
  }
  func.func @transform_8(%arg0: i32) -> (i32, i32) {
    %c0_i32 = arith.constant 0 : i32
    %c0_i32_0 = arith.constant 0 : i32
    %c0_i32_1 = arith.constant 0 : i32
    return %c0_i32, %c0_i32_0 : i32, i32
  }
  func.func @transform_9(%arg0: i32) -> (i32, i32) {
    %c0_i32 = arith.constant 0 : i32
    %c0_i32_0 = arith.constant 0 : i32
    %c0_i32_1 = arith.constant 0 : i32
    return %c0_i32, %c0_i32_0 : i32, i32
  }
  func.func @transform_10(%arg0: i32) -> (i32, i32) {
    %c0_i32 = arith.constant 0 : i32
    %c0_i32_0 = arith.constant 0 : i32
    %c0_i32_1 = arith.constant 0 : i32
    return %c0_i32, %c0_i32_0 : i32, i32
  }
  func.func @transform_11(%arg0: i32) -> (i32, i32) {
    %c0_i32 = arith.constant 0 : i32
    %c0_i32_0 = arith.constant 0 : i32
    %c0_i32_1 = arith.constant 0 : i32
    return %c0_i32, %c0_i32_0 : i32, i32
  }
  func.func @transform_12(%arg0: i32) -> (i32, i32, i32) {
    %c0_i32 = arith.constant 0 : i32
    %c0_i32_0 = arith.constant 0 : i32
    %c0_i32_1 = arith.constant 0 : i32
    return %arg0, %c0_i32, %c0_i32_0 : i32, i32, i32
  }
}

</mosaic_0001>

<bundles_post_ra>
// kernel: tpu_custom_call.1
= control target key start
LH: loop header
LB: loop body
LE: loop exit
PB: predicated region body
PF: predicated region fallthrough
CT: control target
= control target key end

     0   :  { %17 = vsyncpa [#allocation3], 0  ;;  %s2913_s0 = inlined_call_operand.hbm [shape: f32[2,8,128], index: 0, kind: input, shape index: {}]   ;;  %s2914_s1 = inlined_call_operand.hbm [shape: bf16[128,384], index: 1, kind: input, shape index: {}]   ;;  %s2915_s2 = inlined_call_operand.vmem [shape: f32[1,384], index: 2, kind: input, shape index: {}]   ;;  %s2916_s3 = inlined_call_operand.hbm [shape: bf16[128,128], index: 3, kind: input, shape index: {}]   ;;  %s2917_s4 = inlined_call_operand.vmem [shape: f32[1,128], index: 4, kind: input, shape index: {}]   ;;  %s2918_s5 = inlined_call_operand.vmem [shape: f32[1,128], index: 5, kind: input, shape index: {}]   ;;  %s2919_s6 = inlined_call_operand.hbm [shape: bf16[128,2048], index: 6, kind: input, shape index: {}]   ;;  %s2920_s7 = inlined_call_operand.vmem [shape: f32[1,2048], index: 7, kind: input, shape index: {}]   ;;  %s2921_s8 = inlined_call_operand.hbm [shape: bf16[2048,128], index: 8, kind: input, shape index: {}]   ;;  %s2922_s9 = inlined_call_operand.vmem [shape: f32[1,128], index: 9, kind: input, shape index: {}]   ;;  %s2923_s10 = inlined_call_operand.vmem [shape: f32[1,128], index: 10, kind: input, shape index: {}]   ;;  %s2924_s11 = inlined_call_operand.vmem [shape: f32[1,128], index: 11, kind: input, shape index: {}]   ;;  %s2925_s12 = inlined_call_operand.hbm [shape: f32[2,8,128], index: 12, kind: output, shape index: {}]  }
   0x1   :  { %18 = vsyncpa [#allocation6], 0 }
   0x2   :  { %19 = vsyncpa [#allocation9], 0 }
   0x3   :  { %20 = vsyncpa [#allocation4], 0  ;;  %s2410_s21 = smov [#allocation5]   ;;  %s2246_s25 = scalar_lea.hbm %s2914_s1, 3072 }
   0x4   :  { %s38_s22 = sshll.u32 %s2410_s21, 4  ;;  %p2247_p0 = scmp.ne.s32.totalorder %s2914_s1, %s2246_s25  ;;  %s39_s22 = int_to_ptr.vmem [resolvable:$true] %s38_s22 }
   0x5   :  { %p2250_p1 = scmp.lt.u32.totalorder %s2246_s25, %s2914_s1 }
   0x7   :  { %p2252_p2 = pnand %p2250_p1, %p2247_p0 }
   0x9   :  { %2255 = shalt.err (!%p2252_p2)
}
   0xa   :  { %s2256_s30 = scalar_lea.vmem %s39_s22, 3072  ;;  %p2261_p4 = scmp.lt.s32.totalorder %s39_s22, %s39_s22 }
   0xb   :  { %p2257_p3 = scmp.ne.s32.totalorder %s39_s22, %s2256_s30  ;;  %p2262_p5 = scmp.lt.s32.totalorder %s2256_s30, %s2256_s30 }
   0xd   :  { %p2263_p6 = por %p2262_p5, %p2261_p4 }
   0xf   :  { %p2264_p7 = pnand %p2263_p6, %p2257_p3 }
  0x11   :  { %2267 = shalt.err (!%p2264_p7)
}
  0x12   :  { %s2411_s13 = smov 192   ;;  %s2412_s14 = smov 12  }
  0x13   :  { %44 = dma.hbm_to_vmem [thread:$0]  %s2914_s1, 3072, %s39_s22, [#allocation6], %s2411_s13, %s2411_s13, %s2412_s14  }
  0x14   :  { %s2413_s17 = smov [#allocation8]   ;;  %s2414_s19 = smov [#allocation2]  }
  0x15   :  { %s68_s18 = sshll.u32 %s2413_s17, 4  ;;  %s26_s20 = sshll.u32 %s2414_s19, 4  ;;  %s69_s18 = int_to_ptr.vmem [resolvable:$true] %s68_s18  ;;  %s27_s20 = int_to_ptr.vmem [resolvable:$true] %s26_s20 }
  0x16   :  { %s2268_s24 = scalar_lea.hbm %s2919_s6, 16384 }
  0x17   :  { %p2269_p8 = scmp.ne.s32.totalorder %s2919_s6, %s2268_s24  ;;  %p2272_p9 = scmp.lt.u32.totalorder %s2268_s24, %s2919_s6 }
  0x19   :  { %p2274_p10 = pnand %p2272_p9, %p2269_p8 }
  0x1b   :  { %2277 = shalt.err (!%p2274_p10)
}
  0x1c   :  { %s2278_s1 = scalar_lea.vmem %s69_s18, 16384  ;;  %p2283_p12 = scmp.lt.s32.totalorder %s69_s18, %s69_s18 }
  0x1d   :  { %p2279_p11 = scmp.ne.s32.totalorder %s69_s18, %s2278_s1  ;;  %p2284_p13 = scmp.lt.s32.totalorder %s2278_s1, %s2278_s1 }
  0x1f   :  { %p2285_p0 = por %p2284_p13, %p2283_p12 }
  0x21   :  { %p2286_p1 = pnand %p2285_p0, %p2279_p11 }
  0x23   :  { %2289 = shalt.err (!%p2286_p1)
}
  0x24   :  { %s2415_s22 = smov 1024   ;;  %s2416_s29 = smov 64  }
  0x25   :  { %74 = dma.hbm_to_vmem [thread:$0]  %s2919_s6, 16384, %s69_s18, [#allocation9], %s2415_s22, %s2415_s22, %s2416_s29  }
  0x26   :  { %s2290_s16 = scalar_lea.hbm %s2913_s0, 256 }
  0x27   :  { %p2291_p2 = scmp.ne.s32.totalorder %s2913_s0, %s2290_s16  ;;  %p2294_p3 = scmp.lt.u32.totalorder %s2290_s16, %s2913_s0 }
  0x29   :  { %p2296_p4 = pnand %p2294_p3, %p2291_p2 }
  0x2b   :  { %2299 = shalt.err (!%p2296_p4)
}
  0x2c   :  { %s2300_s24 = scalar_lea.vmem %s27_s20, 256  ;;  %p2305_p6 = scmp.lt.s32.totalorder %s27_s20, %s27_s20 }
  0x2d   :  { %p2301_p5 = scmp.ne.s32.totalorder %s27_s20, %s2300_s24  ;;  %p2306_p7 = scmp.lt.s32.totalorder %s2300_s24, %s2300_s24 }
  0x2f   :  { %p2307_p8 = por %p2306_p7, %p2305_p6 }
  0x31   :  { %p2308_p9 = pnand %p2307_p8, %p2301_p5 }
  0x33   :  { %2311 = shalt.err (!%p2308_p9)
}
  0x34   :  { %s2417_s6 = smov 128   ;;  %s2418_s18 = smov 8  }
  0x35   :  { %32 = dma.hbm_to_vmem [thread:$0]  %s2913_s0, 256, %s27_s20, [#allocation3], %s2417_s6, %s2417_s6, %s2418_s18  }
  0x36   :  { %s2419_s27 = smov [#allocation7]   ;;  %s2312_s30 = scalar_lea.hbm %s2916_s3, 1024 }
  0x37   :  { %s52_s28 = sshll.u32 %s2419_s27, 4  ;;  %p2313_p10 = scmp.ne.s32.totalorder %s2916_s3, %s2312_s30  ;;  %s53_s28 = int_to_ptr.vmem [resolvable:$true] %s52_s28 }
  0x38   :  { %p2316_p11 = scmp.lt.u32.totalorder %s2312_s30, %s2916_s3 }
  0x3a   :  { %p2318_p12 = pnand %p2316_p11, %p2313_p10 }
  0x3c   :  { %2321 = shalt.err (!%p2318_p12)
}
  0x3d   :  { %s2322_s17 = scalar_lea.vmem %s53_s28, 1024  ;;  %p2327_p0 = scmp.lt.s32.totalorder %s53_s28, %s53_s28 }
  0x3e   :  { %p2323_p13 = scmp.ne.s32.totalorder %s53_s28, %s2322_s17  ;;  %p2328_p1 = scmp.lt.s32.totalorder %s2322_s17, %s2322_s17 }
  0x40   :  { %p2329_p2 = por %p2328_p1, %p2327_p0 }
  0x42   :  { %p2330_p3 = pnand %p2329_p2, %p2323_p13 }
  0x44   :  { %2333 = shalt.err (!%p2330_p3)
}
  0x45   :  { %s2420_s0 = smov 4   ;;  %s2421_s21 = smov [#allocation10]  }
  0x46   :  { %58 = dma.hbm_to_vmem [thread:$0]  %s2916_s3, 1024, %s53_s28, [#allocation6], %s2416_s29, %s2416_s29, %s2420_s0  }
  0x47   :  { %s82_s23 = sshll.u32 %s2421_s21, 4  ;;  %s2334_s26 = scalar_lea.hbm %s2921_s8, 16384  ;;  %s83_s23 = int_to_ptr.vmem [resolvable:$true] %s82_s23 }
  0x48   :  { %p2335_p4 = scmp.ne.s32.totalorder %s2921_s8, %s2334_s26  ;;  %p2338_p5 = scmp.lt.u32.totalorder %s2334_s26, %s2921_s8 }
  0x4a   :  { %p2340_p6 = pnand %p2338_p5, %p2335_p4 }
  0x4c   :  { %2343 = shalt.err (!%p2340_p6)
}
  0x4d   :  { %s2344_s13 = scalar_lea.vmem %s83_s23, 16384  ;;  %p2349_p8 = scmp.lt.s32.totalorder %s83_s23, %s83_s23 }
  0x4e   :  { %p2345_p7 = scmp.ne.s32.totalorder %s83_s23, %s2344_s13  ;;  %p2350_p9 = scmp.lt.s32.totalorder %s2344_s13, %s2344_s13 }
  0x50   :  { %p2351_p10 = por %p2350_p9, %p2349_p8 }
  0x52   :  { %p2352_p11 = pnand %p2351_p10, %p2345_p7 }
  0x54   :  { %2355 = shalt.err (!%p2352_p11)
}
  0x55   :  { %88 = dma.hbm_to_vmem [thread:$0]  %s2921_s8, 16384, %s83_s23, [#allocation9], %s2416_s29, %s2416_s29, %s2420_s0  }
  0x56   :  { %2390 = dma.done.wait [#allocation3], 256  }
  0x57   :  { %2391 = vsyncadd [#allocation3], 4294967040 }
  0x58   :  { %2392 = dma.done.wait [#allocation6], 4096  }
  0x59   :  { %2393 = vsyncadd [#allocation6], 4294963200 }
  0x5a   :  { %2394 = dma.done.wait [#allocation9], 32768  }
  0x5b   :  { %2395 = vsyncadd [#allocation9], 4294934528  ;;  %v2422_v0 = vmov 0.0   ;;  %vm2423_vm0 = vmmov 0   ;;  %v2424_v1 = vmov 0   ;;  %v2569_v25 = vld [vmem:[#allocation2] sm:$0xff]  ;;  %v148_v37 = vlaneseq }
  0x5c   :  { %1983 = vmatprep.subr.bf16.mxu1 %v2422_v0  ;;  %1999 = vmatprep.mubr.msk.bf16.mxu1 %vm2423_vm0, %v2422_v0  ;;  %v2142_v2 = vld [vmem:[#allocation5 + $0x4] ss:$12 sps:$4 sm:$0xff]   ;;  %v2144_v3 = vld [vmem:[#allocation5 + $0x8] ss:$12 sps:$4 sm:$0xff]   ;;  %v2145_v4 = vld [vmem:[#allocation5] ss:$12 sps:$4 sm:$0xff]  }
  0x5d   :  { %323 = vmatprep.mubr.bf16.mxu0 %v2424_v1  ;;  %291 = vmatprep.subr.bf16.mxu0 %v2142_v2  ;;  %v2146_v5 = vld [vmem:[#allocation5 + $0x1c] ss:$12 sps:$4 sm:$0xff]   ;;  %v2148_v6 = vld [vmem:[#allocation5 + $0x20] ss:$12 sps:$4 sm:$0xff]   ;;  %v2149_v7 = vld [vmem:[#allocation5 + $0x18] ss:$12 sps:$4 sm:$0xff]  }
  0x5e   :  { %1984 = vmatpush3.bf16.msra.mxu1 %v2144_v3  ;;  %292 = vmatpush1.bf16.msra.mxu0 %v2145_v4  ;;  %v2150_v8 = vld [vmem:[#allocation5 + $0x34] ss:$12 sps:$4 sm:$0xff]   ;;  %v2152_v9 = vld [vmem:[#allocation5 + $0x38] ss:$12 sps:$4 sm:$0xff]   ;;  %v2153_v10 = vld [vmem:[#allocation5 + $0x30] ss:$12 sps:$4 sm:$0xff]  }
  0x5f   :  { %1985 = vmatprep.subr.bf16.mxu1 %v2422_v0  ;;  %293 = vmatprep.subr.bf16.mxu0 %v2146_v5  ;;  %v2154_v11 = vld [vmem:[#allocation5 + $0x4c] ss:$12 sps:$4 sm:$0xff]   ;;  %v2156_v12 = vld [vmem:[#allocation5 + $0x50] ss:$12 sps:$4 sm:$0xff]   ;;  %v2157_v13 = vld [vmem:[#allocation5 + $0x48] ss:$12 sps:$4 sm:$0xff]  }
  0x60   :  { %v2158_v14 = vld [vmem:[#allocation5 + $0x64] ss:$12 sps:$4 sm:$0xff]   ;;  %v2160_v15 = vld [vmem:[#allocation5 + $0x68] ss:$12 sps:$4 sm:$0xff]   ;;  %v2161_v16 = vld [vmem:[#allocation5 + $0x60] ss:$12 sps:$4 sm:$0xff]  }
  0x61   :  { %v2162_v17 = vld [vmem:[#allocation5 + $0x7c] ss:$12 sps:$4 sm:$0xff]   ;;  %v2164_v18 = vld [vmem:[#allocation5 + $0x80] ss:$12 sps:$4 sm:$0xff]   ;;  %v2165_v19 = vld [vmem:[#allocation5 + $0x78] ss:$12 sps:$4 sm:$0xff]  }
  0x62   :  { %1986 = vmatpush3.bf16.msra.mxu1 %v2148_v6  ;;  %294 = vmatpush1.bf16.msra.mxu0 %v2149_v7  ;;  %v2166_v20 = vld [vmem:[#allocation5 + $0x94] ss:$12 sps:$4 sm:$0xff]   ;;  %v2168_v21 = vld [vmem:[#allocation5 + $0x98] ss:$12 sps:$4 sm:$0xff]   ;;  %v2169_v22 = vld [vmem:[#allocation5 + $0x90] ss:$12 sps:$4 sm:$0xff]  }
  0x63   :  { %1987 = vmatprep.subr.bf16.mxu1 %v2422_v0  ;;  %295 = vmatprep.subr.bf16.mxu0 %v2150_v8  ;;  %v2170_v23 = vld [vmem:[#allocation5 + $0xac] ss:$12 sps:$4 sm:$0xff]   ;;  %v2172_v24 = vld [vmem:[#allocation5 + $0xb0] ss:$12 sps:$4 sm:$0xff]   ;;  %v2173_v27 = vld [vmem:[#allocation5 + $0xa8] ss:$12 sps:$4 sm:$0xff]  }
  0x64   :  { %v2571_v26 = vld [vmem:[#allocation2 + $0x8] sm:$0xff]  ;;  %v2574_v28 = vld [vmem:[#allocation7] sm:$0xff]   ;;  %v2583_v30 = vld [vmem:[#allocation7 + $0x8] sm:$0xff]   ;;  %v2610_v38 = vshrl.u32 %v148_v37, 7  ;;  %vm576_vm1 = vcmask 1043456   ;;  %vm551_vm2 = vcmask 64512  }
  0x65   :  { %v113_v29 = vpack.c.bf16 %v2571_v26, %v2569_v25  ;;  %v2587_v31 = vld [vmem:[#allocation7 + $0x10] sm:$0xff]   ;;  %v2591_v32 = vld [vmem:[#allocation7 + $0x18] sm:$0xff]   ;;  %v2595_v33 = vld [vmem:[#allocation7 + $0x20] sm:$0xff]  }
  0x66   :  { %1988 = vmatpush3.bf16.msra.mxu1 %v2152_v9  ;;  %296 = vmatpush1.bf16.msra.mxu0 %v2153_v10  ;;  %v2599_v34 = vld [vmem:[#allocation7 + $0x28] sm:$0xff]   ;;  %v2603_v35 = vld [vmem:[#allocation7 + $0x30] sm:$0xff]   ;;  %v2605_v36 = vld [vmem:[#allocation7 + $0x38] sm:$0xff]   ;;  %v158_v39 = vsub.s32 2, %v2610_v38  ;;  %v150_v41 = vsub.s32 0, %v2610_v38  ;;  %v154_v42 = vsub.s32 1, %v2610_v38 }
  0x67   :  { %1989 = vmatprep.subr.bf16.mxu1 %v2422_v0  ;;  %297 = vmatprep.subr.bf16.mxu0 %v2154_v11  ;;  %v146_v40 = vld [vmem:[%s2915_s2] sm:$0x7] }
  0x68   :  { %v159_v43 = vrot.slane %v146_v40, %v158_v39  ;;  %v151_v44 = vrot.slane %v146_v40, %v150_v41  ;;  %v155_v45 = vrot.slane %v146_v40, %v154_v42 }
  0x6a   :  { %1990 = vmatpush3.bf16.msra.mxu1 %v2156_v12  ;;  %298 = vmatpush1.bf16.msra.mxu0 %v2157_v13 }
  0x6b   :  { %1991 = vmatprep.subr.bf16.mxu1 %v2422_v0  ;;  %299 = vmatprep.subr.bf16.mxu0 %v2158_v14 }
  0x6e   :  { %1992 = vmatpush3.bf16.msra.mxu1 %v2160_v15  ;;  %300 = vmatpush1.bf16.msra.mxu0 %v2161_v16 }
  0x6f   :  { %1993 = vmatprep.subr.bf16.mxu1 %v2422_v0  ;;  %301 = vmatprep.subr.bf16.mxu0 %v2162_v17 }
  0x72   :  { %1994 = vmatpush3.bf16.msra.mxu1 %v2164_v18  ;;  %302 = vmatpush1.bf16.msra.mxu0 %v2165_v19 }
  0x73   :  { %1995 = vmatprep.subr.bf16.mxu1 %v2422_v0  ;;  %303 = vmatprep.subr.bf16.mxu0 %v2166_v20 }
  0x76   :  { %1996 = vmatpush3.bf16.msra.mxu1 %v2168_v21  ;;  %304 = vmatpush1.bf16.msra.mxu0 %v2169_v22 }
  0x77   :  { %1997 = vmatprep.subr.bf16.mxu1 %v2422_v0  ;;  %305 = vmatprep.subr.bf16.mxu0 %v2170_v23 }
  0x7a   :  { %1998 = vmatpush3.bf16.msra.mxu1 %v2172_v24  ;;  %306 = vmatpush1.bf16.msra.mxu0 %v2173_v27 }
  0x7b   :  { %2003 = vmatprep.subr.bf16.mxu0 %v2422_v0 }
  0x7d   :  { %2000 = vmatmul.mubr.bf16.vlgmr.msra.gmra.mrb[0].mxu1 %v113_v29  ;;  %324 = vmatmul.mubr.bf16.vlgmr.msra.gmra.mrb[0].mxu0 %v113_v29 }
  0x7e   :  { %2004 = vmatpush3.bf16.msra.mxu0 %v2574_v28  ;;  %2019 = vmatprep.mubr.msk.bf16.mxu0 %vm2423_vm0, %v2422_v0 }
  0x7f   :  { %2005 = vmatprep.subr.bf16.mxu0 %v2422_v0 }
  0x82   :  { %2006 = vmatpush3.bf16.msra.mxu0 %v2583_v30 }
  0x83   :  { %2007 = vmatprep.subr.bf16.mxu0 %v2422_v0 }
  0x86   :  { %2008 = vmatpush3.bf16.msra.mxu0 %v2587_v31 }
  0x87   :  { %2009 = vmatprep.subr.bf16.mxu0 %v2422_v0 }
  0x8a   :  { %2010 = vmatpush3.bf16.msra.mxu0 %v2591_v32 }
  0x8b   :  { %2011 = vmatprep.subr.bf16.mxu0 %v2422_v0 }
  0x8e   :  { %2012 = vmatpush3.bf16.msra.mxu0 %v2595_v33 }
  0x8f   :  { %2013 = vmatprep.subr.bf16.mxu0 %v2422_v0 }
  0x92   :  { %2014 = vmatpush3.bf16.msra.mxu0 %v2599_v34 }
  0x93   :  { %2015 = vmatprep.subr.bf16.mxu0 %v2422_v0 }
  0x96   :  { %2016 = vmatpush3.bf16.msra.mxu0 %v2603_v35 }
  0x97   :  { %2017 = vmatprep.subr.bf16.mxu0 %v2422_v0 }
  0x9a   :  { %2018 = vmatpush3.bf16.msra.mxu0 %v2605_v36 }
 0x150   :  { %v368_v46 = vpop.f32.mrb[0].mxu1  ;;  %v325_v48 = vpop.f32.mrb[0].mxu0 }
 0x151   :  { %v369_v47 = vadd.f32 %v368_v46, %v159_v43  ;;  %v2001_v49 = vpop.f32.mrb[1].mxu1  ;;  %v2624_v50 = vadd.f32 %v325_v48, %v151_v44  ;;  %v327_v52 = vpop.f32.mrb[1].mxu0 }
 0x152   :  { %v371_v51 = vpop.f32.mrb[2].mxu1  ;;  %v328_v56 = vadd.f32 %v327_v52, %v155_v45  ;;  %v329_v57 = vpop.f32.mrb[2].mxu0 }
 0x153   :  { %v497_v53 = vrot.slane %v369_v47, 4  ;;  %v372_v54 = vadd.f32 %v371_v51, %v159_v43  ;;  %v2002_v55 = vpop.f32.mrb[3].mxu1  ;;  %391 = vmax.xlane.f32.xlu0 %v2624_v50  ;;  %v330_v58 = vadd.f32 %v329_v57, %v151_v44  ;;  %v331_v59 = vpop.f32.mrb[3].mxu0 }
 0x154   :  { %v533_v62 = vpack.c.bf16 %v328_v56, %v328_v56  ;;  %v332_v63 = vadd.f32 %v331_v59, %v155_v45 }
 0x155   :  { %v498_v60 = vmax.f32 %v369_v47, %v497_v53  ;;  %v503_v61 = vrot.slane %v372_v54, 4 }
 0x156   :  { %v578_v3 = vsel %vm576_vm1, %v533_v62, 0  ;;  %v534_v4 = vpack.c.bf16 %v332_v63, %v332_v63  ;;  %2099 = vmatprep.subr.msk.bf16.mxu1 %vm576_vm1, %v533_v62 }
 0x157   :  { %v499_v1 = vrot.slane %v498_v60, 2  ;;  %v504_v2 = vmax.f32 %v372_v54, %v503_v61  ;;  %393 = vmax.xlane.f32.xlu0 %v330_v58  ;;  %2024 = vmatpush3.bf16.msra.mxu1 %v578_v3 }
 0x158   :  { %v718_v7 = vsel %vm576_vm1, %v534_v4, 0  ;;  %2100 = vmatprep.subr.msk.bf16.mxu0 %vm576_vm1, %v534_v4  ;;  %2059 = vmatprep.subr.bf16.mxu1 %v2422_v0 }
 0x159   :  { %v500_v5 = vmax.f32 %v498_v60, %v499_v1  ;;  %v505_v6 = vrot.slane %v504_v2, 2 }
 0x15b   :  { %v501_v8 = vrot.slane %v500_v5, 1  ;;  %v506_v9 = vmax.f32 %v504_v2, %v505_v6 }
 0x15d   :  { %v502_v10 = vmax.f32 %v500_v5, %v501_v8  ;;  %v507_v11 = vrot.slane %v506_v9, 1 }
 0x15f   :  { %v509_v12 = vsub.f32 %v369_v47, %v502_v10  ;;  %v508_v14 = vmax.f32 %v506_v9, %v507_v11 }
 0x161   :  { %v511_v13 = vmul.f32 1.442695, %v509_v12  ;;  %v510_v15 = vsub.f32 %v372_v54, %v508_v14  ;;  %v820_v14 = vunpack.c.h.bf16 %v2583_v30 }
 0x163   :  { %2190 = vpow2.f32 %v511_v13  ;;  %v513_v16 = vmul.f32 1.442695, %v510_v15  ;;  %v819_v13 = vunpack.c.l.bf16 %v2583_v30 }
 0x165   :  { %2192 = vpow2.f32 %v513_v16  ;;  %v817_v16 = vunpack.c.l.bf16 %v2574_v28 }
 0x16d   :  { %v2191_v17 = vpop.eup %2190 }
 0x16e   :  { %v515_v18 = vrot.slane %v2191_v17, 4 }
 0x16f   :  { %v2193_v23 = vpop.eup %2192 }
 0x170   :  { %v516_v19 = vadd.f32 %v2191_v17, %v515_v18  ;;  %v521_v27 = vrot.slane %v2193_v23, 4 }
 0x172   :  { %v517_v20 = vrot.slane %v516_v19, 2  ;;  %v522_v29 = vadd.f32 %v2193_v23, %v521_v27 }
 0x174   :  { %v518_v21 = vadd.f32 %v517_v20, %v516_v19  ;;  %v523_v37 = vrot.slane %v522_v29, 2 }
 0x176   :  { %v519_v22 = vrot.slane %v518_v21, 1  ;;  %v524_v45 = vadd.f32 %v523_v37, %v522_v29 }
 0x178   :  { %v520_v24 = vadd.f32 %v519_v22, %v518_v21  ;;  %v525_v46 = vrot.slane %v524_v45, 1 }
 0x17a   :  { %2194 = vrcp.f32 %v520_v24  ;;  %v526_v47 = vadd.f32 %v525_v46, %v524_v45  ;;  %v823_v45 = vunpack.c.l.bf16 %v2591_v32  ;;  %v824_v46 = vunpack.c.h.bf16 %v2591_v32 }
 0x17c   :  { %2196 = vrcp.f32 %v526_v47 }
 0x184   :  { %v2195_v40 = vpop.eup %2194 }
 0x185   :  { %v529_v43 = vmul.f32 %v2195_v40, %v2191_v17  ;;  %v818_v17 = vunpack.c.h.bf16 %v2574_v28 }
 0x186   :  { %v2197_v48 = vpop.eup %2196 }
 0x187   :  { %v531_v44 = vpack.c.bf16 %v529_v43, %v529_v43  ;;  %v530_v49 = vmul.f32 %v2197_v48, %v2193_v23  ;;  %v821_v48 = vunpack.c.l.bf16 %v2587_v31 }
 0x189   :  { %535 = vxpose.xlu1.c.b16.start.end [1/1] (short) %v531_v44, 128  ;;  %v532_v51 = vpack.c.bf16 %v530_v49, %v530_v49  ;;  %v822_v49 = vunpack.c.h.bf16 %v2587_v31 }
 0x1a6   :  { %677 = vxpose.xlu1.c.b16.start.end [1/1] (short) %v532_v51, 128 }
 0x1e0   :  { %v392_v52 = vpop.xlane.xlu0 %391 }
 0x1e1   :  { %v395_v53 = vsub.f32 %v2624_v50, %v392_v52 }
 0x1e3   :  { %v397_v54 = vmul.f32 1.442695, %v395_v53 }
 0x1e4   :  { %v394_v55 = vpop.xlane.xlu0 %393 }
 0x1e5   :  { %v396_v56 = vsub.f32 %v330_v58, %v394_v55  ;;  %2198 = vpow2.f32 %v397_v54 }
 0x1e7   :  { %v399_v57 = vmul.f32 1.442695, %v396_v56 }
 0x1e9   :  { %2200 = vpow2.f32 %v399_v57 }
 0x1ef   :  { %v543_v59 = vpop.trf.xlu1  ;;  %v2634_v60 = vpop.eup %2198 }
 0x1f0   :  { %2025 = vmatprep.mubr.msk.bf16.mxu1 %vm551_vm2, %v543_v59 }
 0x1f3   :  { %v544_v61 = vpop.trf.xlu1  ;;  %v2636_v62 = vpop.eup %2200 }
 0x1f4   :  { %2026 = vmatmul.mubr.msk.bf16.vlgmr.msra.gmra.mrb[4].mxu1 %vm551_vm2, %v544_v61  ;;  %v401_v50 = vpack.c.bf16 %v2636_v62, %v2634_v60 }
 0x1f6   :  { %2020 = vmatmul.mubr.bf16.vlgmr.msra.gmra.mrb[4].mxu0 %v401_v50  ;;  %v827_v50 = vunpack.c.l.bf16 %v2599_v34 }
 0x1f7   :  { %v545_v63 = vpop.trf.xlu1  ;;  %2042 = vmatpush3.bf16.msra.mxu0 %v718_v7 }
 0x1f8   :  { %2029 = vmatprep.mubr.msk.bf16.mxu1 %vm551_vm2, %v545_v63  ;;  %2079 = vmatprep.subr.bf16.mxu0 %v2422_v0  ;;  %v828_v63 = vunpack.c.h.bf16 %v2599_v34 }
 0x1fb   :  { %v546_v58 = vpop.trf.xlu1 }
 0x1fc   :  { %2030 = vmatmul.mubr.msk.bf16.gmra.mrb[8].mxu1 %vm551_vm2, %v546_v58 }
 0x1ff   :  { %v547_v1 = vpop.trf.xlu1 }
 0x200   :  { %2033 = vmatprep.mubr.msk.bf16.mxu1 %vm551_vm2, %v547_v1  ;;  %v825_v1 = vunpack.c.l.bf16 %v2595_v33 }
 0x203   :  { %v548_v2 = vpop.trf.xlu1 }
 0x204   :  { %2034 = vmatmul.mubr.msk.bf16.gmra.mrb[12].mxu1 %vm551_vm2, %v548_v2  ;;  %v826_v2 = vunpack.c.h.bf16 %v2595_v33 }
 0x207   :  { %v549_v3 = vpop.trf.xlu1 }
 0x208   :  { %2037 = vmatprep.mubr.msk.bf16.mxu1 %vm551_vm2, %v549_v3 }
 0x20b   :  { %v550_v4 = vpop.trf.xlu1 }
 0x20c   :  { %2038 = vmatmul.mubr.msk.bf16.gmra.mrb[16].mxu1 %vm551_vm2, %v550_v4 }
 0x20d   :  { %2075 = vmatprep.mubr.msk.bf16.mxu1 %vm2423_vm0, %v2422_v0 }
 0x20f   :  { %v685_v5 = vpop.trf.xlu1 }
 0x210   :  { %2043 = vmatprep.mubr.msk.bf16.mxu0 %vm551_vm2, %v685_v5 }
 0x213   :  { %v686_v6 = vpop.trf.xlu1 }
 0x214   :  { %2044 = vmatmul.mubr.msk.bf16.vlgmr.msra.gmra.mrb[8].mxu0 %vm551_vm2, %v686_v6 }
 0x217   :  { %v687_v7 = vpop.trf.xlu1 }
 0x218   :  { %2047 = vmatprep.mubr.msk.bf16.mxu0 %vm551_vm2, %v687_v7 }
 0x21b   :  { %v688_v8 = vpop.trf.xlu1 }
 0x21c   :  { %2048 = vmatmul.mubr.msk.bf16.gmra.mrb[12].mxu0 %vm551_vm2, %v688_v8 }
 0x21f   :  { %v689_v9 = vpop.trf.xlu1 }
 0x220   :  { %2051 = vmatprep.mubr.msk.bf16.mxu0 %vm551_vm2, %v689_v9 }
 0x223   :  { %v690_v10 = vpop.trf.xlu1 }
 0x224   :  { %2052 = vmatmul.mubr.msk.bf16.gmra.mrb[16].mxu0 %vm551_vm2, %v690_v10 }
 0x227   :  { %v691_v11 = vpop.trf.xlu1 }
 0x228   :  { %2055 = vmatprep.mubr.msk.bf16.mxu0 %vm551_vm2, %v691_v11 }
 0x22b   :  { %v692_v12 = vpop.trf.xlu1 }
 0x22c   :  { %2056 = vmatmul.mubr.msk.bf16.gmra.mrb[20].mxu0 %vm551_vm2, %v692_v12  ;;  %v831_v12 = vunpack.c.l.bf16 %v2605_v36 }
 0x22d   :  { %2095 = vmatprep.mubr.msk.bf16.mxu0 %vm2423_vm0, %v2422_v0 }
 0x2c7   :  { %v2027_v15 = vpop.f32.mrb[4].mxu1 }
 0x2c8   :  { %v614_v18 = vpop.f32.mrb[5].mxu1  ;;  %v835_v20 = vmul.f32 %v2027_v15, %v819_v13  ;;  %v832_v15 = vunpack.c.h.bf16 %v2605_v36 }
 0x2c9   :  { %v2028_v19 = vpop.f32.mrb[6].mxu1  ;;  %v484_v22 = vpop.f32.mrb[4].mxu0  ;;  %v833_v24 = vmul.f32 %v817_v16, %v614_v18 }
 0x2ca   :  { %v836_v21 = vmul.f32 %v2028_v19, %v820_v14  ;;  %v617_v23 = vpop.f32.mrb[7].mxu1  ;;  %v2021_v29 = vpop.f32.mrb[5].mxu0  ;;  %2202 = vrcp.f32 %v484_v22  ;;  %v829_v19 = vunpack.c.l.bf16 %v2603_v35 }
 0x2cb   :  { %v834_v27 = vmul.f32 %v818_v17, %v617_v23  ;;  %v2672_v40 = vpop.f32.mrb[6].mxu0 }
 0x2cc   :  { %v868_v37 = vpack.c.bf16 %v836_v21, %v835_v20  ;;  %v2022_v44 = vpop.f32.mrb[7].mxu0  ;;  %v830_v20 = vunpack.c.h.bf16 %v2603_v35  ;;  %2204 = vrcp.f32 %v2672_v40 }
 0x2cd   :  { %v867_v43 = vpack.c.bf16 %v834_v27, %v833_v24 }
 0x2cf   :  { %v2031_v47 = vpop.f32.mrb[8].mxu1  ;;  %2060 = vmatpush3.bf16.msra.mxu1 %v867_v43 }
 0x2d0   :  { %v630_v51 = vpop.f32.mrb[9].mxu1  ;;  %2061 = vmatprep.subr.bf16.mxu1 %v2422_v0  ;;  %v839_v53 = vmul.f32 %v2031_v47, %v823_v45 }
 0x2d1   :  { %v2032_v52 = vpop.f32.mrb[10].mxu1  ;;  %v837_v56 = vmul.f32 %v821_v48, %v630_v51 }
 0x2d2   :  { %v840_v54 = vmul.f32 %v2032_v52, %v824_v46  ;;  %v633_v55 = vpop.f32.mrb[11].mxu1 }
 0x2d3   :  { %v838_v57 = vmul.f32 %v822_v49, %v633_v55  ;;  %2062 = vmatpush3.bf16.msra.mxu1 %v868_v37 }
 0x2d4   :  { %v870_v59 = vpack.c.bf16 %v840_v54, %v839_v53  ;;  %2063 = vmatprep.subr.bf16.mxu1 %v2422_v0  ;;  %v2203_v22 = vpop.eup %2202 }
 0x2d5   :  { %v869_v61 = vpack.c.bf16 %v838_v57, %v837_v56  ;;  %v493_v44 = vmul.f32 0.17677669, %v2203_v22 }
 0x2d7   :  { %v2035_v58 = vpop.f32.mrb[12].mxu1  ;;  %2064 = vmatpush3.bf16.msra.mxu1 %v869_v61  ;;  %v495_v53 = vmul.f32 %v2634_v60, %v493_v44 }
 0x2d8   :  { %v646_v3 = vpop.f32.mrb[13].mxu1  ;;  %2065 = vmatprep.subr.bf16.mxu1 %v2422_v0  ;;  %v843_v5 = vmul.f32 %v2035_v58, %v827_v50 }
 0x2d9   :  { %v2036_v4 = vpop.f32.mrb[14].mxu1  ;;  %v841_v8 = vmul.f32 %v825_v1, %v646_v3  ;;  %v865_v3 = vpack.c.bf16 %v495_v53, %v495_v53 }
 0x2da   :  { %v844_v6 = vmul.f32 %v2036_v4, %v828_v63  ;;  %v649_v7 = vpop.f32.mrb[15].mxu1 }
 0x2db   :  { %v842_v9 = vmul.f32 %v826_v2, %v649_v7  ;;  %2066 = vmatpush3.bf16.msra.mxu1 %v870_v59 }
 0x2dc   :  { %v872_v10 = vpack.c.bf16 %v844_v6, %v843_v5  ;;  %2067 = vmatprep.subr.bf16.mxu1 %v2422_v0 }
 0x2dd   :  { %v871_v11 = vpack.c.bf16 %v842_v9, %v841_v8 }
 0x2df   :  { %v2039_v18 = vpop.f32.mrb[16].mxu1  ;;  %2068 = vmatpush3.bf16.msra.mxu1 %v871_v11 }
 0x2e0   :  { %v662_v21 = vpop.f32.mrb[17].mxu1  ;;  %2069 = vmatprep.subr.bf16.mxu1 %v2422_v0  ;;  %v847_v24 = vmul.f32 %v2039_v18, %v831_v12 }
 0x2e1   :  { %v2040_v23 = vpop.f32.mrb[18].mxu1  ;;  %v845_v37 = vmul.f32 %v829_v19, %v662_v21 }
 0x2e2   :  { %v848_v27 = vmul.f32 %v2040_v23, %v832_v15  ;;  %v665_v29 = vpop.f32.mrb[19].mxu1 }
 0x2e3   :  { %v846_v43 = vmul.f32 %v830_v20, %v665_v29  ;;  %2070 = vmatpush3.bf16.msra.mxu1 %v872_v10 }
 0x2e4   :  { %v874_v47 = vpack.c.bf16 %v848_v27, %v847_v24  ;;  %2071 = vmatprep.subr.bf16.mxu1 %v2422_v0 }
 0x2e5   :  { %v873_v51 = vpack.c.bf16 %v846_v43, %v845_v37 }
 0x2e7   :  { %v2045_v52 = vpop.f32.mrb[8].mxu0  ;;  %2072 = vmatpush3.bf16.msra.mxu1 %v873_v51 }
 0x2e8   :  { %v754_v54 = vpop.f32.mrb[9].mxu0  ;;  %2073 = vmatprep.subr.bf16.mxu1 %v2422_v0  ;;  %v851_v56 = vmul.f32 %v2045_v52, %v819_v13 }
 0x2e9   :  { %v2046_v55 = vpop.f32.mrb[10].mxu0  ;;  %v849_v61 = vmul.f32 %v817_v16, %v754_v54 }
 0x2ea   :  { %v852_v57 = vmul.f32 %v2046_v55, %v820_v14  ;;  %v757_v59 = vpop.f32.mrb[11].mxu0 }
 0x2eb   :  { %v850_v58 = vmul.f32 %v818_v17, %v757_v59  ;;  %2074 = vmatpush3.bf16.msra.mxu1 %v874_v47 }
 0x2ec   :  { %v876_v60 = vpack.c.bf16 %v852_v57, %v851_v56 }
 0x2ed   :  { %v875_v4 = vpack.c.bf16 %v850_v58, %v849_v61 }
 0x2ee   :  { %2076 = vmatmul.mubr.bf16.vlgmr.msra.gmra.mrb[20].mxu1 %v865_v3 }
 0x2ef   :  { %v2049_v5 = vpop.f32.mrb[12].mxu0  ;;  %2080 = vmatpush3.bf16.msra.mxu0 %v875_v4 }
 0x2f0   :  { %v770_v6 = vpop.f32.mrb[13].mxu0  ;;  %2081 = vmatprep.subr.bf16.mxu0 %v2422_v0  ;;  %v855_v30 = vmul.f32 %v2049_v5, %v823_v45  ;;  %v1813_v5 = vld [vmem:[%s2917_s4] ss:$0 sm:$0xff]  ;;  %s2779_s4 = smov 0  }
 0x2f1   :  { %v2050_v13 = vpop.f32.mrb[14].mxu0  ;;  %v853_v28 = vmul.f32 %v821_v48, %v770_v6 }
 0x2f2   :  { %v856_v14 = vmul.f32 %v2050_v13, %v824_v46  ;;  %v773_v16 = vpop.f32.mrb[15].mxu0 }
 0x2f3   :  { %v854_v17 = vmul.f32 %v822_v49, %v773_v16  ;;  %2082 = vmatpush3.bf16.msra.mxu0 %v876_v60 }
 0x2f4   :  { %v878_v7 = vpack.c.bf16 %v856_v14, %v855_v30  ;;  %2083 = vmatprep.subr.bf16.mxu0 %v2422_v0  ;;  %v1814_v14 = vld [vmem:[%s2918_s5] ss:$0 sm:$0xff] }
 0x2f5   :  { %v877_v8 = vpack.c.bf16 %v854_v17, %v853_v28 }
 0x2f7   :  { %v2053_v9 = vpop.f32.mrb[16].mxu0  ;;  %2084 = vmatpush3.bf16.msra.mxu0 %v877_v8  ;;  %v2775_v8 = vmov 0.0  }
 0x2f8   :  { %v786_v45 = vpop.f32.mrb[17].mxu0  ;;  %2085 = vmatprep.subr.bf16.mxu0 %v2422_v0  ;;  %v859_v46 = vmul.f32 %v2053_v9, %v827_v50  ;;  %v2205_v50 = vpop.eup %2204  ;;  %v2777_v9 = vmov 0.0  }
 0x2f9   :  { %v2054_v32 = vpop.f32.mrb[18].mxu0  ;;  %v857_v49 = vmul.f32 %v825_v1, %v786_v45  ;;  %v494_v23 = vmul.f32 0.17677669, %v2205_v50 }
 0x2fa   :  { %v860_v31 = vmul.f32 %v2054_v32, %v828_v63  ;;  %v789_v48 = vpop.f32.mrb[19].mxu0 }
 0x2fb   :  { %v858_v10 = vmul.f32 %v826_v2, %v789_v48  ;;  %2086 = vmatpush3.bf16.msra.mxu0 %v878_v7  ;;  %v496_v29 = vmul.f32 %v2636_v62, %v494_v23 }
 0x2fc   :  { %v880_v40 = vpack.c.bf16 %v860_v31, %v859_v46  ;;  %2087 = vmatprep.subr.bf16.mxu0 %v2422_v0 }
 0x2fd   :  { %v879_v11 = vpack.c.bf16 %v858_v10, %v857_v49  ;;  %v866_v36 = vpack.c.bf16 %v496_v29, %v496_v29 }
 0x2ff   :  { %v2057_v18 = vpop.f32.mrb[20].mxu0  ;;  %2088 = vmatpush3.bf16.msra.mxu0 %v879_v11 }
 0x300   :  { %v802_v21 = vpop.f32.mrb[21].mxu0  ;;  %2089 = vmatprep.subr.bf16.mxu0 %v2422_v0  ;;  %v863_v63 = vmul.f32 %v2057_v18, %v831_v12 }
 0x301   :  { %v2058_v34 = vpop.f32.mrb[22].mxu0  ;;  %v861_v2 = vmul.f32 %v829_v19, %v802_v21 }
 0x302   :  { %v864_v1 = vmul.f32 %v2058_v34, %v832_v15  ;;  %v805_v33 = vpop.f32.mrb[23].mxu0 }
 0x303   :  { %v862_v22 = vmul.f32 %v830_v20, %v805_v33  ;;  %2090 = vmatpush3.bf16.msra.mxu0 %v880_v40 }
 0x304   :  { %v882_v24 = vpack.c.bf16 %v864_v1, %v863_v63  ;;  %2091 = vmatprep.subr.bf16.mxu0 %v2422_v0 }
 0x305   :  { %v881_v27 = vpack.c.bf16 %v862_v22, %v861_v2 }
 0x307   :  { %2092 = vmatpush3.bf16.msra.mxu0 %v881_v27 }
 0x308   :  { %2093 = vmatprep.subr.bf16.mxu0 %v2422_v0 }
 0x30b   :  { %2094 = vmatpush3.bf16.msra.mxu0 %v882_v24 }
 0x30e   :  { %2096 = vmatmul.mubr.bf16.vlgmr.msra.gmra.mrb[24].mxu0 %v866_v36 }
 0x3c1   :  { %v917_v12 = vpop.f32.mrb[20].mxu1 }
 0x3c2   :  { %v963_v15 = vadd.f32 %v917_v12, %v2569_v25  ;;  %v2077_v19 = vpop.f32.mrb[21].mxu1 }
 0x3c3   :  { %v920_v35 = vpop.f32.mrb[22].mxu1 }
 0x3c4   :  { %967 = vadd.xlane.f32.xlu0 %v963_v15  ;;  %v2078_v20 = vpop.f32.mrb[23].mxu1 }
 0x3e1   :  { %v957_v37 = vpop.f32.mrb[24].mxu0 }
 0x3e2   :  { %v964_v43 = vadd.f32 %v957_v37, %v2571_v26  ;;  %v2097_v44 = vpop.f32.mrb[25].mxu0 }
 0x3e3   :  { %v960_v47 = vpop.f32.mrb[26].mxu0 }
 0x3e4   :  { %969 = vadd.xlane.f32.xlu0 %v964_v43  ;;  %v2098_v51 = vpop.f32.mrb[27].mxu0 }
 0x451   :  { %v968_v62 = vpop.xlane.xlu0 %967 }
 0x452   :  { %v972_v52 = vmul.f32 0.0078125, %v968_v62 }
 0x454   :  { %v974_v0 = vsub.f32 %v963_v15, %v972_v52 }
 0x456   :  { %v976_v53 = vmul.f32 %v974_v0, %v974_v0 }
 0x458   :  { %978 = vadd.xlane.f32.xlu0 %v976_v53 }
 0x471   :  { %v970_v54 = vpop.xlane.xlu0 %969 }
 0x472   :  { %v973_v55 = vmul.f32 0.0078125, %v970_v54 }
 0x474   :  { %v975_v56 = vsub.f32 %v964_v43, %v973_v55 }
 0x476   :  { %v977_v25 = vmul.f32 %v975_v56, %v975_v56 }
 0x478   :  { %980 = vadd.xlane.f32.xlu0 %v977_v25 }
 0x4e5   :  { %v979_v57 = vpop.xlane.xlu0 %978 }
 0x4e6   :  { %v982_v59 = vmul.f32 0.0078125, %v979_v57 }
 0x4e8   :  { %v984_v61 = vadd.f32 1e-05, %v982_v59 }
 0x4ea   :  { %2206 = vrsqrt.f32 %v984_v61 }
 0x4f4   :  { %v2207_v60 = vpop.eup %2206 }
 0x4f5   :  { %v988_v4 = vmul.f32 %v2207_v60, %v974_v0 }
 0x4f7   :  { %v996_v13 = vmul.f32 %v1813_v5, %v988_v4 }
 0x4f9   :  { %v2767_v28 = vadd.f32 %v1814_v14, %v996_v13 }
 0x505   :  { %v981_v58 = vpop.xlane.xlu0 %980 }
 0x506   :  { %v983_v26 = vmul.f32 0.0078125, %v981_v58 }
 0x508   :  { %v985_v3 = vadd.f32 1e-05, %v983_v26 }
 0x50a   :  { %2208 = vrsqrt.f32 %v985_v3 }
 0x514   :  { %v2209_v6 = vpop.eup %2208 }
 0x515   :  { %v989_v30 = vmul.f32 %v2209_v6, %v975_v56 }
 0x517   :  { %v997_v16 = vmul.f32 %v1813_v5, %v989_v30 }
 0x519   :  { %v2769_v17 = vadd.f32 %v1814_v14, %v997_v16 }
 0x51b   :  { %v2773_v7 = vpack.c.bf16 %v2769_v17, %v2767_v28 }
 0x51c LB: > { %v2425_v45 = vmov 0   ;;  %s1815_s5 = sshll.u32 %s2408_s4, 9  ;;  %s1012_s4 = sadd.s32 1, %s2408_s4   ;;  %s2408_s4 = sphi %s2779_s4, %s1012_s4   ;;  %v2404_v9 = vphi %v2777_v9, %v2927_v9   ;;  %v2400_v8 = vphi %v2775_v8, %v2926_v8  }
 0x51d   : > { %1267 = vmatprep.mubr.bf16.mxu0 %v2425_v45  ;;  %1310 = vmatprep.mubr.bf16.mxu1 %v2425_v45  ;;  %s2791_s17 = sshra.s32 %s1815_s5, 7  ;;  %s2805_s19 = sshra.s32 %s1815_s5, 3 }
 0x51e   : > { %s1816_s0 = sshll.u32 %s2791_s17, 2  ;;  %s1849_s21 = sshll.u32 %s2805_s19, 2 }
 0x51f   : > { %s2794_s20 = scalar_lea.vmem [#allocation8], %s1816_s0  ;;  %s2818_s23 = scalar_lea.vmem [#allocation10], %s1849_s21 }
 0x520   : > { %v1020_v32 = vld [vmem:[%s2794_s20] sm:$0xff]  ;;  %v1021_v31 = vld [vmem:[%s2794_s20 + $0x8] sm:$0xff]  ;;  %s1052_s26 = scalar_lea.vmem %s2920_s7, %s2791_s17  ;;  %p1009_p12 = scmp.ge.s32.totalorder %s1012_s4, 4  }
 0x521   : > { %v1022_v46 = vld [vmem:[%s2794_s20 + $0x40] sm:$0xff]  ;;  %v1023_v49 = vld [vmem:[%s2794_s20 + $0x48] sm:$0xff]  ;;  %s2426_s13 = smov (%p1009_p12), [#allocation11]  }
 0x522   : > { %v1818_v48 = vcombine.high %v1020_v32, %v1022_v46  ;;  %v1817_v10 = vcombine.low %v1020_v32, %v1022_v46  ;;  %v1024_v40 = vld [vmem:[%s2794_s20 + $0x80] sm:$0xff]  ;;  %v1820_v18 = vcombine.high %v1021_v31, %v1023_v49  ;;  %v1819_v21 = vcombine.low %v1021_v31, %v1023_v49  ;;  %v1025_v34 = vld [vmem:[%s2794_s20 + $0x88] sm:$0xff]  ;;  %s1735_s3 = sshll.u32 (%p1009_p12), %s2426_s13, 4  ;;  %s1736_s3 = int_to_ptr.vmem [resolvable:$true] %s1735_s3 }
 0x523   : > { %v1026_v11 = vld [vmem:[%s2794_s20 + $0xc0] sm:$0xff]  ;;  %v1027_v63 = vld [vmem:[%s2794_s20 + $0xc8] sm:$0xff]  ;;  %s2356_s28 = scalar_lea.vmem (%p1009_p12), %s1736_s3, 256  ;;  %p2361_p0 = scmp.lt.s32.totalorder (%p1009_p12), %s1736_s3, %s1736_s3 }
 0x524   : > { %v1822_v50 = vcombine.high %v1024_v40, %v1026_v11  ;;  %v1028_v1 = vld [vmem:[%s2794_s20 + $0x100] sm:$0xff]  ;;  %1235 = vmatprep.subr.bf16.mxu0 %v1818_v48  ;;  %v1824_v33 = vcombine.high %v1025_v34, %v1027_v63  ;;  %v1029_v22 = vld [vmem:[%s2794_s20 + $0x108] sm:$0xff]  ;;  %1278 = vmatprep.subr.bf16.mxu1 %v1820_v18  ;;  %v1821_v24 = vcombine.low %v1024_v40, %v1026_v11  ;;  %p2357_p13 = scmp.ne.s32.totalorder (%p1009_p12), %s1736_s3, %s2356_s28  ;;  %p2362_p1 = scmp.lt.s32.totalorder (%p1009_p12), %s2356_s28, %s2356_s28 }
 0x525   : > { %v1030_v2 = vld [vmem:[%s2794_s20 + $0x140] sm:$0xff]  ;;  %v1031_v23 = vld [vmem:[%s2794_s20 + $0x148] sm:$0xff]  ;;  %1236 = vmatpush1.bf16.msra.mxu0 %v1817_v10  ;;  %1279 = vmatpush1.bf16.msra.mxu1 %v1819_v21  ;;  %v1823_v27 = vcombine.low %v1025_v34, %v1027_v63 }
 0x526   : > { %1237 = vmatprep.subr.bf16.mxu0 %v1822_v50  ;;  %v1826_v29 = vcombine.high %v1028_v1, %v1030_v2  ;;  %1280 = vmatprep.subr.bf16.mxu1 %v1824_v33  ;;  %v1828_v36 = vcombine.high %v1029_v22, %v1031_v23  ;;  %v1032_v12 = vld [vmem:[%s2794_s20 + $0x180] sm:$0xff]  ;;  %v1033_v19 = vld [vmem:[%s2794_s20 + $0x188] sm:$0xff]  ;;  %v1825_v20 = vcombine.low %v1028_v1, %v1030_v2  ;;  %p2363_p2 = por (%p1009_p12), %p2362_p1, %p2361_p0 }
 0x527   : > { %v1034_v15 = vld [vmem:[%s2794_s20 + $0x1c0] sm:$0xff]  ;;  %v1035_v35 = vld [vmem:[%s2794_s20 + $0x1c8] sm:$0xff]  ;;  %v1827_v37 = vcombine.low %v1029_v22, %v1031_v23  ;;  %v2218_v23 = vld [vmem:[%s2818_s23 + $0x50] sm:$0xff]  }
 0x528   : > { %v1830_v43 = vcombine.high %v1032_v12, %v1034_v15  ;;  %v1036_v44 = vld [vmem:[%s2794_s20 + $0x200] sm:$0xff]  ;;  %v1832_v47 = vcombine.high %v1033_v19, %v1035_v35  ;;  %v1037_v62 = vld [vmem:[%s2794_s20 + $0x208] sm:$0xff]  ;;  %v1829_v0 = vcombine.low %v1032_v12, %v1034_v15  ;;  %v1831_v54 = vcombine.low %v1033_v19, %v1035_v35  ;;  %v2223_v12 = vld [vmem:[%s2818_s23 + $0xd8] sm:$0xff]   ;;  %p2364_p3 = pnand (%p1009_p12), %p2363_p2, %p2357_p13 }
 0x529   : > { %1238 = vmatpush1.bf16.msra.mxu0 %v1821_v24  ;;  %1281 = vmatpush1.bf16.msra.mxu1 %v1823_v27  ;;  %v1038_v51 = vld [vmem:[%s2794_s20 + $0x240] sm:$0xff]  ;;  %v1039_v52 = vld [vmem:[%s2794_s20 + $0x248] sm:$0xff]  ;;  %v2219_v24 = vld [vmem:[%s2818_s23 + $0xd0] sm:$0xff]  }
 0x52a   : > { %1239 = vmatprep.subr.bf16.mxu0 %v1826_v29  ;;  %1282 = vmatprep.subr.bf16.mxu1 %v1828_v36  ;;  %v1040_v53 = vld [vmem:[%s2794_s20 + $0x280] sm:$0xff]  ;;  %v1834_v55 = vcombine.high %v1036_v44, %v1038_v51  ;;  %v1836_v25 = vcombine.high %v1037_v62, %v1039_v52  ;;  %v1041_v57 = vld [vmem:[%s2794_s20 + $0x288] sm:$0xff]  ;;  %v1833_v61 = vcombine.low %v1036_v44, %v1038_v51  ;;  %v2220_v27 = vld [vmem:[%s2818_s23 + $0x10] sm:$0xff]  }
 0x52b   : > { %v1042_v56 = vld [vmem:[%s2794_s20 + $0x2c0] sm:$0xff]  ;;  %v1043_v59 = vld [vmem:[%s2794_s20 + $0x2c8] sm:$0xff]  ;;  %v1835_v26 = vcombine.low %v1037_v62, %v1039_v52  ;;  %v2221_v29 = vld [vmem:[%s2818_s23 + $0x90] sm:$0xff]  }
 0x52c   : > { %v1044_v58 = vld [vmem:[%s2794_s20 + $0x300] sm:$0xff]  ;;  %v1838_v3 = vcombine.high %v1040_v53, %v1042_v56  ;;  %v1840_v4 = vcombine.high %v1041_v57, %v1043_v59  ;;  %v1045_v5 = vld [vmem:[%s2794_s20 + $0x308] sm:$0xff]  ;;  %v1837_v13 = vcombine.low %v1040_v53, %v1042_v56  ;;  %v1839_v14 = vcombine.low %v1041_v57, %v1043_v59  ;;  %v2222_v36 = vld [vmem:[%s2818_s23 + $0x58] sm:$0xff]  }
 0x52d   : > { %1240 = vmatpush1.bf16.msra.mxu0 %v1825_v20  ;;  %1283 = vmatpush1.bf16.msra.mxu1 %v1827_v37  ;;  %v1046_v60 = vld [vmem:[%s2794_s20 + $0x340] sm:$0xff]  ;;  %v1047_v6 = vld [vmem:[%s2794_s20 + $0x348] sm:$0xff]  ;;  %v2224_v15 = vld [vmem:[%s2818_s23 + $0x18] sm:$0xff]  }
 0x52e   : > { %1241 = vmatprep.subr.bf16.mxu0 %v1830_v43  ;;  %1284 = vmatprep.subr.bf16.mxu1 %v1832_v47  ;;  %v1048_v30 = vld [vmem:[%s2794_s20 + $0x380] sm:$0xff]  ;;  %v1842_v16 = vcombine.high %v1044_v58, %v1046_v60  ;;  %v1844_v32 = vcombine.high %v1045_v5, %v1047_v6  ;;  %v1049_v46 = vld [vmem:[%s2794_s20 + $0x388] sm:$0xff]  ;;  %v1841_v48 = vcombine.low %v1044_v58, %v1046_v60  ;;  %v2225_v19 = vld [vmem:[%s2818_s23 + $0x98] sm:$0xff]  }
 0x52f   : > { %v1050_v45 = vld [vmem:[%s2794_s20 + $0x3c0] sm:$0xff]  ;;  %v1051_v31 = vld [vmem:[%s2794_s20 + $0x3c8] sm:$0xff]  ;;  %v1843_v49 = vcombine.low %v1045_v5, %v1047_v6  ;;  %v2234_v52 = vld [vmem:[%s2818_s23 + $0x70] sm:$0xff]  }
 0x530   : > { %v1846_v10 = vcombine.high %v1048_v30, %v1050_v45  ;;  %v1848_v40 = vcombine.high %v1049_v46, %v1051_v31  ;;  %v1845_v11 = vcombine.low %v1048_v30, %v1050_v45  ;;  %v2210_v18 = vld [vmem:[%s2818_s23 + $0x40] sm:$0xff]   ;;  %v1847_v21 = vcombine.low %v1049_v46, %v1051_v31  ;;  %v2214_v1 = vld [vmem:[%s2818_s23 + $0x48] sm:$0xff]   ;;  %v2236_v53 = vld [vmem:[%s2818_s23 + $0x30] sm:$0xff]  }
 0x531   : > { %1242 = vmatpush1.bf16.msra.mxu0 %v1829_v0  ;;  %1285 = vmatpush1.bf16.msra.mxu1 %v1831_v54  ;;  %v2211_v50 = vld [vmem:[%s2818_s23 + $0xc0] sm:$0xff]   ;;  %v2215_v33 = vld [vmem:[%s2818_s23 + $0xc8] sm:$0xff]   ;;  %v2235_v0 = vld [vmem:[%s2818_s23 + $0xf0] sm:$0xff]  }
 0x532   : > { %1243 = vmatprep.subr.bf16.mxu0 %v1834_v55  ;;  %1286 = vmatprep.subr.bf16.mxu1 %v1836_v25  ;;  %v2212_v34 = vld [vmem:[%s2818_s23] sm:$0xff]   ;;  %v2216_v2 = vld [vmem:[%s2818_s23 + $0x8] sm:$0xff]   ;;  %v2237_v54 = vld [vmem:[%s2818_s23 + $0xb0] sm:$0xff]  }
 0x533   : > { %v2213_v63 = vld [vmem:[%s2818_s23 + $0x80] sm:$0xff]   ;;  %v2217_v22 = vld [vmem:[%s2818_s23 + $0x88] sm:$0xff]   ;;  %v2238_v55 = vld [vmem:[%s2818_s23 + $0x78] sm:$0xff]  }
 0x534   : > { %v2226_v35 = vld [vmem:[%s2818_s23 + $0x60] sm:$0xff]   ;;  %v2230_v44 = vld [vmem:[%s2818_s23 + $0x68] sm:$0xff]   ;;  %v2239_v56 = vld [vmem:[%s2818_s23 + $0xf8] sm:$0xff]  }
 0x535   : > { %1244 = vmatpush1.bf16.msra.mxu0 %v1833_v61  ;;  %1287 = vmatpush1.bf16.msra.mxu1 %v1835_v26  ;;  %v2227_v20 = vld [vmem:[%s2818_s23 + $0xe0] sm:$0xff]   ;;  %v2231_v47 = vld [vmem:[%s2818_s23 + $0xe8] sm:$0xff]   ;;  %v2240_v25 = vld [vmem:[%s2818_s23 + $0x38] sm:$0xff]   ;;  %v1069_v61 = vsub.s32 3, %v2610_v38 }
 0x536   : > { %1245 = vmatprep.subr.bf16.mxu0 %v1838_v3  ;;  %1288 = vmatprep.subr.bf16.mxu1 %v1840_v4  ;;  %v2228_v37 = vld [vmem:[%s2818_s23 + $0x20] sm:$0xff]   ;;  %v2232_v51 = vld [vmem:[%s2818_s23 + $0x28] sm:$0xff]   ;;  %v2241_v57 = vld [vmem:[%s2818_s23 + $0xb8] sm:$0xff]  }
 0x537   : > { %v2229_v43 = vld [vmem:[%s2818_s23 + $0xa0] sm:$0xff]   ;;  %v2233_v62 = vld [vmem:[%s2818_s23 + $0xa8] sm:$0xff]  }
 0x538   : > { %v1053_v59 = vld [vmem:[%s1052_s26] sm:$0xf] }
 0x539   : > { %1246 = vmatpush1.bf16.msra.mxu0 %v1837_v13  ;;  %1289 = vmatpush1.bf16.msra.mxu1 %v1839_v14  ;;  %v1058_v58 = vrot.slane %v1053_v59, %v150_v41  ;;  %v1066_v26 = vrot.slane %v1053_v59, %v158_v39  ;;  %v1062_v3 = vrot.slane %v1053_v59, %v154_v42 }
 0x53a   : > { %1247 = vmatprep.subr.bf16.mxu0 %v1842_v16  ;;  %1290 = vmatprep.subr.bf16.mxu1 %v1844_v32  ;;  %v1070_v60 = vrot.slane %v1053_v59, %v1069_v61 }
 0x53d   : > { %1248 = vmatpush1.bf16.msra.mxu0 %v1841_v48  ;;  %1291 = vmatpush1.bf16.msra.mxu1 %v1843_v49 }
 0x53e   : > { %1249 = vmatprep.subr.bf16.mxu0 %v1846_v10  ;;  %1292 = vmatprep.subr.bf16.mxu1 %v1848_v40 }
 0x541   : > { %1250 = vmatpush1.bf16.msra.mxu0 %v1845_v11  ;;  %1293 = vmatpush1.bf16.msra.mxu1 %v1847_v21 }
 0x542   : > { %1939 = vmatprep.subr.bf16.mxu0 %v2210_v18  ;;  %1961 = vmatprep.subr.bf16.mxu1 %v2211_v50 }
 0x544   : > { %1268 = vmatmul.mubr.bf16.vlgmr.msra.gmra.mrb[0].mxu0 %v2773_v7  ;;  %1311 = vmatmul.mubr.bf16.vlgmr.msra.gmra.mrb[0].mxu1 %v2773_v7 }
 0x545   : > { %1940 = vmatpush3.bf16.msra.mxu0 %v2212_v34  ;;  %1962 = vmatpush3.bf16.msra.mxu1 %v2213_v63 }
 0x546   : > { %1941 = vmatprep.subr.bf16.mxu0 %v2214_v1  ;;  %1963 = vmatprep.subr.bf16.mxu1 %v2215_v33 }
 0x549   : > { %1942 = vmatpush3.bf16.msra.mxu0 %v2216_v2  ;;  %1964 = vmatpush3.bf16.msra.mxu1 %v2217_v22 }
 0x54a   : > { %1943 = vmatprep.subr.bf16.mxu0 %v2218_v23  ;;  %1965 = vmatprep.subr.bf16.mxu1 %v2219_v24 }
 0x54d   : > { %1944 = vmatpush3.bf16.msra.mxu0 %v2220_v27  ;;  %1966 = vmatpush3.bf16.msra.mxu1 %v2221_v29 }
 0x54e   : > { %1945 = vmatprep.subr.bf16.mxu0 %v2222_v36  ;;  %1967 = vmatprep.subr.bf16.mxu1 %v2223_v12 }
 0x551   : > { %1946 = vmatpush3.bf16.msra.mxu0 %v2224_v15  ;;  %1968 = vmatpush3.bf16.msra.mxu1 %v2225_v19 }
 0x552   : > { %1947 = vmatprep.subr.bf16.mxu0 %v2226_v35  ;;  %1969 = vmatprep.subr.bf16.mxu1 %v2227_v20 }
 0x555   : > { %1948 = vmatpush3.bf16.msra.mxu0 %v2228_v37  ;;  %1970 = vmatpush3.bf16.msra.mxu1 %v2229_v43 }
 0x556   : > { %1949 = vmatprep.subr.bf16.mxu0 %v2230_v44  ;;  %1971 = vmatprep.subr.bf16.mxu1 %v2231_v47 }
 0x559   : > { %1950 = vmatpush3.bf16.msra.mxu0 %v2232_v51  ;;  %1972 = vmatpush3.bf16.msra.mxu1 %v2233_v62 }
 0x55a   : > { %1951 = vmatprep.subr.bf16.mxu0 %v2234_v52  ;;  %1973 = vmatprep.subr.bf16.mxu1 %v2235_v0 }
 0x55d   : > { %1952 = vmatpush3.bf16.msra.mxu0 %v2236_v53  ;;  %1974 = vmatpush3.bf16.msra.mxu1 %v2237_v54  ;;  %v1882_v54 = vld [vmem:[%s2922_s9] ss:$0 sm:$0xff] (%p1009_p12) }
 0x55e   : > { %1953 = vmatprep.subr.bf16.mxu0 %v2238_v55  ;;  %1975 = vmatprep.subr.bf16.mxu1 %v2239_v56 }
 0x561   : > { %1954 = vmatpush3.bf16.msra.mxu0 %v2240_v25  ;;  %1976 = vmatpush3.bf16.msra.mxu1 %v2241_v57 }
 0x617   : > { %v1269_v4 = vpop.f32.mrb[0].mxu0  ;;  %v1312_v6 = vpop.f32.mrb[0].mxu1 }
 0x618   : > { %v1270_v5 = vadd.f32 %v1269_v4, %v1058_v58  ;;  %v1271_v13 = vpop.f32.mrb[1].mxu0  ;;  %v1313_v30 = vadd.f32 %v1312_v6, %v1066_v26  ;;  %v1314_v16 = vpop.f32.mrb[1].mxu1  ;;  %v1883_v4 = vld [vmem:[%s2923_s10] ss:$0 sm:$0xff] (%p1009_p12) }
 0x619   : > { %v1272_v14 = vadd.f32 %v1271_v13, %v1062_v3  ;;  %v1273_v45 = vpop.f32.mrb[2].mxu0  ;;  %v1315_v32 = vadd.f32 %v1314_v16, %v1070_v60  ;;  %v1316_v31 = vpop.f32.mrb[2].mxu1  ;;  %v1884_v6 = vld [vmem:[%s2924_s11] ss:$0 sm:$0xff] (%p1009_p12) }
 0x61a   : > { %v1274_v46 = vadd.f32 %v1273_v45, %v1058_v58  ;;  %v1275_v48 = vpop.f32.mrb[3].mxu0  ;;  %v1317_v49 = vadd.f32 %v1316_v31, %v1066_v26  ;;  %v1318_v40 = vpop.f32.mrb[3].mxu1  ;;  %v1321_v11 = vmax.f32 %v1270_v5, 0.0  ;;  %v1323_v50 = vmax.f32 %v1313_v30, 0.0 }
 0x61b   : > { %v1276_v10 = vadd.f32 %v1275_v48, %v1062_v3  ;;  %v1319_v21 = vadd.f32 %v1318_v40, %v1070_v60  ;;  %v1322_v34 = vmax.f32 %v1272_v14, 0.0  ;;  %v1324_v33 = vmax.f32 %v1315_v32, 0.0 }
 0x61c   : > { %v1325_v18 = vmax.f32 %v1274_v46, 0.0  ;;  %v1327_v63 = vmax.f32 %v1317_v49, 0.0 }
 0x61d   : > { %v1326_v1 = vmax.f32 %v1276_v10, 0.0  ;;  %v1328_v22 = vmax.f32 %v1319_v21, 0.0 }
 0x61e   : > { %v1329_v2 = vpack.c.bf16 %v1325_v18, %v1321_v11  ;;  %v1331_v23 = vpack.c.bf16 %v1327_v63, %v1323_v50 }
 0x61f   : > { %v1330_v24 = vpack.c.bf16 %v1326_v1, %v1322_v34  ;;  %v1332_v27 = vpack.c.bf16 %v1328_v22, %v1324_v33 }
 0x621   : > { %1625 = vmatprep.mubr.bf16.mxu0 %v1330_v24  ;;  %1666 = vmatprep.mubr.bf16.mxu1 %v1332_v27 }
 0x622   : > { %1626 = vmatmul.mubr.bf16.vlgmr.msra.gmra.mrb[4].mxu0 %v1329_v2  ;;  %1667 = vmatmul.mubr.bf16.vlgmr.msra.gmra.mrb[4].mxu1 %v1331_v23 }
 0x6f5   : > { %v1955_v29 = vpop.f32.mrb[4].mxu0  ;;  %v1977_v36 = vpop.f32.mrb[4].mxu1 }
 0x6f6   : > { %v1956_v12 = vpop.f32.mrb[5].mxu0  ;;  %v1978_v19 = vpop.f32.mrb[5].mxu1 }
 0x6f7   : > { %v1957_v15 = vadd.f32 %v1956_v12, %v1955_v29  ;;  %v1958_v35 = vpop.f32.mrb[6].mxu0  ;;  %v1979_v20 = vadd.f32 %v1978_v19, %v1977_v36  ;;  %v1980_v37 = vpop.f32.mrb[6].mxu1 }
 0x6f8   : > { %v1959_v43 = vpop.f32.mrb[7].mxu0  ;;  %v1981_v47 = vpop.f32.mrb[7].mxu1 }
 0x6f9   : > { %v1960_v44 = vadd.f32 %v1959_v43, %v1958_v35  ;;  %v1669_v51 = vadd.f32 %v1979_v20, %v1957_v15  ;;  %v1982_v62 = vadd.f32 %v1981_v47, %v1980_v37  ;;  %1011 = sbr.rel (!%p1009_p12) target bundleno = 1308 (0x51c), region = 98 }
 0x6fb   : > { %v1675_v52 = vadd.f32 %v2404_v9, %v1669_v51   ;;  %v1672_v0 = vadd.f32 %v1982_v62, %v1960_v44 }
 0x6fd   : > { %v1676_v53 = vadd.f32 %v2400_v8, %v1672_v0   ;;  %v2927_v9 = vmov %v1675_v52  ;;  %v1684_v55 = vadd.f32 (%p1009_p12), %v1882_v54, %v1675_v52 }
 0x6ff   : > { %v2926_v8 = vmov %v1676_v53  ;;  %v1685_v56 = vadd.f32 (%p1009_p12), %v1882_v54, %v1676_v53  ;;  %v1686_v9 = vadd.f32 (%p1009_p12), %v1684_v55, %v2767_v28 }
 0x701   :  { %1690 = vadd.xlane.f32.xlu0 %v1686_v9  ;;  %v1687_v25 = vadd.f32 %v1685_v56, %v2769_v17 }
 0x705   :  { %1692 = vadd.xlane.f32.xlu0 %v1687_v25 }
 0x78e   :  { %v1691_v57 = vpop.xlane.xlu0 %1690 }
 0x78f   :  { %v1694_v59 = vmul.f32 0.0078125, %v1691_v57 }
 0x791   :  { %v1696_v61 = vsub.f32 %v1686_v9, %v1694_v59 }
 0x792   :  { %v1693_v58 = vpop.xlane.xlu0 %1692 }
 0x793   :  { %v1695_v26 = vmul.f32 0.0078125, %v1693_v58  ;;  %v1698_v3 = vmul.f32 %v1696_v61, %v1696_v61 }
 0x795   :  { %v1697_v60 = vsub.f32 %v1687_v25, %v1695_v26  ;;  %1700 = vadd.xlane.f32.xlu1 %v1698_v3 }
 0x797   :  { %v1699_v38 = vmul.f32 %v1697_v60, %v1697_v60 }
 0x799   :  { %1702 = vadd.xlane.f32.xlu1 %v1699_v38 }
 0x822   :  { %v1701_v39 = vpop.xlane.xlu1 %1700 }
 0x823   :  { %v1704_v41 = vmul.f32 0.0078125, %v1701_v39 }
 0x825   :  { %v1706_v42 = vadd.f32 1e-05, %v1704_v41 }
 0x826   :  { %v1703_v7 = vpop.xlane.xlu1 %1702 }
 0x827   :  { %2242 = vrsqrt.f32 %v1706_v42  ;;  %v1705_v28 = vmul.f32 0.0078125, %v1703_v7 }
 0x829   :  { %v1707_v8 = vadd.f32 1e-05, %v1705_v28 }
 0x82b   :  { %2244 = vrsqrt.f32 %v1707_v8 }
 0x831   :  { %v2243_v17 = vpop.eup %2242 }
 0x832   :  { %v1710_v5 = vmul.f32 %v2243_v17, %v1696_v61 }
 0x834   :  { %v1718_v13 = vmul.f32 %v1883_v4, %v1710_v5 }
 0x835   :  { %v2245_v30 = vpop.eup %2244 }
 0x836   :  { %v1711_v14 = vmul.f32 %v2245_v30, %v1697_v60  ;;  %v1726_v16 = vadd.f32 %v1884_v6, %v1718_v13 }
 0x838   :  { %v1719_v45 = vmul.f32 %v1883_v4, %v1711_v14  ;;  %1728 = vst [vmem:[#allocation11] sm:$0xff] %v1726_v16 }
 0x83a   :  { %v1727_v32 = vadd.f32 %v1884_v6, %v1719_v45 }
 0x83c   :  { %1729 = vst [vmem:[#allocation11 + $0x8] sm:$0xff] %v1727_v32 }
 0x83d   :  { %2367 = shalt.err (!%p2364_p3)
}
 0x83e   :  { %s2368_s8 = scalar_lea.hbm %s2925_s12, 256 }
 0x83f   :  { %p2369_p4 = scmp.ne.s32.totalorder %s2925_s12, %s2368_s8  ;;  %p2372_p5 = scmp.lt.u32.totalorder %s2368_s8, %s2925_s12 }
 0x841   :  { %p2374_p6 = pnand %p2372_p5, %p2369_p4 }
 0x843   :  { %2377 = shalt.err (!%p2374_p6)
}
 0x844   :  { %1741 = dma.vmem_to_hbm [thread:$0]  %s1736_s3, 256, %s2925_s12, [#allocation4], %s2417_s6, %s2417_s6, %s2418_s18  }
 0x845   :  { %2396 = dma.done.wait [#allocation4], 256  }
 0x846   :  { %2397 = vsyncadd [#allocation4], 4294967040 }
 0x847   :  { %1745 = vsyncpa [#allocation3], 1 }
 0x848   :  { %1746 = vsyncpa [#allocation6], 1 }
 0x849   :  { %1747 = vsyncpa [#allocation9], 1 }
 0x84a   :  { %1748 = vsyncpa [#allocation4], 1 }

// kernel: tpu_custom_call.1
= control target key start
LH: loop header
LB: loop body
LE: loop exit
PB: predicated region body
PF: predicated region fallthrough
CT: control target
= control target key end

     0   :  { %17 = vsyncpa [#allocation3], 0  ;;  %s2913_s0 = inlined_call_operand.hbm [shape: f32[2,8,128], index: 0, kind: input, shape index: {}]   ;;  %s2914_s1 = inlined_call_operand.hbm [shape: bf16[128,384], index: 1, kind: input, shape index: {}]   ;;  %s2915_s2 = inlined_call_operand.vmem [shape: f32[1,384], index: 2, kind: input, shape index: {}]   ;;  %s2916_s3 = inlined_call_operand.hbm [shape: bf16[128,128], index: 3, kind: input, shape index: {}]   ;;  %s2917_s4 = inlined_call_operand.vmem [shape: f32[1,128], index: 4, kind: input, shape index: {}]   ;;  %s2918_s5 = inlined_call_operand.vmem [shape: f32[1,128], index: 5, kind: input, shape index: {}]   ;;  %s2919_s6 = inlined_call_operand.hbm [shape: bf16[128,2048], index: 6, kind: input, shape index: {}]   ;;  %s2920_s7 = inlined_call_operand.vmem [shape: f32[1,2048], index: 7, kind: input, shape index: {}]   ;;  %s2921_s8 = inlined_call_operand.hbm [shape: bf16[2048,128], index: 8, kind: input, shape index: {}]   ;;  %s2922_s9 = inlined_call_operand.vmem [shape: f32[1,128], index: 9, kind: input, shape index: {}]   ;;  %s2923_s10 = inlined_call_operand.vmem [shape: f32[1,128], index: 10, kind: input, shape index: {}]   ;;  %s2924_s11 = inlined_call_operand.vmem [shape: f32[1,128], index: 11, kind: input, shape index: {}]   ;;  %s2925_s12 = inlined_call_operand.hbm [shape: f32[2,8,128], index: 12, kind: output, shape index: {}]  }
   0x1   :  { %18 = vsyncpa [#allocation6], 0 }
   0x2   :  { %19 = vsyncpa [#allocation9], 0 }
   0x3   :  { %20 = vsyncpa [#allocation4], 0  ;;  %s2410_s21 = smov [#allocation5]   ;;  %s2246_s25 = scalar_lea.hbm %s2914_s1, 3072 }
   0x4   :  { %s38_s22 = sshll.u32 %s2410_s21, 4  ;;  %p2247_p0 = scmp.ne.s32.totalorder %s2914_s1, %s2246_s25  ;;  %s39_s22 = int_to_ptr.vmem [resolvable:$true] %s38_s22 }
   0x5   :  { %p2250_p1 = scmp.lt.u32.totalorder %s2246_s25, %s2914_s1 }
   0x7   :  { %p2252_p2 = pnand %p2250_p1, %p2247_p0 }
   0x9   :  { %2255 = shalt.err (!%p2252_p2)
}
   0xa   :  { %s2256_s30 = scalar_lea.vmem %s39_s22, 3072  ;;  %p2261_p4 = scmp.lt.s32.totalorder %s39_s22, %s39_s22 }
   0xb   :  { %p2257_p3 = scmp.ne.s32.totalorder %s39_s22, %s2256_s30  ;;  %p2262_p5 = scmp.lt.s32.totalorder %s2256_s30, %s2256_s30 }
   0xd   :  { %p2263_p6 = por %p2262_p5, %p2261_p4 }
   0xf   :  { %p2264_p7 = pnand %p2263_p6, %p2257_p3 }
  0x11   :  { %2267 = shalt.err (!%p2264_p7)
}
  0x12   :  { %s2411_s13 = smov 192   ;;  %s2412_s14 = smov 12  }
  0x13   :  { %44 = dma.hbm_to_vmem [thread:$0]  %s2914_s1, 3072, %s39_s22, [#allocation6], %s2411_s13, %s2411_s13, %s2412_s14  }
  0x14   :  { %s2413_s17 = smov [#allocation8]   ;;  %s2414_s19 = smov [#allocation2]  }
  0x15   :  { %s68_s18 = sshll.u32 %s2413_s17, 4  ;;  %s26_s20 = sshll.u32 %s2414_s19, 4  ;;  %s69_s18 = int_to_ptr.vmem [resolvable:$true] %s68_s18  ;;  %s27_s20 = int_to_ptr.vmem [resolvable:$true] %s26_s20 }
  0x16   :  { %s2268_s24 = scalar_lea.hbm %s2919_s6, 16384 }
  0x17   :  { %p2269_p8 = scmp.ne.s32.totalorder %s2919_s6, %s2268_s24  ;;  %p2272_p9 = scmp.lt.u32.totalorder %s2268_s24, %s2919_s6 }
  0x19   :  { %p2274_p10 = pnand %p2272_p9, %p2269_p8 }
  0x1b   :  { %2277 = shalt.err (!%p2274_p10)
}
  0x1c   :  { %s2278_s1 = scalar_lea.vmem %s69_s18, 16384  ;;  %p2283_p12 = scmp.lt.s32.totalorder %s69_s18, %s69_s18 }
  0x1d   :  { %p2279_p11 = scmp.ne.s32.totalorder %s69_s18, %s2278_s1  ;;  %p2284_p13 = scmp.lt.s32.totalorder %s2278_s1, %s2278_s1 }
  0x1f   :  { %p2285_p0 = por %p2284_p13, %p2283_p12 }
  0x21   :  { %p2286_p1 = pnand %p2285_p0, %p2279_p11 }
  0x23   :  { %2289 = shalt.err (!%p2286_p1)
}
  0x24   :  { %s2415_s22 = smov 1024   ;;  %s2416_s29 = smov 64  }
  0x25   :  { %74 = dma.hbm_to_vmem [thread:$0]  %s2919_s6, 16384, %s69_s18, [#allocation9], %s2415_s22, %s2415_s22, %s2416_s29  }
  0x26   :  { %s2290_s16 = scalar_lea.hbm %s2913_s0, 256 }
  0x27   :  { %p2291_p2 = scmp.ne.s32.totalorder %s2913_s0, %s2290_s16  ;;  %p2294_p3 = scmp.lt.u32.totalorder %s2290_s16, %s2913_s0 }
  0x29   :  { %p2296_p4 = pnand %p2294_p3, %p2291_p2 }
  0x2b   :  { %2299 = shalt.err (!%p2296_p4)
}
  0x2c   :  { %s2300_s24 = scalar_lea.vmem %s27_s20, 256  ;;  %p2305_p6 = scmp.lt.s32.totalorder %s27_s20, %s27_s20 }
  0x2d   :  { %p2301_p5 = scmp.ne.s32.totalorder %s27_s20, %s2300_s24  ;;  %p2306_p7 = scmp.lt.s32.totalorder %s2300_s24, %s2300_s24 }
  0x2f   :  { %p2307_p8 = por %p2306_p7, %p2305_p6 }
  0x31   :  { %p2308_p9 = pnand %p2307_p8, %p2301_p5 }
  0x33   :  { %2311 = shalt.err (!%p2308_p9)
}
  0x34   :  { %s2417_s6 = smov 128   ;;  %s2418_s18 = smov 8  }
  0x35   :  { %32 = dma.hbm_to_vmem [thread:$0]  %s2913_s0, 256, %s27_s20, [#allocation3], %s2417_s6, %s2417_s6, %s2418_s18  }
  0x36   :  { %s2419_s27 = smov [#allocation7]   ;;  %s2312_s30 = scalar_lea.hbm %s2916_s3, 1024 }
  0x37   :  { %s52_s28 = sshll.u32 %s2419_s27, 4  ;;  %p2313_p10 = scmp.ne.s32.totalorder %s2916_s3, %s2312_s30  ;;  %s53_s28 = int_to_ptr.vmem [resolvable:$true] %s52_s28 }
  0x38   :  { %p2316_p11 = scmp.lt.u32.totalorder %s2312_s30, %s2916_s3 }
  0x3a   :  { %p2318_p12 = pnand %p2316_p11, %p2313_p10 }
  0x3c   :  { %2321 = shalt.err (!%p2318_p12)
}
  0x3d   :  { %s2322_s17 = scalar_lea.vmem %s53_s28, 1024  ;;  %p2327_p0 = scmp.lt.s32.totalorder %s53_s28, %s53_s28 }
  0x3e   :  { %p2323_p13 = scmp.ne.s32.totalorder %s53_s28, %s2322_s17  ;;  %p2328_p1 = scmp.lt.s32.totalorder %s2322_s17, %s2322_s17 }
  0x40   :  { %p2329_p2 = por %p2328_p1, %p2327_p0 }
  0x42   :  { %p2330_p3 = pnand %p2329_p2, %p2323_p13 }
  0x44   :  { %2333 = shalt.err (!%p2330_p3)
}
  0x45   :  { %s2420_s0 = smov 4   ;;  %s2421_s21 = smov [#allocation10]  }
  0x46   :  { %58 = dma.hbm_to_vmem [thread:$0]  %s2916_s3, 1024, %s53_s28, [#allocation6], %s2416_s29, %s2416_s29, %s2420_s0  }
  0x47   :  { %s82_s23 = sshll.u32 %s2421_s21, 4  ;;  %s2334_s26 = scalar_lea.hbm %s2921_s8, 16384  ;;  %s83_s23 = int_to_ptr.vmem [resolvable:$true] %s82_s23 }
  0x48   :  { %p2335_p4 = scmp.ne.s32.totalorder %s2921_s8, %s2334_s26  ;;  %p2338_p5 = scmp.lt.u32.totalorder %s2334_s26, %s2921_s8 }
  0x4a   :  { %p2340_p6 = pnand %p2338_p5, %p2335_p4 }
  0x4c   :  { %2343 = shalt.err (!%p2340_p6)
}
  0x4d   :  { %s2344_s13 = scalar_lea.vmem %s83_s23, 16384  ;;  %p2349_p8 = scmp.lt.s32.totalorder %s83_s23, %s83_s23 }
  0x4e   :  { %p2345_p7 = scmp.ne.s32.totalorder %s83_s23, %s2344_s13  ;;  %p2350_p9 = scmp.lt.s32.totalorder %s2344_s13, %s2344_s13 }
  0x50   :  { %p2351_p10 = por %p2350_p9, %p2349_p8 }
  0x52   :  { %p2352_p11 = pnand %p2351_p10, %p2345_p7 }
  0x54   :  { %2355 = shalt.err (!%p2352_p11)
}
  0x55   :  { %88 = dma.hbm_to_vmem [thread:$0]  %s2921_s8, 16384, %s83_s23, [#allocation9], %s2416_s29, %s2416_s29, %s2420_s0  }
  0x56   :  { %2390 = dma.done.wait [#allocation3], 256  }
  0x57   :  { %2391 = vsyncadd [#allocation3], 4294967040 }
  0x58   :  { %2392 = dma.done.wait [#allocation6], 4096  }
  0x59   :  { %2393 = vsyncadd [#allocation6], 4294963200 }
  0x5a   :  { %2394 = dma.done.wait [#allocation9], 32768  }
  0x5b   :  { %2395 = vsyncadd [#allocation9], 4294934528  ;;  %v2422_v0 = vmov 0.0   ;;  %vm2423_vm0 = vmmov 0   ;;  %v2424_v1 = vmov 0   ;;  %v2569_v25 = vld [vmem:[#allocation2] sm:$0xff]  ;;  %v148_v37 = vlaneseq }
  0x5c   :  { %1983 = vmatprep.subr.bf16.mxu1 %v2422_v0  ;;  %1999 = vmatprep.mubr.msk.bf16.mxu1 %vm2423_vm0, %v2422_v0  ;;  %v2142_v2 = vld [vmem:[#allocation5 + $0x4] ss:$12 sps:$4 sm:$0xff]   ;;  %v2144_v3 = vld [vmem:[#allocation5 + $0x8] ss:$12 sps:$4 sm:$0xff]   ;;  %v2145_v4 = vld [vmem:[#allocation5] ss:$12 sps:$4 sm:$0xff]  }
  0x5d   :  { %323 = vmatprep.mubr.bf16.mxu0 %v2424_v1  ;;  %291 = vmatprep.subr.bf16.mxu0 %v2142_v2  ;;  %v2146_v5 = vld [vmem:[#allocation5 + $0x1c] ss:$12 sps:$4 sm:$0xff]   ;;  %v2148_v6 = vld [vmem:[#allocation5 + $0x20] ss:$12 sps:$4 sm:$0xff]   ;;  %v2149_v7 = vld [vmem:[#allocation5 + $0x18] ss:$12 sps:$4 sm:$0xff]  }
  0x5e   :  { %1984 = vmatpush3.bf16.msra.mxu1 %v2144_v3  ;;  %292 = vmatpush1.bf16.msra.mxu0 %v2145_v4  ;;  %v2150_v8 = vld [vmem:[#allocation5 + $0x34] ss:$12 sps:$4 sm:$0xff]   ;;  %v2152_v9 = vld [vmem:[#allocation5 + $0x38] ss:$12 sps:$4 sm:$0xff]   ;;  %v2153_v10 = vld [vmem:[#allocation5 + $0x30] ss:$12 sps:$4 sm:$0xff]  }
  0x5f   :  { %1985 = vmatprep.subr.bf16.mxu1 %v2422_v0  ;;  %293 = vmatprep.subr.bf16.mxu0 %v2146_v5  ;;  %v2154_v11 = vld [vmem:[#allocation5 + $0x4c] ss:$12 sps:$4 sm:$0xff]   ;;  %v2156_v12 = vld [vmem:[#allocation5 + $0x50] ss:$12 sps:$4 sm:$0xff]   ;;  %v2157_v13 = vld [vmem:[#allocation5 + $0x48] ss:$12 sps:$4 sm:$0xff]  }
  0x60   :  { %v2158_v14 = vld [vmem:[#allocation5 + $0x64] ss:$12 sps:$4 sm:$0xff]   ;;  %v2160_v15 = vld [vmem:[#allocation5 + $0x68] ss:$12 sps:$4 sm:$0xff]   ;;  %v2161_v16 = vld [vmem:[#allocation5 + $0x60] ss:$12 sps:$4 sm:$0xff]  }
  0x61   :  { %v2162_v17 = vld [vmem:[#allocation5 + $0x7c] ss:$12 sps:$4 sm:$0xff]   ;;  %v2164_v18 = vld [vmem:[#allocation5 + $0x80] ss:$12 sps:$4 sm:$0xff]   ;;  %v2165_v19 = vld [vmem:[#allocation5 + $0x78] ss:$12 sps:$4 sm:$0xff]  }
  0x62   :  { %1986 = vmatpush3.bf16.msra.mxu1 %v2148_v6  ;;  %294 = vmatpush1.bf16.msra.mxu0 %v2149_v7  ;;  %v2166_v20 = vld [vmem:[#allocation5 + $0x94] ss:$12 sps:$4 sm:$0xff]   ;;  %v2168_v21 = vld [vmem:[#allocation5 + $0x98] ss:$12 sps:$4 sm:$0xff]   ;;  %v2169_v22 = vld [vmem:[#allocation5 + $0x90] ss:$12 sps:$4 sm:$0xff]  }
  0x63   :  { %1987 = vmatprep.subr.bf16.mxu1 %v2422_v0  ;;  %295 = vmatprep.subr.bf16.mxu0 %v2150_v8  ;;  %v2170_v23 = vld [vmem:[#allocation5 + $0xac] ss:$12 sps:$4 sm:$0xff]   ;;  %v2172_v24 = vld [vmem:[#allocation5 + $0xb0] ss:$12 sps:$4 sm:$0xff]   ;;  %v2173_v27 = vld [vmem:[#allocation5 + $0xa8] ss:$12 sps:$4 sm:$0xff]  }
  0x64   :  { %v2571_v26 = vld [vmem:[#allocation2 + $0x8] sm:$0xff]  ;;  %v2574_v28 = vld [vmem:[#allocation7] sm:$0xff]   ;;  %v2583_v30 = vld [vmem:[#allocation7 + $0x8] sm:$0xff]   ;;  %v2610_v38 = vshrl.u32 %v148_v37, 7  ;;  %vm576_vm1 = vcmask 1043456   ;;  %vm551_vm2 = vcmask 64512  }
  0x65   :  { %v113_v29 = vpack.c.bf16 %v2571_v26, %v2569_v25  ;;  %v2587_v31 = vld [vmem:[#allocation7 + $0x10] sm:$0xff]   ;;  %v2591_v32 = vld [vmem:[#allocation7 + $0x18] sm:$0xff]   ;;  %v2595_v33 = vld [vmem:[#allocation7 + $0x20] sm:$0xff]  }
  0x66   :  { %1988 = vmatpush3.bf16.msra.mxu1 %v2152_v9  ;;  %296 = vmatpush1.bf16.msra.mxu0 %v2153_v10  ;;  %v2599_v34 = vld [vmem:[#allocation7 + $0x28] sm:$0xff]   ;;  %v2603_v35 = vld [vmem:[#allocation7 + $0x30] sm:$0xff]   ;;  %v2605_v36 = vld [vmem:[#allocation7 + $0x38] sm:$0xff]   ;;  %v158_v39 = vsub.s32 2, %v2610_v38  ;;  %v150_v41 = vsub.s32 0, %v2610_v38  ;;  %v154_v42 = vsub.s32 1, %v2610_v38 }
  0x67   :  { %1989 = vmatprep.subr.bf16.mxu1 %v2422_v0  ;;  %297 = vmatprep.subr.bf16.mxu0 %v2154_v11  ;;  %v146_v40 = vld [vmem:[%s2915_s2] sm:$0x7] }
  0x68   :  { %v159_v43 = vrot.slane %v146_v40, %v158_v39  ;;  %v151_v44 = vrot.slane %v146_v40, %v150_v41  ;;  %v155_v45 = vrot.slane %v146_v40, %v154_v42 }
  0x6a   :  { %1990 = vmatpush3.bf16.msra.mxu1 %v2156_v12  ;;  %298 = vmatpush1.bf16.msra.mxu0 %v2157_v13 }
  0x6b   :  { %1991 = vmatprep.subr.bf16.mxu1 %v2422_v0  ;;  %299 = vmatprep.subr.bf16.mxu0 %v2158_v14 }
  0x6e   :  { %1992 = vmatpush3.bf16.msra.mxu1 %v2160_v15  ;;  %300 = vmatpush1.bf16.msra.mxu0 %v2161_v16 }
  0x6f   :  { %1993 = vmatprep.subr.bf16.mxu1 %v2422_v0  ;;  %301 = vmatprep.subr.bf16.mxu0 %v2162_v17 }
  0x72   :  { %1994 = vmatpush3.bf16.msra.mxu1 %v2164_v18  ;;  %302 = vmatpush1.bf16.msra.mxu0 %v2165_v19 }
  0x73   :  { %1995 = vmatprep.subr.bf16.mxu1 %v2422_v0  ;;  %303 = vmatprep.subr.bf16.mxu0 %v2166_v20 }
  0x76   :  { %1996 = vmatpush3.bf16.msra.mxu1 %v2168_v21  ;;  %304 = vmatpush1.bf16.msra.mxu0 %v2169_v22 }
  0x77   :  { %1997 = vmatprep.subr.bf16.mxu1 %v2422_v0  ;;  %305 = vmatprep.subr.bf16.mxu0 %v2170_v23 }
  0x7a   :  { %1998 = vmatpush3.bf16.msra.mxu1 %v2172_v24  ;;  %306 = vmatpush1.bf16.msra.mxu0 %v2173_v27 }
  0x7b   :  { %2003 = vmatprep.subr.bf16.mxu0 %v2422_v0 }
  0x7d   :  { %2000 = vmatmul.mubr.bf16.vlgmr.msra.gmra.mrb[0].mxu1 %v113_v29  ;;  %324 = vmatmul.mubr.bf16.vlgmr.msra.gmra.mrb[0].mxu0 %v113_v29 }
  0x7e   :  { %2004 = vmatpush3.bf16.msra.mxu0 %v2574_v28  ;;  %2019 = vmatprep.mubr.msk.bf16.mxu0 %vm2423_vm0, %v2422_v0 }
  0x7f   :  { %2005 = vmatprep.subr.bf16.mxu0 %v2422_v0 }
  0x82   :  { %2006 = vmatpush3.bf16.msra.mxu0 %v2583_v30 }
  0x83   :  { %2007 = vmatprep.subr.bf16.mxu0 %v2422_v0 }
  0x86   :  { %2008 = vmatpush3.bf16.msra.mxu0 %v2587_v31 }
  0x87   :  { %2009 = vmatprep.subr.bf16.mxu0 %v2422_v0 }
  0x8a   :  { %2010 = vmatpush3.bf16.msra.mxu0 %v2591_v32 }
  0x8b   :  { %2011 = vmatprep.subr.bf16.mxu0 %v2422_v0 }
  0x8e   :  { %2012 = vmatpush3.bf16.msra.mxu0 %v2595_v33 }
  0x8f   :  { %2013 = vmatprep.subr.bf16.mxu0 %v2422_v0 }
  0x92   :  { %2014 = vmatpush3.bf16.msra.mxu0 %v2599_v34 }
  0x93   :  { %2015 = vmatprep.subr.bf16.mxu0 %v2422_v0 }
  0x96   :  { %2016 = vmatpush3.bf16.msra.mxu0 %v2603_v35 }
  0x97   :  { %2017 = vmatprep.subr.bf16.mxu0 %v2422_v0 }
  0x9a   :  { %2018 = vmatpush3.bf16.msra.mxu0 %v2605_v36 }
 0x150   :  { %v368_v46 = vpop.f32.mrb[0].mxu1  ;;  %v325_v48 = vpop.f32.mrb[0].mxu0 }
 0x151   :  { %v369_v47 = vadd.f32 %v368_v46, %v159_v43  ;;  %v2001_v49 = vpop.f32.mrb[1].mxu1  ;;  %v2624_v50 = vadd.f32 %v325_v48, %v151_v44  ;;  %v327_v52 = vpop.f32.mrb[1].mxu0 }
 0x152   :  { %v371_v51 = vpop.f32.mrb[2].mxu1  ;;  %v328_v56 = vadd.f32 %v327_v52, %v155_v45  ;;  %v329_v57 = vpop.f32.mrb[2].mxu0 }
 0x153   :  { %v497_v53 = vrot.slane %v369_v47, 4  ;;  %v372_v54 = vadd.f32 %v371_v51, %v159_v43  ;;  %v2002_v55 = vpop.f32.mrb[3].mxu1  ;;  %391 = vmax.xlane.f32.xlu0 %v2624_v50  ;;  %v330_v58 = vadd.f32 %v329_v57, %v151_v44  ;;  %v331_v59 = vpop.f32.mrb[3].mxu0 }
 0x154   :  { %v533_v62 = vpack.c.bf16 %v328_v56, %v328_v56  ;;  %v332_v63 = vadd.f32 %v331_v59, %v155_v45 }
 0x155   :  { %v498_v60 = vmax.f32 %v369_v47, %v497_v53  ;;  %v503_v61 = vrot.slane %v372_v54, 4 }
 0x156   :  { %v578_v3 = vsel %vm576_vm1, %v533_v62, 0  ;;  %v534_v4 = vpack.c.bf16 %v332_v63, %v332_v63  ;;  %2099 = vmatprep.subr.msk.bf16.mxu1 %vm576_vm1, %v533_v62 }
 0x157   :  { %v499_v1 = vrot.slane %v498_v60, 2  ;;  %v504_v2 = vmax.f32 %v372_v54, %v503_v61  ;;  %393 = vmax.xlane.f32.xlu0 %v330_v58  ;;  %2024 = vmatpush3.bf16.msra.mxu1 %v578_v3 }
 0x158   :  { %v718_v7 = vsel %vm576_vm1, %v534_v4, 0  ;;  %2100 = vmatprep.subr.msk.bf16.mxu0 %vm576_vm1, %v534_v4  ;;  %2059 = vmatprep.subr.bf16.mxu1 %v2422_v0 }
 0x159   :  { %v500_v5 = vmax.f32 %v498_v60, %v499_v1  ;;  %v505_v6 = vrot.slane %v504_v2, 2 }
 0x15b   :  { %v501_v8 = vrot.slane %v500_v5, 1  ;;  %v506_v9 = vmax.f32 %v504_v2, %v505_v6 }
 0x15d   :  { %v502_v10 = vmax.f32 %v500_v5, %v501_v8  ;;  %v507_v11 = vrot.slane %v506_v9, 1 }
 0x15f   :  { %v509_v12 = vsub.f32 %v369_v47, %v502_v10  ;;  %v508_v14 = vmax.f32 %v506_v9, %v507_v11 }
 0x161   :  { %v511_v13 = vmul.f32 1.442695, %v509_v12  ;;  %v510_v15 = vsub.f32 %v372_v54, %v508_v14  ;;  %v820_v14 = vunpack.c.h.bf16 %v2583_v30 }
 0x163   :  { %2190 = vpow2.f32 %v511_v13  ;;  %v513_v16 = vmul.f32 1.442695, %v510_v15  ;;  %v819_v13 = vunpack.c.l.bf16 %v2583_v30 }
 0x165   :  { %2192 = vpow2.f32 %v513_v16  ;;  %v817_v16 = vunpack.c.l.bf16 %v2574_v28 }
 0x16d   :  { %v2191_v17 = vpop.eup %2190 }
 0x16e   :  { %v515_v18 = vrot.slane %v2191_v17, 4 }
 0x16f   :  { %v2193_v23 = vpop.eup %2192 }
 0x170   :  { %v516_v19 = vadd.f32 %v2191_v17, %v515_v18  ;;  %v521_v27 = vrot.slane %v2193_v23, 4 }
 0x172   :  { %v517_v20 = vrot.slane %v516_v19, 2  ;;  %v522_v29 = vadd.f32 %v2193_v23, %v521_v27 }
 0x174   :  { %v518_v21 = vadd.f32 %v517_v20, %v516_v19  ;;  %v523_v37 = vrot.slane %v522_v29, 2 }
 0x176   :  { %v519_v22 = vrot.slane %v518_v21, 1  ;;  %v524_v45 = vadd.f32 %v523_v37, %v522_v29 }
 0x178   :  { %v520_v24 = vadd.f32 %v519_v22, %v518_v21  ;;  %v525_v46 = vrot.slane %v524_v45, 1 }
 0x17a   :  { %2194 = vrcp.f32 %v520_v24  ;;  %v526_v47 = vadd.f32 %v525_v46, %v524_v45  ;;  %v823_v45 = vunpack.c.l.bf16 %v2591_v32  ;;  %v824_v46 = vunpack.c.h.bf16 %v2591_v32 }
 0x17c   :  { %2196 = vrcp.f32 %v526_v47 }
 0x184   :  { %v2195_v40 = vpop.eup %2194 }
 0x185   :  { %v529_v43 = vmul.f32 %v2195_v40, %v2191_v17  ;;  %v818_v17 = vunpack.c.h.bf16 %v2574_v28 }
 0x186   :  { %v2197_v48 = vpop.eup %2196 }
 0x187   :  { %v531_v44 = vpack.c.bf16 %v529_v43, %v529_v43  ;;  %v530_v49 = vmul.f32 %v2197_v48, %v2193_v23  ;;  %v821_v48 = vunpack.c.l.bf16 %v2587_v31 }
 0x189   :  { %535 = vxpose.xlu1.c.b16.start.end [1/1] (short) %v531_v44, 128  ;;  %v532_v51 = vpack.c.bf16 %v530_v49, %v530_v49  ;;  %v822_v49 = vunpack.c.h.bf16 %v2587_v31 }
 0x1a6   :  { %677 = vxpose.xlu1.c.b16.start.end [1/1] (short) %v532_v51, 128 }
 0x1e0   :  { %v392_v52 = vpop.xlane.xlu0 %391 }
 0x1e1   :  { %v395_v53 = vsub.f32 %v2624_v50, %v392_v52 }
 0x1e3   :  { %v397_v54 = vmul.f32 1.442695, %v395_v53 }
 0x1e4   :  { %v394_v55 = vpop.xlane.xlu0 %393 }
 0x1e5   :  { %v396_v56 = vsub.f32 %v330_v58, %v394_v55  ;;  %2198 = vpow2.f32 %v397_v54 }
 0x1e7   :  { %v399_v57 = vmul.f32 1.442695, %v396_v56 }
 0x1e9   :  { %2200 = vpow2.f32 %v399_v57 }
 0x1ef   :  { %v543_v59 = vpop.trf.xlu1  ;;  %v2634_v60 = vpop.eup %2198 }
 0x1f0   :  { %2025 = vmatprep.mubr.msk.bf16.mxu1 %vm551_vm2, %v543_v59 }
 0x1f3   :  { %v544_v61 = vpop.trf.xlu1  ;;  %v2636_v62 = vpop.eup %2200 }
 0x1f4   :  { %2026 = vmatmul.mubr.msk.bf16.vlgmr.msra.gmra.mrb[4].mxu1 %vm551_vm2, %v544_v61  ;;  %v401_v50 = vpack.c.bf16 %v2636_v62, %v2634_v60 }
 0x1f6   :  { %2020 = vmatmul.mubr.bf16.vlgmr.msra.gmra.mrb[4].mxu0 %v401_v50  ;;  %v827_v50 = vunpack.c.l.bf16 %v2599_v34 }
 0x1f7   :  { %v545_v63 = vpop.trf.xlu1  ;;  %2042 = vmatpush3.bf16.msra.mxu0 %v718_v7 }
 0x1f8   :  { %2029 = vmatprep.mubr.msk.bf16.mxu1 %vm551_vm2, %v545_v63  ;;  %2079 = vmatprep.subr.bf16.mxu0 %v2422_v0  ;;  %v828_v63 = vunpack.c.h.bf16 %v2599_v34 }
 0x1fb   :  { %v546_v58 = vpop.trf.xlu1 }
 0x1fc   :  { %2030 = vmatmul.mubr.msk.bf16.gmra.mrb[8].mxu1 %vm551_vm2, %v546_v58 }
 0x1ff   :  { %v547_v1 = vpop.trf.xlu1 }
 0x200   :  { %2033 = vmatprep.mubr.msk.bf16.mxu1 %vm551_vm2, %v547_v1  ;;  %v825_v1 = vunpack.c.l.bf16 %v2595_v33 }
 0x203   :  { %v548_v2 = vpop.trf.xlu1 }
 0x204   :  { %2034 = vmatmul.mubr.msk.bf16.gmra.mrb[12].mxu1 %vm551_vm2, %v548_v2  ;;  %v826_v2 = vunpack.c.h.bf16 %v2595_v33 }
 0x207   :  { %v549_v3 = vpop.trf.xlu1 }
 0x208   :  { %2037 = vmatprep.mubr.msk.bf16.mxu1 %vm551_vm2, %v549_v3 }
 0x20b   :  { %v550_v4 = vpop.trf.xlu1 }
 0x20c   :  { %2038 = vmatmul.mubr.msk.bf16.gmra.mrb[16].mxu1 %vm551_vm2, %v550_v4 }
 0x20d   :  { %2075 = vmatprep.mubr.msk.bf16.mxu1 %vm2423_vm0, %v2422_v0 }
 0x20f   :  { %v685_v5 = vpop.trf.xlu1 }
 0x210   :  { %2043 = vmatprep.mubr.msk.bf16.mxu0 %vm551_vm2, %v685_v5 }
 0x213   :  { %v686_v6 = vpop.trf.xlu1 }
 0x214   :  { %2044 = vmatmul.mubr.msk.bf16.vlgmr.msra.gmra.mrb[8].mxu0 %vm551_vm2, %v686_v6 }
 0x217   :  { %v687_v7 = vpop.trf.xlu1 }
 0x218   :  { %2047 = vmatprep.mubr.msk.bf16.mxu0 %vm551_vm2, %v687_v7 }
 0x21b   :  { %v688_v8 = vpop.trf.xlu1 }
 0x21c   :  { %2048 = vmatmul.mubr.msk.bf16.gmra.mrb[12].mxu0 %vm551_vm2, %v688_v8 }
 0x21f   :  { %v689_v9 = vpop.trf.xlu1 }
 0x220   :  { %2051 = vmatprep.mubr.msk.bf16.mxu0 %vm551_vm2, %v689_v9 }
 0x223   :  { %v690_v10 = vpop.trf.xlu1 }
 0x224   :  { %2052 = vmatmul.mubr.msk.bf16.gmra.mrb[16].mxu0 %vm551_vm2, %v690_v10 }
 0x227   :  { %v691_v11 = vpop.trf.xlu1 }
 0x228   :  { %2055 = vmatprep.mubr.msk.bf16.mxu0 %vm551_vm2, %v691_v11 }
 0x22b   :  { %v692_v12 = vpop.trf.xlu1 }
 0x22c   :  { %2056 = vmatmul.mubr.msk.bf16.gmra.mrb[20].mxu0 %vm551_vm2, %v692_v12  ;;  %v831_v12 = vunpack.c.l.bf16 %v2605_v36 }
 0x22d   :  { %2095 = vmatprep.mubr.msk.bf16.mxu0 %vm2423_vm0, %v2422_v0 }
 0x2c7   :  { %v2027_v15 = vpop.f32.mrb[4].mxu1 }
 0x2c8   :  { %v614_v18 = vpop.f32.mrb[5].mxu1  ;;  %v835_v20 = vmul.f32 %v2027_v15, %v819_v13  ;;  %v832_v15 = vunpack.c.h.bf16 %v2605_v36 }
 0x2c9   :  { %v2028_v19 = vpop.f32.mrb[6].mxu1  ;;  %v484_v22 = vpop.f32.mrb[4].mxu0  ;;  %v833_v24 = vmul.f32 %v817_v16, %v614_v18 }
 0x2ca   :  { %v836_v21 = vmul.f32 %v2028_v19, %v820_v14  ;;  %v617_v23 = vpop.f32.mrb[7].mxu1  ;;  %v2021_v29 = vpop.f32.mrb[5].mxu0  ;;  %2202 = vrcp.f32 %v484_v22  ;;  %v829_v19 = vunpack.c.l.bf16 %v2603_v35 }
 0x2cb   :  { %v834_v27 = vmul.f32 %v818_v17, %v617_v23  ;;  %v2672_v40 = vpop.f32.mrb[6].mxu0 }
 0x2cc   :  { %v868_v37 = vpack.c.bf16 %v836_v21, %v835_v20  ;;  %v2022_v44 = vpop.f32.mrb[7].mxu0  ;;  %v830_v20 = vunpack.c.h.bf16 %v2603_v35  ;;  %2204 = vrcp.f32 %v2672_v40 }
 0x2cd   :  { %v867_v43 = vpack.c.bf16 %v834_v27, %v833_v24 }
 0x2cf   :  { %v2031_v47 = vpop.f32.mrb[8].mxu1  ;;  %2060 = vmatpush3.bf16.msra.mxu1 %v867_v43 }
 0x2d0   :  { %v630_v51 = vpop.f32.mrb[9].mxu1  ;;  %2061 = vmatprep.subr.bf16.mxu1 %v2422_v0  ;;  %v839_v53 = vmul.f32 %v2031_v47, %v823_v45 }
 0x2d1   :  { %v2032_v52 = vpop.f32.mrb[10].mxu1  ;;  %v837_v56 = vmul.f32 %v821_v48, %v630_v51 }
 0x2d2   :  { %v840_v54 = vmul.f32 %v2032_v52, %v824_v46  ;;  %v633_v55 = vpop.f32.mrb[11].mxu1 }
 0x2d3   :  { %v838_v57 = vmul.f32 %v822_v49, %v633_v55  ;;  %2062 = vmatpush3.bf16.msra.mxu1 %v868_v37 }
 0x2d4   :  { %v870_v59 = vpack.c.bf16 %v840_v54, %v839_v53  ;;  %2063 = vmatprep.subr.bf16.mxu1 %v2422_v0  ;;  %v2203_v22 = vpop.eup %2202 }
 0x2d5   :  { %v869_v61 = vpack.c.bf16 %v838_v57, %v837_v56  ;;  %v493_v44 = vmul.f32 0.17677669, %v2203_v22 }
 0x2d7   :  { %v2035_v58 = vpop.f32.mrb[12].mxu1  ;;  %2064 = vmatpush3.bf16.msra.mxu1 %v869_v61  ;;  %v495_v53 = vmul.f32 %v2634_v60, %v493_v44 }
 0x2d8   :  { %v646_v3 = vpop.f32.mrb[13].mxu1  ;;  %2065 = vmatprep.subr.bf16.mxu1 %v2422_v0  ;;  %v843_v5 = vmul.f32 %v2035_v58, %v827_v50 }
 0x2d9   :  { %v2036_v4 = vpop.f32.mrb[14].mxu1  ;;  %v841_v8 = vmul.f32 %v825_v1, %v646_v3  ;;  %v865_v3 = vpack.c.bf16 %v495_v53, %v495_v53 }
 0x2da   :  { %v844_v6 = vmul.f32 %v2036_v4, %v828_v63  ;;  %v649_v7 = vpop.f32.mrb[15].mxu1 }
 0x2db   :  { %v842_v9 = vmul.f32 %v826_v2, %v649_v7  ;;  %2066 = vmatpush3.bf16.msra.mxu1 %v870_v59 }
 0x2dc   :  { %v872_v10 = vpack.c.bf16 %v844_v6, %v843_v5  ;;  %2067 = vmatprep.subr.bf16.mxu1 %v2422_v0 }
 0x2dd   :  { %v871_v11 = vpack.c.bf16 %v842_v9, %v841_v8 }
 0x2df   :  { %v2039_v18 = vpop.f32.mrb[16].mxu1  ;;  %2068 = vmatpush3.bf16.msra.mxu1 %v871_v11 }
 0x2e0   :  { %v662_v21 = vpop.f32.mrb[17].mxu1  ;;  %2069 = vmatprep.subr.bf16.mxu1 %v2422_v0  ;;  %v847_v24 = vmul.f32 %v2039_v18, %v831_v12 }
 0x2e1   :  { %v2040_v23 = vpop.f32.mrb[18].mxu1  ;;  %v845_v37 = vmul.f32 %v829_v19, %v662_v21 }
 0x2e2   :  { %v848_v27 = vmul.f32 %v2040_v23, %v832_v15  ;;  %v665_v29 = vpop.f32.mrb[19].mxu1 }
 0x2e3   :  { %v846_v43 = vmul.f32 %v830_v20, %v665_v29  ;;  %2070 = vmatpush3.bf16.msra.mxu1 %v872_v10 }
 0x2e4   :  { %v874_v47 = vpack.c.bf16 %v848_v27, %v847_v24  ;;  %2071 = vmatprep.subr.bf16.mxu1 %v2422_v0 }
 0x2e5   :  { %v873_v51 = vpack.c.bf16 %v846_v43, %v845_v37 }
 0x2e7   :  { %v2045_v52 = vpop.f32.mrb[8].mxu0  ;;  %2072 = vmatpush3.bf16.msra.mxu1 %v873_v51 }
 0x2e8   :  { %v754_v54 = vpop.f32.mrb[9].mxu0  ;;  %2073 = vmatprep.subr.bf16.mxu1 %v2422_v0  ;;  %v851_v56 = vmul.f32 %v2045_v52, %v819_v13 }
 0x2e9   :  { %v2046_v55 = vpop.f32.mrb[10].mxu0  ;;  %v849_v61 = vmul.f32 %v817_v16, %v754_v54 }
 0x2ea   :  { %v852_v57 = vmul.f32 %v2046_v55, %v820_v14  ;;  %v757_v59 = vpop.f32.mrb[11].mxu0 }
 0x2eb   :  { %v850_v58 = vmul.f32 %v818_v17, %v757_v59  ;;  %2074 = vmatpush3.bf16.msra.mxu1 %v874_v47 }
 0x2ec   :  { %v876_v60 = vpack.c.bf16 %v852_v57, %v851_v56 }
 0x2ed   :  { %v875_v4 = vpack.c.bf16 %v850_v58, %v849_v61 }
 0x2ee   :  { %2076 = vmatmul.mubr.bf16.vlgmr.msra.gmra.mrb[20].mxu1 %v865_v3 }
 0x2ef   :  { %v2049_v5 = vpop.f32.mrb[12].mxu0  ;;  %2080 = vmatpush3.bf16.msra.mxu0 %v875_v4 }
 0x2f0   :  { %v770_v6 = vpop.f32.mrb[13].mxu0  ;;  %2081 = vmatprep.subr.bf16.mxu0 %v2422_v0  ;;  %v855_v30 = vmul.f32 %v2049_v5, %v823_v45  ;;  %v1813_v5 = vld [vmem:[%s2917_s4] ss:$0 sm:$0xff]  ;;  %s2779_s4 = smov 0  }
 0x2f1   :  { %v2050_v13 = vpop.f32.mrb[14].mxu0  ;;  %v853_v28 = vmul.f32 %v821_v48, %v770_v6 }
 0x2f2   :  { %v856_v14 = vmul.f32 %v2050_v13, %v824_v46  ;;  %v773_v16 = vpop.f32.mrb[15].mxu0 }
 0x2f3   :  { %v854_v17 = vmul.f32 %v822_v49, %v773_v16  ;;  %2082 = vmatpush3.bf16.msra.mxu0 %v876_v60 }
 0x2f4   :  { %v878_v7 = vpack.c.bf16 %v856_v14, %v855_v30  ;;  %2083 = vmatprep.subr.bf16.mxu0 %v2422_v0  ;;  %v1814_v14 = vld [vmem:[%s2918_s5] ss:$0 sm:$0xff] }
 0x2f5   :  { %v877_v8 = vpack.c.bf16 %v854_v17, %v853_v28 }
 0x2f7   :  { %v2053_v9 = vpop.f32.mrb[16].mxu0  ;;  %2084 = vmatpush3.bf16.msra.mxu0 %v877_v8  ;;  %v2775_v8 = vmov 0.0  }
 0x2f8   :  { %v786_v45 = vpop.f32.mrb[17].mxu0  ;;  %2085 = vmatprep.subr.bf16.mxu0 %v2422_v0  ;;  %v859_v46 = vmul.f32 %v2053_v9, %v827_v50  ;;  %v2205_v50 = vpop.eup %2204  ;;  %v2777_v9 = vmov 0.0  }
 0x2f9   :  { %v2054_v32 = vpop.f32.mrb[18].mxu0  ;;  %v857_v49 = vmul.f32 %v825_v1, %v786_v45  ;;  %v494_v23 = vmul.f32 0.17677669, %v2205_v50 }
 0x2fa   :  { %v860_v31 = vmul.f32 %v2054_v32, %v828_v63  ;;  %v789_v48 = vpop.f32.mrb[19].mxu0 }
 0x2fb   :  { %v858_v10 = vmul.f32 %v826_v2, %v789_v48  ;;  %2086 = vmatpush3.bf16.msra.mxu0 %v878_v7  ;;  %v496_v29 = vmul.f32 %v2636_v62, %v494_v23 }
 0x2fc   :  { %v880_v40 = vpack.c.bf16 %v860_v31, %v859_v46  ;;  %2087 = vmatprep.subr.bf16.mxu0 %v2422_v0 }
 0x2fd   :  { %v879_v11 = vpack.c.bf16 %v858_v10, %v857_v49  ;;  %v866_v36 = vpack.c.bf16 %v496_v29, %v496_v29 }
 0x2ff   :  { %v2057_v18 = vpop.f32.mrb[20].mxu0  ;;  %2088 = vmatpush3.bf16.msra.mxu0 %v879_v11 }
 0x300   :  { %v802_v21 = vpop.f32.mrb[21].mxu0  ;;  %2089 = vmatprep.subr.bf16.mxu0 %v2422_v0  ;;  %v863_v63 = vmul.f32 %v2057_v18, %v831_v12 }
 0x301   :  { %v2058_v34 = vpop.f32.mrb[22].mxu0  ;;  %v861_v2 = vmul.f32 %v829_v19, %v802_v21 }
 0x302   :  { %v864_v1 = vmul.f32 %v2058_v34, %v832_v15  ;;  %v805_v33 = vpop.f32.mrb[23].mxu0 }
 0x303   :  { %v862_v22 = vmul.f32 %v830_v20, %v805_v33  ;;  %2090 = vmatpush3.bf16.msra.mxu0 %v880_v40 }
 0x304   :  { %v882_v24 = vpack.c.bf16 %v864_v1, %v863_v63  ;;  %2091 = vmatprep.subr.bf16.mxu0 %v2422_v0 }
 0x305   :  { %v881_v27 = vpack.c.bf16 %v862_v22, %v861_v2 }
 0x307   :  { %2092 = vmatpush3.bf16.msra.mxu0 %v881_v27 }
 0x308   :  { %2093 = vmatprep.subr.bf16.mxu0 %v2422_v0 }
 0x30b   :  { %2094 = vmatpush3.bf16.msra.mxu0 %v882_v24 }
 0x30e   :  { %2096 = vmatmul.mubr.bf16.vlgmr.msra.gmra.mrb[24].mxu0 %v866_v36 }
 0x3c1   :  { %v917_v12 = vpop.f32.mrb[20].mxu1 }
 0x3c2   :  { %v963_v15 = vadd.f32 %v917_v12, %v2569_v25  ;;  %v2077_v19 = vpop.f32.mrb[21].mxu1 }
 0x3c3   :  { %v920_v35 = vpop.f32.mrb[22].mxu1 }
 0x3c4   :  { %967 = vadd.xlane.f32.xlu0 %v963_v15  ;;  %v2078_v20 = vpop.f32.mrb[23].mxu1 }
 0x3e1   :  { %v957_v37 = vpop.f32.mrb[24].mxu0 }
 0x3e2   :  { %v964_v43 = vadd.f32 %v957_v37, %v2571_v26  ;;  %v2097_v44 = vpop.f32.mrb[25].mxu0 }
 0x3e3   :  { %v960_v47 = vpop.f32.mrb[26].mxu0 }
 0x3e4   :  { %969 = vadd.xlane.f32.xlu0 %v964_v43  ;;  %v2098_v51 = vpop.f32.mrb[27].mxu0 }
 0x451   :  { %v968_v62 = vpop.xlane.xlu0 %967 }
 0x452   :  { %v972_v52 = vmul.f32 0.0078125, %v968_v62 }
 0x454   :  { %v974_v0 = vsub.f32 %v963_v15, %v972_v52 }
 0x456   :  { %v976_v53 = vmul.f32 %v974_v0, %v974_v0 }
 0x458   :  { %978 = vadd.xlane.f32.xlu0 %v976_v53 }
 0x471   :  { %v970_v54 = vpop.xlane.xlu0 %969 }
 0x472   :  { %v973_v55 = vmul.f32 0.0078125, %v970_v54 }
 0x474   :  { %v975_v56 = vsub.f32 %v964_v43, %v973_v55 }
 0x476   :  { %v977_v25 = vmul.f32 %v975_v56, %v975_v56 }
 0x478   :  { %980 = vadd.xlane.f32.xlu0 %v977_v25 }
 0x4e5   :  { %v979_v57 = vpop.xlane.xlu0 %978 }
 0x4e6   :  { %v982_v59 = vmul.f32 0.0078125, %v979_v57 }
 0x4e8   :  { %v984_v61 = vadd.f32 1e-05, %v982_v59 }
 0x4ea   :  { %2206 = vrsqrt.f32 %v984_v61 }
 0x4f4   :  { %v2207_v60 = vpop.eup %2206 }
 0x4f5   :  { %v988_v4 = vmul.f32 %v2207_v60, %v974_v0 }
 0x4f7   :  { %v996_v13 = vmul.f32 %v1813_v5, %v988_v4 }
 0x4f9   :  { %v2767_v28 = vadd.f32 %v1814_v14, %v996_v13 }
 0x505   :  { %v981_v58 = vpop.xlane.xlu0 %980 }
 0x506   :  { %v983_v26 = vmul.f32 0.0078125, %v981_v58 }
 0x508   :  { %v985_v3 = vadd.f32 1e-05, %v983_v26 }
 0x50a   :  { %2208 = vrsqrt.f32 %v985_v3 }
 0x514   :  { %v2209_v6 = vpop.eup %2208 }
 0x515   :  { %v989_v30 = vmul.f32 %v2209_v6, %v975_v56 }
 0x517   :  { %v997_v16 = vmul.f32 %v1813_v5, %v989_v30 }
 0x519   :  { %v2769_v17 = vadd.f32 %v1814_v14, %v997_v16 }
 0x51b   :  { %v2773_v7 = vpack.c.bf16 %v2769_v17, %v2767_v28 }
 0x51c LB: > { %v2425_v45 = vmov 0   ;;  %s1815_s5 = sshll.u32 %s2408_s4, 9  ;;  %s1012_s4 = sadd.s32 1, %s2408_s4   ;;  %s2408_s4 = sphi %s2779_s4, %s1012_s4   ;;  %v2404_v9 = vphi %v2777_v9, %v2927_v9   ;;  %v2400_v8 = vphi %v2775_v8, %v2926_v8  }
 0x51d   : > { %1267 = vmatprep.mubr.bf16.mxu0 %v2425_v45  ;;  %1310 = vmatprep.mubr.bf16.mxu1 %v2425_v45  ;;  %s2791_s17 = sshra.s32 %s1815_s5, 7  ;;  %s2805_s19 = sshra.s32 %s1815_s5, 3 }
 0x51e   : > { %s1816_s0 = sshll.u32 %s2791_s17, 2  ;;  %s1849_s21 = sshll.u32 %s2805_s19, 2 }
 0x51f   : > { %s2794_s20 = scalar_lea.vmem [#allocation8], %s1816_s0  ;;  %s2818_s23 = scalar_lea.vmem [#allocation10], %s1849_s21 }
 0x520   : > { %v1020_v32 = vld [vmem:[%s2794_s20] sm:$0xff]  ;;  %v1021_v31 = vld [vmem:[%s2794_s20 + $0x8] sm:$0xff]  ;;  %s1052_s26 = scalar_lea.vmem %s2920_s7, %s2791_s17  ;;  %p1009_p12 = scmp.ge.s32.totalorder %s1012_s4, 4  }
 0x521   : > { %v1022_v46 = vld [vmem:[%s2794_s20 + $0x40] sm:$0xff]  ;;  %v1023_v49 = vld [vmem:[%s2794_s20 + $0x48] sm:$0xff]  ;;  %s2426_s13 = smov (%p1009_p12), [#allocation11]  }
 0x522   : > { %v1818_v48 = vcombine.high %v1020_v32, %v1022_v46  ;;  %v1817_v10 = vcombine.low %v1020_v32, %v1022_v46  ;;  %v1024_v40 = vld [vmem:[%s2794_s20 + $0x80] sm:$0xff]  ;;  %v1820_v18 = vcombine.high %v1021_v31, %v1023_v49  ;;  %v1819_v21 = vcombine.low %v1021_v31, %v1023_v49  ;;  %v1025_v34 = vld [vmem:[%s2794_s20 + $0x88] sm:$0xff]  ;;  %s1735_s3 = sshll.u32 (%p1009_p12), %s2426_s13, 4  ;;  %s1736_s3 = int_to_ptr.vmem [resolvable:$true] %s1735_s3 }
 0x523   : > { %v1026_v11 = vld [vmem:[%s2794_s20 + $0xc0] sm:$0xff]  ;;  %v1027_v63 = vld [vmem:[%s2794_s20 + $0xc8] sm:$0xff]  ;;  %s2356_s28 = scalar_lea.vmem (%p1009_p12), %s1736_s3, 256  ;;  %p2361_p0 = scmp.lt.s32.totalorder (%p1009_p12), %s1736_s3, %s1736_s3 }
 0x524   : > { %v1822_v50 = vcombine.high %v1024_v40, %v1026_v11  ;;  %v1028_v1 = vld [vmem:[%s2794_s20 + $0x100] sm:$0xff]  ;;  %1235 = vmatprep.subr.bf16.mxu0 %v1818_v48  ;;  %v1824_v33 = vcombine.high %v1025_v34, %v1027_v63  ;;  %v1029_v22 = vld [vmem:[%s2794_s20 + $0x108] sm:$0xff]  ;;  %1278 = vmatprep.subr.bf16.mxu1 %v1820_v18  ;;  %v1821_v24 = vcombine.low %v1024_v40, %v1026_v11  ;;  %p2357_p13 = scmp.ne.s32.totalorder (%p1009_p12), %s1736_s3, %s2356_s28  ;;  %p2362_p1 = scmp.lt.s32.totalorder (%p1009_p12), %s2356_s28, %s2356_s28 }
 0x525   : > { %v1030_v2 = vld [vmem:[%s2794_s20 + $0x140] sm:$0xff]  ;;  %v1031_v23 = vld [vmem:[%s2794_s20 + $0x148] sm:$0xff]  ;;  %1236 = vmatpush1.bf16.msra.mxu0 %v1817_v10  ;;  %1279 = vmatpush1.bf16.msra.mxu1 %v1819_v21  ;;  %v1823_v27 = vcombine.low %v1025_v34, %v1027_v63 }
 0x526   : > { %1237 = vmatprep.subr.bf16.mxu0 %v1822_v50  ;;  %v1826_v29 = vcombine.high %v1028_v1, %v1030_v2  ;;  %1280 = vmatprep.subr.bf16.mxu1 %v1824_v33  ;;  %v1828_v36 = vcombine.high %v1029_v22, %v1031_v23  ;;  %v1032_v12 = vld [vmem:[%s2794_s20 + $0x180] sm:$0xff]  ;;  %v1033_v19 = vld [vmem:[%s2794_s20 + $0x188] sm:$0xff]  ;;  %v1825_v20 = vcombine.low %v1028_v1, %v1030_v2  ;;  %p2363_p2 = por (%p1009_p12), %p2362_p1, %p2361_p0 }
 0x527   : > { %v1034_v15 = vld [vmem:[%s2794_s20 + $0x1c0] sm:$0xff]  ;;  %v1035_v35 = vld [vmem:[%s2794_s20 + $0x1c8] sm:$0xff]  ;;  %v1827_v37 = vcombine.low %v1029_v22, %v1031_v23  ;;  %v2218_v23 = vld [vmem:[%s2818_s23 + $0x50] sm:$0xff]  }
 0x528   : > { %v1830_v43 = vcombine.high %v1032_v12, %v1034_v15  ;;  %v1036_v44 = vld [vmem:[%s2794_s20 + $0x200] sm:$0xff]  ;;  %v1832_v47 = vcombine.high %v1033_v19, %v1035_v35  ;;  %v1037_v62 = vld [vmem:[%s2794_s20 + $0x208] sm:$0xff]  ;;  %v1829_v0 = vcombine.low %v1032_v12, %v1034_v15  ;;  %v1831_v54 = vcombine.low %v1033_v19, %v1035_v35  ;;  %v2223_v12 = vld [vmem:[%s2818_s23 + $0xd8] sm:$0xff]   ;;  %p2364_p3 = pnand (%p1009_p12), %p2363_p2, %p2357_p13 }
 0x529   : > { %1238 = vmatpush1.bf16.msra.mxu0 %v1821_v24  ;;  %1281 = vmatpush1.bf16.msra.mxu1 %v1823_v27  ;;  %v1038_v51 = vld [vmem:[%s2794_s20 + $0x240] sm:$0xff]  ;;  %v1039_v52 = vld [vmem:[%s2794_s20 + $0x248] sm:$0xff]  ;;  %v2219_v24 = vld [vmem:[%s2818_s23 + $0xd0] sm:$0xff]  }
 0x52a   : > { %1239 = vmatprep.subr.bf16.mxu0 %v1826_v29  ;;  %1282 = vmatprep.subr.bf16.mxu1 %v1828_v36  ;;  %v1040_v53 = vld [vmem:[%s2794_s20 + $0x280] sm:$0xff]  ;;  %v1834_v55 = vcombine.high %v1036_v44, %v1038_v51  ;;  %v1836_v25 = vcombine.high %v1037_v62, %v1039_v52  ;;  %v1041_v57 = vld [vmem:[%s2794_s20 + $0x288] sm:$0xff]  ;;  %v1833_v61 = vcombine.low %v1036_v44, %v1038_v51  ;;  %v2220_v27 = vld [vmem:[%s2818_s23 + $0x10] sm:$0xff]  }
 0x52b   : > { %v1042_v56 = vld [vmem:[%s2794_s20 + $0x2c0] sm:$0xff]  ;;  %v1043_v59 = vld [vmem:[%s2794_s20 + $0x2c8] sm:$0xff]  ;;  %v1835_v26 = vcombine.low %v1037_v62, %v1039_v52  ;;  %v2221_v29 = vld [vmem:[%s2818_s23 + $0x90] sm:$0xff]  }
 0x52c   : > { %v1044_v58 = vld [vmem:[%s2794_s20 + $0x300] sm:$0xff]  ;;  %v1838_v3 = vcombine.high %v1040_v53, %v1042_v56  ;;  %v1840_v4 = vcombine.high %v1041_v57, %v1043_v59  ;;  %v1045_v5 = vld [vmem:[%s2794_s20 + $0x308] sm:$0xff]  ;;  %v1837_v13 = vcombine.low %v1040_v53, %v1042_v56  ;;  %v1839_v14 = vcombine.low %v1041_v57, %v1043_v59  ;;  %v2222_v36 = vld [vmem:[%s2818_s23 + $0x58] sm:$0xff]  }
 0x52d   : > { %1240 = vmatpush1.bf16.msra.mxu0 %v1825_v20  ;;  %1283 = vmatpush1.bf16.msra.mxu1 %v1827_v37  ;;  %v1046_v60 = vld [vmem:[%s2794_s20 + $0x340] sm:$0xff]  ;;  %v1047_v6 = vld [vmem:[%s2794_s20 + $0x348] sm:$0xff]  ;;  %v2224_v15 = vld [vmem:[%s2818_s23 + $0x18] sm:$0xff]  }
 0x52e   : > { %1241 = vmatprep.subr.bf16.mxu0 %v1830_v43  ;;  %1284 = vmatprep.subr.bf16.mxu1 %v1832_v47  ;;  %v1048_v30 = vld [vmem:[%s2794_s20 + $0x380] sm:$0xff]  ;;  %v1842_v16 = vcombine.high %v1044_v58, %v1046_v60  ;;  %v1844_v32 = vcombine.high %v1045_v5, %v1047_v6  ;;  %v1049_v46 = vld [vmem:[%s2794_s20 + $0x388] sm:$0xff]  ;;  %v1841_v48 = vcombine.low %v1044_v58, %v1046_v60  ;;  %v2225_v19 = vld [vmem:[%s2818_s23 + $0x98] sm:$0xff]  }
 0x52f   : > { %v1050_v45 = vld [vmem:[%s2794_s20 + $0x3c0] sm:$0xff]  ;;  %v1051_v31 = vld [vmem:[%s2794_s20 + $0x3c8] sm:$0xff]  ;;  %v1843_v49 = vcombine.low %v1045_v5, %v1047_v6  ;;  %v2234_v52 = vld [vmem:[%s2818_s23 + $0x70] sm:$0xff]  }
 0x530   : > { %v1846_v10 = vcombine.high %v1048_v30, %v1050_v45  ;;  %v1848_v40 = vcombine.high %v1049_v46, %v1051_v31  ;;  %v1845_v11 = vcombine.low %v1048_v30, %v1050_v45  ;;  %v2210_v18 = vld [vmem:[%s2818_s23 + $0x40] sm:$0xff]   ;;  %v1847_v21 = vcombine.low %v1049_v46, %v1051_v31  ;;  %v2214_v1 = vld [vmem:[%s2818_s23 + $0x48] sm:$0xff]   ;;  %v2236_v53 = vld [vmem:[%s2818_s23 + $0x30] sm:$0xff]  }
 0x531   : > { %1242 = vmatpush1.bf16.msra.mxu0 %v1829_v0  ;;  %1285 = vmatpush1.bf16.msra.mxu1 %v1831_v54  ;;  %v2211_v50 = vld [vmem:[%s2818_s23 + $0xc0] sm:$0xff]   ;;  %v2215_v33 = vld [vmem:[%s2818_s23 + $0xc8] sm:$0xff]   ;;  %v2235_v0 = vld [vmem:[%s2818_s23 + $0xf0] sm:$0xff]  }
 0x532   : > { %1243 = vmatprep.subr.bf16.mxu0 %v1834_v55  ;;  %1286 = vmatprep.subr.bf16.mxu1 %v1836_v25  ;;  %v2212_v34 = vld [vmem:[%s2818_s23] sm:$0xff]   ;;  %v2216_v2 = vld [vmem:[%s2818_s23 + $0x8] sm:$0xff]   ;;  %v2237_v54 = vld [vmem:[%s2818_s23 + $0xb0] sm:$0xff]  }
 0x533   : > { %v2213_v63 = vld [vmem:[%s2818_s23 + $0x80] sm:$0xff]   ;;  %v2217_v22 = vld [vmem:[%s2818_s23 + $0x88] sm:$0xff]   ;;  %v2238_v55 = vld [vmem:[%s2818_s23 + $0x78] sm:$0xff]  }
 0x534   : > { %v2226_v35 = vld [vmem:[%s2818_s23 + $0x60] sm:$0xff]   ;;  %v2230_v44 = vld [vmem:[%s2818_s23 + $0x68] sm:$0xff]   ;;  %v2239_v56 = vld [vmem:[%s2818_s23 + $0xf8] sm:$0xff]  }
 0x535   : > { %1244 = vmatpush1.bf16.msra.mxu0 %v1833_v61  ;;  %1287 = vmatpush1.bf16.msra.mxu1 %v1835_v26  ;;  %v2227_v20 = vld [vmem:[%s2818_s23 + $0xe0] sm:$0xff]   ;;  %v2231_v47 = vld [vmem:[%s2818_s23 + $0xe8] sm:$0xff]   ;;  %v2240_v25 = vld [vmem:[%s2818_s23 + $0x38] sm:$0xff]   ;;  %v1069_v61 = vsub.s32 3, %v2610_v38 }
 0x536   : > { %1245 = vmatprep.subr.bf16.mxu0 %v1838_v3  ;;  %1288 = vmatprep.subr.bf16.mxu1 %v1840_v4  ;;  %v2228_v37 = vld [vmem:[%s2818_s23 + $0x20] sm:$0xff]   ;;  %v2232_v51 = vld [vmem:[%s2818_s23 + $0x28] sm:$0xff]   ;;  %v2241_v57 = vld [vmem:[%s2818_s23 + $0xb8] sm:$0xff]  }
 0x537   : > { %v2229_v43 = vld [vmem:[%s2818_s23 + $0xa0] sm:$0xff]   ;;  %v2233_v62 = vld [vmem:[%s2818_s23 + $0xa8] sm:$0xff]  }
 0x538   : > { %v1053_v59 = vld [vmem:[%s1052_s26] sm:$0xf] }
 0x539   : > { %1246 = vmatpush1.bf16.msra.mxu0 %v1837_v13  ;;  %1289 = vmatpush1.bf16.msra.mxu1 %v1839_v14  ;;  %v1058_v58 = vrot.slane %v1053_v59, %v150_v41  ;;  %v1066_v26 = vrot.slane %v1053_v59, %v158_v39  ;;  %v1062_v3 = vrot.slane %v1053_v59, %v154_v42 }
 0x53a   : > { %1247 = vmatprep.subr.bf16.mxu0 %v1842_v16  ;;  %1290 = vmatprep.subr.bf16.mxu1 %v1844_v32  ;;  %v1070_v60 = vrot.slane %v1053_v59, %v1069_v61 }
 0x53d   : > { %1248 = vmatpush1.bf16.msra.mxu0 %v1841_v48  ;;  %1291 = vmatpush1.bf16.msra.mxu1 %v1843_v49 }
 0x53e   : > { %1249 = vmatprep.subr.bf16.mxu0 %v1846_v10  ;;  %1292 = vmatprep.subr.bf16.mxu1 %v1848_v40 }
 0x541   : > { %1250 = vmatpush1.bf16.msra.mxu0 %v1845_v11  ;;  %1293 = vmatpush1.bf16.msra.mxu1 %v1847_v21 }
 0x542   : > { %1939 = vmatprep.subr.bf16.mxu0 %v2210_v18  ;;  %1961 = vmatprep.subr.bf16.mxu1 %v2211_v50 }
 0x544   : > { %1268 = vmatmul.mubr.bf16.vlgmr.msra.gmra.mrb[0].mxu0 %v2773_v7  ;;  %1311 = vmatmul.mubr.bf16.vlgmr.msra.gmra.mrb[0].mxu1 %v2773_v7 }
 0x545   : > { %1940 = vmatpush3.bf16.msra.mxu0 %v2212_v34  ;;  %1962 = vmatpush3.bf16.msra.mxu1 %v2213_v63 }
 0x546   : > { %1941 = vmatprep.subr.bf16.mxu0 %v2214_v1  ;;  %1963 = vmatprep.subr.bf16.mxu1 %v2215_v33 }
 0x549   : > { %1942 = vmatpush3.bf16.msra.mxu0 %v2216_v2  ;;  %1964 = vmatpush3.bf16.msra.mxu1 %v2217_v22 }
 0x54a   : > { %1943 = vmatprep.subr.bf16.mxu0 %v2218_v23  ;;  %1965 = vmatprep.subr.bf16.mxu1 %v2219_v24 }
 0x54d   : > { %1944 = vmatpush3.bf16.msra.mxu0 %v2220_v27  ;;  %1966 = vmatpush3.bf16.msra.mxu1 %v2221_v29 }
 0x54e   : > { %1945 = vmatprep.subr.bf16.mxu0 %v2222_v36  ;;  %1967 = vmatprep.subr.bf16.mxu1 %v2223_v12 }
 0x551   : > { %1946 = vmatpush3.bf16.msra.mxu0 %v2224_v15  ;;  %1968 = vmatpush3.bf16.msra.mxu1 %v2225_v19 }
 0x552   : > { %1947 = vmatprep.subr.bf16.mxu0 %v2226_v35  ;;  %1969 = vmatprep.subr.bf16.mxu1 %v2227_v20 }
 0x555   : > { %1948 = vmatpush3.bf16.msra.mxu0 %v2228_v37  ;;  %1970 = vmatpush3.bf16.msra.mxu1 %v2229_v43 }
 0x556   : > { %1949 = vmatprep.subr.bf16.mxu0 %v2230_v44  ;;  %1971 = vmatprep.subr.bf16.mxu1 %v2231_v47 }
 0x559   : > { %1950 = vmatpush3.bf16.msra.mxu0 %v2232_v51  ;;  %1972 = vmatpush3.bf16.msra.mxu1 %v2233_v62 }
 0x55a   : > { %1951 = vmatprep.subr.bf16.mxu0 %v2234_v52  ;;  %1973 = vmatprep.subr.bf16.mxu1 %v2235_v0 }
 0x55d   : > { %1952 = vmatpush3.bf16.msra.mxu0 %v2236_v53  ;;  %1974 = vmatpush3.bf16.msra.mxu1 %v2237_v54  ;;  %v1882_v54 = vld [vmem:[%s2922_s9] ss:$0 sm:$0xff] (%p1009_p12) }
 0x55e   : > { %1953 = vmatprep.subr.bf16.mxu0 %v2238_v55  ;;  %1975 = vmatprep.subr.bf16.mxu1 %v2239_v56 }
 0x561   : > { %1954 = vmatpush3.bf16.msra.mxu0 %v2240_v25  ;;  %1976 = vmatpush3.bf16.msra.mxu1 %v2241_v57 }
 0x617   : > { %v1269_v4 = vpop.f32.mrb[0].mxu0  ;;  %v1312_v6 = vpop.f32.mrb[0].mxu1 }
 0x618   : > { %v1270_v5 = vadd.f32 %v1269_v4, %v1058_v58  ;;  %v1271_v13 = vpop.f32.mrb[1].mxu0  ;;  %v1313_v30 = vadd.f32 %v1312_v6, %v1066_v26  ;;  %v1314_v16 = vpop.f32.mrb[1].mxu1  ;;  %v1883_v4 = vld [vmem:[%s2923_s10] ss:$0 sm:$0xff] (%p1009_p12) }
 0x619   : > { %v1272_v14 = vadd.f32 %v1271_v13, %v1062_v3  ;;  %v1273_v45 = vpop.f32.mrb[2].mxu0  ;;  %v1315_v32 = vadd.f32 %v1314_v16, %v1070_v60  ;;  %v1316_v31 = vpop.f32.mrb[2].mxu1  ;;  %v1884_v6 = vld [vmem:[%s2924_s11] ss:$0 sm:$0xff] (%p1009_p12) }
 0x61a   : > { %v1274_v46 = vadd.f32 %v1273_v45, %v1058_v58  ;;  %v1275_v48 = vpop.f32.mrb[3].mxu0  ;;  %v1317_v49 = vadd.f32 %v1316_v31, %v1066_v26  ;;  %v1318_v40 = vpop.f32.mrb[3].mxu1  ;;  %v1321_v11 = vmax.f32 %v1270_v5, 0.0  ;;  %v1323_v50 = vmax.f32 %v1313_v30, 0.0 }
 0x61b   : > { %v1276_v10 = vadd.f32 %v1275_v48, %v1062_v3  ;;  %v1319_v21 = vadd.f32 %v1318_v40, %v1070_v60  ;;  %v1322_v34 = vmax.f32 %v1272_v14, 0.0  ;;  %v1324_v33 = vmax.f32 %v1315_v32, 0.0 }
 0x61c   : > { %v1325_v18 = vmax.f32 %v1274_v46, 0.0  ;;  %v1327_v63 = vmax.f32 %v1317_v49, 0.0 }
 0x61d   : > { %v1326_v1 = vmax.f32 %v1276_v10, 0.0  ;;  %v1328_v22 = vmax.f32 %v1319_v21, 0.0 }
 0x61e   : > { %v1329_v2 = vpack.c.bf16 %v1325_v18, %v1321_v11  ;;  %v1331_v23 = vpack.c.bf16 %v1327_v63, %v1323_v50 }
 0x61f   : > { %v1330_v24 = vpack.c.bf16 %v1326_v1, %v1322_v34  ;;  %v1332_v27 = vpack.c.bf16 %v1328_v22, %v1324_v33 }
 0x621   : > { %1625 = vmatprep.mubr.bf16.mxu0 %v1330_v24  ;;  %1666 = vmatprep.mubr.bf16.mxu1 %v1332_v27 }
 0x622   : > { %1626 = vmatmul.mubr.bf16.vlgmr.msra.gmra.mrb[4].mxu0 %v1329_v2  ;;  %1667 = vmatmul.mubr.bf16.vlgmr.msra.gmra.mrb[4].mxu1 %v1331_v23 }
 0x6f5   : > { %v1955_v29 = vpop.f32.mrb[4].mxu0  ;;  %v1977_v36 = vpop.f32.mrb[4].mxu1 }
 0x6f6   : > { %v1956_v12 = vpop.f32.mrb[5].mxu0  ;;  %v1978_v19 = vpop.f32.mrb[5].mxu1 }
 0x6f7   : > { %v1957_v15 = vadd.f32 %v1956_v12, %v1955_v29  ;;  %v1958_v35 = vpop.f32.mrb[6].mxu0  ;;  %v1979_v20 = vadd.f32 %v1978_v19, %v1977_v36  ;;  %v1980_v37 = vpop.f32.mrb[6].mxu1 }
 0x6f8   : > { %v1959_v43 = vpop.f32.mrb[7].mxu0  ;;  %v1981_v47 = vpop.f32.mrb[7].mxu1 }
 0x6f9   : > { %v1960_v44 = vadd.f32 %v1959_v43, %v1958_v35  ;;  %v1669_v51 = vadd.f32 %v1979_v20, %v1957_v15  ;;  %v1982_v62 = vadd.f32 %v1981_v47, %v1980_v37  ;;  %1011 = sbr.rel (!%p1009_p12) target bundleno = 1308 (0x51c), region = 98 }
 0x6fb   : > { %v1675_v52 = vadd.f32 %v2404_v9, %v1669_v51   ;;  %v1672_v0 = vadd.f32 %v1982_v62, %v1960_v44 }
 0x6fd   : > { %v1676_v53 = vadd.f32 %v2400_v8, %v1672_v0   ;;  %v2927_v9 = vmov %v1675_v52  ;;  %v1684_v55 = vadd.f32 (%p1009_p12), %v1882_v54, %v1675_v52 }
 0x6ff   : > { %v2926_v8 = vmov %v1676_v53  ;;  %v1685_v56 = vadd.f32 (%p1009_p12), %v1882_v54, %v1676_v53  ;;  %v1686_v9 = vadd.f32 (%p1009_p12), %v1684_v55, %v2767_v28 }
 0x701   :  { %1690 = vadd.xlane.f32.xlu0 %v1686_v9  ;;  %v1687_v25 = vadd.f32 %v1685_v56, %v2769_v17 }
 0x705   :  { %1692 = vadd.xlane.f32.xlu0 %v1687_v25 }
 0x78e   :  { %v1691_v57 = vpop.xlane.xlu0 %1690 }
 0x78f   :  { %v1694_v59 = vmul.f32 0.0078125, %v1691_v57 }
 0x791   :  { %v1696_v61 = vsub.f32 %v1686_v9, %v1694_v59 }
 0x792   :  { %v1693_v58 = vpop.xlane.xlu0 %1692 }
 0x793   :  { %v1695_v26 = vmul.f32 0.0078125, %v1693_v58  ;;  %v1698_v3 = vmul.f32 %v1696_v61, %v1696_v61 }
 0x795   :  { %v1697_v60 = vsub.f32 %v1687_v25, %v1695_v26  ;;  %1700 = vadd.xlane.f32.xlu1 %v1698_v3 }
 0x797   :  { %v1699_v38 = vmul.f32 %v1697_v60, %v1697_v60 }
 0x799   :  { %1702 = vadd.xlane.f32.xlu1 %v1699_v38 }
 0x822   :  { %v1701_v39 = vpop.xlane.xlu1 %1700 }
 0x823   :  { %v1704_v41 = vmul.f32 0.0078125, %v1701_v39 }
 0x825   :  { %v1706_v42 = vadd.f32 1e-05, %v1704_v41 }
 0x826   :  { %v1703_v7 = vpop.xlane.xlu1 %1702 }
 0x827   :  { %2242 = vrsqrt.f32 %v1706_v42  ;;  %v1705_v28 = vmul.f32 0.0078125, %v1703_v7 }
 0x829   :  { %v1707_v8 = vadd.f32 1e-05, %v1705_v28 }
 0x82b   :  { %2244 = vrsqrt.f32 %v1707_v8 }
 0x831   :  { %v2243_v17 = vpop.eup %2242 }
 0x832   :  { %v1710_v5 = vmul.f32 %v2243_v17, %v1696_v61 }
 0x834   :  { %v1718_v13 = vmul.f32 %v1883_v4, %v1710_v5 }
 0x835   :  { %v2245_v30 = vpop.eup %2244 }
 0x836   :  { %v1711_v14 = vmul.f32 %v2245_v30, %v1697_v60  ;;  %v1726_v16 = vadd.f32 %v1884_v6, %v1718_v13 }
 0x838   :  { %v1719_v45 = vmul.f32 %v1883_v4, %v1711_v14  ;;  %1728 = vst [vmem:[#allocation11] sm:$0xff] %v1726_v16 }
 0x83a   :  { %v1727_v32 = vadd.f32 %v1884_v6, %v1719_v45 }
 0x83c   :  { %1729 = vst [vmem:[#allocation11 + $0x8] sm:$0xff] %v1727_v32 }
 0x83d   :  { %2367 = shalt.err (!%p2364_p3)
}
 0x83e   :  { %s2368_s8 = scalar_lea.hbm %s2925_s12, 256 }
 0x83f   :  { %p2369_p4 = scmp.ne.s32.totalorder %s2925_s12, %s2368_s8  ;;  %p2372_p5 = scmp.lt.u32.totalorder %s2368_s8, %s2925_s12 }
 0x841   :  { %p2374_p6 = pnand %p2372_p5, %p2369_p4 }
 0x843   :  { %2377 = shalt.err (!%p2374_p6)
}
 0x844   :  { %1741 = dma.vmem_to_hbm [thread:$0]  %s1736_s3, 256, %s2925_s12, [#allocation4], %s2417_s6, %s2417_s6, %s2418_s18  }
 0x845   :  { %2396 = dma.done.wait [#allocation4], 256  }
 0x846   :  { %2397 = vsyncadd [#allocation4], 4294967040 }
 0x847   :  { %1745 = vsyncpa [#allocation3], 1 }
 0x848   :  { %1746 = vsyncpa [#allocation6], 1 }
 0x849   :  { %1747 = vsyncpa [#allocation9], 1 }
 0x84a   :  { %1748 = vsyncpa [#allocation4], 1 }

</bundles_post_ra>
